<compile_context>
chip_gen: v7x
topology: tpu7x:2x2x1
jax: 0.10.0
libtpu: 0.0.40
codegen_flags: <defaults>
</compile_context>

<pallas_src>
import functools

import jax
import jax.numpy as jnp
import numpy as np
from jax.experimental import pallas as pl
from jax.experimental.pallas import tpu as pltpu

NUM_HEADS = 8


# ----------------------------- packing helpers -------------------------------

def _round_up(x, m):
    return ((x + m - 1) // m) * m


def _head_mask_np(Cq, num_heads):
    """Additive block-diagonal per-head mask for the (Cq, Cq) score matrix."""
    hd = Cq // num_heads
    idx = np.arange(Cq) // hd
    # -1e30 (not -inf): exp(-1e30 - rowmax) flushes to exactly 0 in f32.
    return np.where(idx[:, None] == idx[None, :], 0.0, -1e30).astype(np.float32)


def _pack_slab(entries, pad_cols):
    """Pack (name, 2-D array) blocks into one zero-padded slab.

    Rows of every block are padded to a multiple of 8 (sublane aligned), the
    columns to pad_cols.  Returns (slab, {name: (row_off, rows_pad, rows, cols)}).
    """
    layout = {}
    blocks = []
    off = 0
    for name, arr in entries:
        arr = jnp.asarray(arr, jnp.float32)
        r, c = arr.shape
        rp = _round_up(r, 8)
        block = jnp.zeros((rp, pad_cols), jnp.float32).at[:r, :c].set(arr)
        blocks.append(block)
        layout[name] = (off, rp, r, c)
        off += rp
    return jnp.concatenate(blocks, axis=0), layout


def _pack_params(p, Cr, Cd, L):
    """Pre-concatenate / pack all weights (+ masks) and lane-broadcast biases."""
    T = Cr + Cd
    w_cols = _round_up(max(Cr, Cd, T, 128), 128)
    w_entries = [
        # projections applied to rgb: [Wq_rd ; Wk_dr ; Wv_dr]  -> (Cr+2Cd, Cr)
        ('Wrgb_proj', jnp.concatenate([p['Wq_rd'], p['Wk_dr'], p['Wv_dr']], axis=0)),
        # projections applied to depth: [Wq_dr ; Wk_rd ; Wv_rd] -> (Cd+2Cr, Cd)
        ('Wdep_proj', jnp.concatenate([p['Wq_dr'], p['Wk_rd'], p['Wv_rd']], axis=0)),
        ('Wo_rd', p['Wo_rd']),
        ('Wo_dr', p['Wo_dr']),
        ('Ws1_r', p['Ws1_r']),
        ('Ws2_r', p['Ws2_r']),
        ('Ws1_d', p['Ws1_d']),
        ('Ws2_d', p['Ws2_d']),
        # gate / fusion weights over the stacked [rgb | depth] features
        ('Wg', jnp.concatenate([p['Wg_rgb'], p['Wg_depth']], axis=1)),
        ('Wg_met', p['Wg_met']),
        ('Wf', jnp.concatenate([p['Wf_rgb'], p['Wf_depth']], axis=1)),
        # per-head block-diagonal additive masks (hoisted out of the kernel)
        ('mask_r', _head_mask_np(Cr, NUM_HEADS)),
        ('mask_d', _head_mask_np(Cd, NUM_HEADS)),
    ]
    b_cols = _round_up(max(L, 128), 128)

    def bb(x):
        # pre-broadcast bias columns across all lanes: bias adds become plain adds
        x = jnp.asarray(x, jnp.float32)
        return jnp.broadcast_to(x, (x.shape[0], b_cols))

    b_entries = [
        ('brgb_proj', bb(jnp.concatenate([p['bq_rd'], p['bk_dr'], p['bv_dr']], axis=0))),
        ('bdep_proj', bb(jnp.concatenate([p['bq_dr'], p['bk_rd'], p['bv_rd']], axis=0))),
        ('bo_rd', bb(p['bo_rd'])),
        ('bo_dr', bb(p['bo_dr'])),
        ('bs1_r', bb(p['bs1_r'])),
        ('bs2_r', bb(p['bs2_r'])),
        ('bs1_d', bb(p['bs1_d'])),
        ('bs2_d', bb(p['bs2_d'])),
        ('bg', bb(p['bg'])),
        ('bf', bb(p['bf'])),
    ]
    w_slab, w_layout = _pack_slab(w_entries, w_cols)
    b_slab, b_layout = _pack_slab(b_entries, b_cols)
    return w_slab, w_layout, b_slab, b_layout


# ------------------------------ kernel helpers --------------------------------

def _refined_reciprocal(x):
    """1/x via EUP approx reciprocal + one Newton step (f32-accurate)."""
    r = pl.reciprocal(x, approx=True)
    return r * (2.0 - x * r)


def _fusion_kernel(rgb_ref, depth_ref, w_ref, b_ref, out_ref, stacked_ref, *,
                   w_layout, b_layout, Cr, Cd, HW, Bt, L, num_heads):
    T = Cr + Cd

    def Wm(name, cols):
        off, rp, _, _ = w_layout[name]
        return w_ref[off:off + rp, 0:cols]          # rows always 8-aligned

    def Bfull(name):
        off, rp, _, _ = b_layout[name]
        return b_ref[off:off + rp, 0:L]             # pre-broadcast over lanes

    def Bcols(name, cols):
        off, rp, _, _ = b_layout[name]
        return b_ref[off:off + rp, 0:cols]

    def lane_concat(parts):
        return parts[0] if len(parts) == 1 else jnp.concatenate(parts, axis=1)

    rgb = rgb_ref[0]        # (Cr, L),  L = Bt*HW
    depth = depth_ref[0]    # (Cd, L)

    # ---- per-batch quality metrics first (short live ranges, 1-pass var) ----
    inv_nr = 1.0 / float(Cr * HW)
    inv_nrm1 = 1.0 / float(Cr * HW - 1)
    inv_nd = 1.0 / float(Cd * HW)
    ds_list, rv_list = [], []
    for b in range(Bt):
        lo, hi = b * HW, (b + 1) * HW
        d_b = depth[:, lo:hi]
        r_b = rgb[:, lo:hi]
        ds_list.append(jnp.sum((d_b == 0.0).astype(jnp.float32)) * inv_nd)
        s1 = jnp.sum(r_b)
        s2 = jnp.sum(r_b * r_b)
        rv_list.append((s2 - s1 * s1 * inv_nr) * inv_nrm1)   # unbiased variance
    # lidar_sparsity == 0 (no lidar modality)

    # ---- fused Q/K/V projections: one wide matmul per modality ---------------
    qkv_r = (jnp.dot(Wm('Wrgb_proj', Cr), rgb, preferred_element_type=jnp.float32)
             + Bfull('brgb_proj'))                       # (Cr+2Cd, L)
    qkv_d = (jnp.dot(Wm('Wdep_proj', Cd), depth, preferred_element_type=jnp.float32)
             + Bfull('bdep_proj'))                       # (Cd+2Cr, L)

    Q_rd = qkv_r[0:Cr]                    # query of rgb_to_depth  (from rgb)
    K_dr = qkv_r[Cr:Cr + Cd]              # key   of depth_to_rgb  (from rgb)
    V_dr = qkv_r[Cr + Cd:Cr + 2 * Cd]     # value of depth_to_rgb  (from rgb)
    Q_dr = qkv_d[0:Cd]                    # query of depth_to_rgb  (from depth)
    K_rd = qkv_d[Cd:Cd + Cr]              # key   of rgb_to_depth  (from depth)
    V_rd = qkv_d[Cd + Cr:Cd + 2 * Cr]     # value of rgb_to_depth  (from depth)

    mask_r = Wm('mask_r', Cr)
    mask_d = Wm('mask_d', Cd)
    scale_r = float(Cr // num_heads) ** -0.5
    scale_d = float(Cd // num_heads) ** -0.5

    def attn_core(Q, K, V, mask, scale):
        # per-(batch-in-group) attention over channel positions (spatial contracted)
        outs = []
        for b in range(Bt):
            lo, hi = b * HW, (b + 1) * HW
            # NT dot (contracting the spatial dim).  On v5e the implied K
            # transpose may show as an XLU vxpose; left as-is per review.
            s = jax.lax.dot_general(Q[:, lo:hi], K[:, lo:hi],
                                    (((1,), (1,)), ((), ())),
                                    preferred_element_type=jnp.float32) * scale + mask
            s = s - jnp.max(s, axis=-1, keepdims=True)
            p = jnp.exp(s)
            attn = p * _refined_reciprocal(jnp.sum(p, axis=-1, keepdims=True))
            outs.append(jnp.dot(attn, V[:, lo:hi], preferred_element_type=jnp.float32))
        return lane_concat(outs)                         # (Cq, L)

    att_r = attn_core(Q_rd, K_rd, V_rd, mask_r, scale_r)
    att_d = attn_core(Q_dr, K_dr, V_dr, mask_d, scale_d)

    rgb_cross = rgb + (jnp.dot(Wm('Wo_rd', Cr), att_r, preferred_element_type=jnp.float32)
                       + Bfull('bo_rd'))
    depth_cross = depth + (jnp.dot(Wm('Wo_dr', Cd), att_d, preferred_element_type=jnp.float32)
                           + Bfull('bo_dr'))

    # ---- squeeze-excitation refinement (tiny per-batch matmuls, unrolled) ----
    def se_refine(x, w1, b1, w2, b2):
        parts = []
        for b in range(Bt):
            xb = x[:, b * HW:(b + 1) * HW]
            pooled = jnp.mean(xb, axis=-1, keepdims=True)                  # (C, 1)
            y = jnp.maximum(jnp.dot(w1, pooled, preferred_element_type=jnp.float32) + b1, 0.0)
            g = jax.nn.sigmoid(jnp.dot(w2, y, preferred_element_type=jnp.float32) + b2)
            parts.append(xb * g)
        return lane_concat(parts)

    rr_p = w_layout['Ws1_r'][1]       # padded SE bottleneck rows (multiple of 8)
    rd_p = w_layout['Ws1_d'][1]
    rgb_refined = se_refine(rgb_cross, Wm('Ws1_r', Cr), Bcols('bs1_r', 1),
                            Wm('Ws2_r', rr_p), Bcols('bs2_r', 1))
    depth_refined = se_refine(depth_cross, Wm('Ws1_d', Cd), Bcols('bs1_d', 1),
                              Wm('Ws2_d', rd_p), Bcols('bs2_d', 1))

    # ---- channel-wise L2 normalization (reciprocal-multiply) -----------------
    def l2n(x):
        den = jnp.sqrt(jnp.sum(x * x, axis=0, keepdims=True)) + 1e-6      # (1, L)
        return x * _refined_reciprocal(den)

    rgb_refined = l2n(rgb_refined)
    depth_refined = l2n(depth_refined)

    # ---- gate + fusion through the persistent stacked VMEM scratch -----------
    stacked_ref[0:Cr, :] = rgb_refined
    stacked_ref[Cr:T, :] = depth_refined

    gp = w_layout['Wg'][1]            # padded gate rows (=8); rows 3.. are zero
    wgm = Wm('Wg_met', 8)             # (gp, 8); cols 0/1 real, rest zero
    metric_parts = []
    for b in range(Bt):
        mcol = wgm[:, 0:1] * ds_list[b] + wgm[:, 1:2] * rv_list[b]        # (gp, 1)
        metric_parts.append(jnp.broadcast_to(mcol, (gp, HW)))
    metric_full = lane_concat(metric_parts)                               # (gp, L)

    gate_pre = (jnp.dot(Wm('Wg', T), stacked_ref[...], preferred_element_type=jnp.float32)
                + metric_full + Bfull('bg'))                              # (gp, L)
    alpha = jax.nn.sigmoid(gate_pre)

    # apply gating in place; fusion reads the same scratch
    stacked_ref[0:Cr, :] = rgb_refined * alpha[0:1, :]
    stacked_ref[Cr:T, :] = depth_refined * alpha[1:2, :]

    fused = (jnp.dot(Wm('Wf', T), stacked_ref[...], preferred_element_type=jnp.float32)
             + Bfull('bf'))                                               # (T, L)
    out_ref[0] = fused


# --------------------------------- wrapper ------------------------------------

def _choose_batch_tile(B, max_tile=8):
    """Largest divisor of B (<= max_tile) that keeps >= 2 grid steps (v7x TCs)."""
    best = 1
    for bt in range(1, min(B, max_tile) + 1):
        if B % bt == 0 and B // bt >= 2:
            best = bt
    return best


def adaptive_gated_attention_fusion(rgb, depth, params, *, batch_tile=None):
    """rgb: (B, Cr, H, W), depth: (B, Cd, H, W)  (NCHW, like PyTorch)."""
    B, Cr, H, W = rgb.shape
    Cd = depth.shape[1]
    assert Cr % NUM_HEADS == 0 and Cd % NUM_HEADS == 0
    HW = H * W
    T = Cr + Cd

    Bt = batch_tile if batch_tile is not None else _choose_batch_tile(B)
    assert B % Bt == 0
    nsteps = B // Bt
    L = Bt * HW

    # lane-major layout: (nsteps, C, Bt*HW) — batch elements side by side on lanes
    rgb2 = (rgb.astype(jnp.float32).reshape(nsteps, Bt, Cr, HW)
            .transpose(0, 2, 1, 3).reshape(nsteps, Cr, L))
    depth2 = (depth.astype(jnp.float32).reshape(nsteps, Bt, Cd, HW)
              .transpose(0, 2, 1, 3).reshape(nsteps, Cd, L))

    w_slab, w_layout, b_slab, b_layout = _pack_params(params, Cr, Cd, L)

    kernel = functools.partial(_fusion_kernel, w_layout=w_layout,
                               b_layout=b_layout, Cr=Cr, Cd=Cd, HW=HW,
                               Bt=Bt, L=L, num_heads=NUM_HEADS)

    out = pl.pallas_call(
        kernel,
        out_shape=jax.ShapeDtypeStruct((nsteps, T, L), jnp.float32),
        grid_spec=pltpu.PrefetchScalarGridSpec(
            num_scalar_prefetch=0,
            grid=(nsteps,),
            in_specs=[
                pl.BlockSpec((1, Cr, L), lambda s: (s, 0, 0)),
                pl.BlockSpec((1, Cd, L), lambda s: (s, 0, 0)),
                # weight/bias slabs: constant block index -> fetched once, reused
                pl.BlockSpec(w_slab.shape, lambda s: (0, 0)),
                pl.BlockSpec(b_slab.shape, lambda s: (0, 0)),
            ],
            out_specs=pl.BlockSpec((1, T, L), lambda s: (s, 0, 0)),
            scratch_shapes=[pltpu.VMEM((T, L), jnp.float32)],
        ),
        compiler_params=pltpu.CompilerParams(
            dimension_semantics=("parallel",)),
    )(rgb2, depth2, w_slab, b_slab)

    return (out.reshape(nsteps, T, Bt, HW).transpose(0, 2, 1, 3)
            .reshape(B, T, H, W))


# -------------------------- parameter construction ---------------------------

def init_params(key, Cr, Cd, reduction=16):
    r_r = max(Cr // reduction, 1)
    r_d = max(Cd // reduction, 1)
    T = Cr + Cd
    specs = {
        'Wq_rd': (Cr, Cr), 'bq_rd': (Cr, 1),
        'Wk_rd': (Cr, Cd), 'bk_rd': (Cr, 1),
        'Wv_rd': (Cr, Cd), 'bv_rd': (Cr, 1),
        'Wo_rd': (Cr, Cr), 'bo_rd': (Cr, 1),
        'Wq_dr': (Cd, Cd), 'bq_dr': (Cd, 1),
        'Wk_dr': (Cd, Cr), 'bk_dr': (Cd, 1),
        'Wv_dr': (Cd, Cr), 'bv_dr': (Cd, 1),
        'Wo_dr': (Cd, Cd), 'bo_dr': (Cd, 1),
        'Ws1_r': (r_r, Cr), 'bs1_r': (r_r, 1),
        'Ws2_r': (Cr, r_r), 'bs2_r': (Cr, 1),
        'Ws1_d': (r_d, Cd), 'bs1_d': (r_d, 1),
        'Ws2_d': (Cd, r_d), 'bs2_d': (Cd, 1),
        'Wg_rgb': (3, Cr), 'Wg_depth': (3, Cd), 'Wg_met': (3, 3), 'bg': (3, 1),
        'Wf_rgb': (T, Cr), 'Wf_depth': (T, Cd), 'bf': (T, 1),
    }
    params = {}
    keys = jax.random.split(key, len(specs))
    for k, (name, shape) in zip(keys, specs.items()):
        bound = 1.0 / np.sqrt(max(shape[1], 1))
        params[name] = jax.random.uniform(k, shape, jnp.float32, -bound, bound)
    return params


# --------------------------- pure-JAX reference ------------------------------

def _ref_cma(xq, xkv, Wq, bq, Wk, bk, Wv, bv, Wo, bo, nh):
    B, Cq, HW = xq.shape
    hd = Cq // nh
    scale = hd ** -0.5
    Q = jnp.einsum('oc,bcp->bop', Wq, xq) + bq[None]
    K = jnp.einsum('oc,bcp->bop', Wk, xkv) + bk[None]
    V = jnp.einsum('oc,bcp->bop', Wv, xkv) + bv[None]
    Q = Q.reshape(B, nh, hd, HW)
    K = K.reshape(B, nh, hd, HW)
    V = V.reshape(B, nh, hd, HW)
    scores = jnp.einsum('bnhd,bnkd->bnhk', Q, K) * scale
    attn = jax.nn.softmax(scores, axis=-1)
    out = jnp.einsum('bnhk,bnkd->bnhd', attn, V).reshape(B, Cq, HW)
    return jnp.einsum('oc,bcp->bop', Wo, out) + bo[None]


def _ref_se(x, W1, b1, W2, b2):
    pooled = jnp.mean(x, axis=-1, keepdims=True)
    y = jax.nn.relu(jnp.einsum('oc,bcp->bop', W1, pooled) + b1[None])
    g = jax.nn.sigmoid(jnp.einsum('oc,bcp->bop', W2, y) + b2[None])
    return x * g


def reference_forward(rgb, depth, p):
    B, Cr, H, W = rgb.shape
    Cd = depth.shape[1]
    HW = H * W
    r = rgb.reshape(B, Cr, HW).astype(jnp.float32)
    d = depth.reshape(B, Cd, HW).astype(jnp.float32)
    rgb_cross = r + _ref_cma(r, d, p['Wq_rd'], p['bq_rd'], p['Wk_rd'], p['bk_rd'],
                             p['Wv_rd'], p['bv_rd'], p['Wo_rd'], p['bo_rd'], NUM_HEADS)
    depth_cross = d + _ref_cma(d, r, p['Wq_dr'], p['bq_dr'], p['Wk_dr'], p['bk_dr'],
                               p['Wv_dr'], p['bv_dr'], p['Wo_dr'], p['bo_dr'], NUM_HEADS)
    rr = _ref_se(rgb_cross, p['Ws1_r'], p['bs1_r'], p['Ws2_r'], p['bs2_r'])
    dr = _ref_se(depth_cross, p['Ws1_d'], p['bs1_d'], p['Ws2_d'], p['bs2_d'])
    rr = rr / (jnp.linalg.norm(rr, axis=1, keepdims=True) + 1e-6)
    dr = dr / (jnp.linalg.norm(dr, axis=1, keepdims=True) + 1e-6)
    ds = jnp.mean((d == 0.0).astype(jnp.float32), axis=(1, 2), keepdims=True)
    n = Cr * HW
    rm = jnp.mean(r, axis=(1, 2), keepdims=True)
    rv = jnp.sum((r - rm) ** 2, axis=(1, 2), keepdims=True) / (n - 1)
    gate_pre = (jnp.einsum('oc,bcp->bop', p['Wg_rgb'], rr)
                + jnp.einsum('oc,bcp->bop', p['Wg_depth'], dr)
                + p['Wg_met'][None, :, 0:1] * ds
                + p['Wg_met'][None, :, 1:2] * rv
                + p['bg'][None])
    alpha = jax.nn.sigmoid(gate_pre)
    rw = rr * alpha[:, 0:1]
    dw = dr * alpha[:, 1:2]
    fused = (jnp.einsum('oc,bcp->bop', p['Wf_rgb'], rw)
             + jnp.einsum('oc,bcp->bop', p['Wf_depth'], dw)
             + p['bf'][None])
    return fused.reshape(B, Cr + Cd, H, W)


# ---------------------------------- main --------------------------------------

if __name__ == "__main__":
    B, Cr, Cd, H, W = 4, 32, 32, 16, 16
    key = jax.random.PRNGKey(0)
    k_rgb, k_depth, k_mask, k_param = jax.random.split(key, 4)
    rgb = jax.random.normal(k_rgb, (B, Cr, H, W), jnp.float32)
    depth = jax.random.normal(k_depth, (B, Cd, H, W), jnp.float32)
    # zero out ~30% of depth so depth_sparsity is non-trivial
    keep = (jax.random.uniform(k_mask, (B, Cd, H, W)) > 0.3).astype(jnp.float32)
    depth = depth * keep

    params = init_params(k_param, Cr, Cd, reduction=16)

    out = adaptive_gated_attention_fusion(rgb, depth, params)
    jax.block_until_ready(out)

    ref = reference_forward(rgb, depth, params)
    np.testing.assert_allclose(np.asarray(out), np.asarray(ref), rtol=2e-3, atol=2e-3)
    print("KERNEL_OK")
</pallas_src>

<mosaic_0001>
module attributes {stable_mosaic.version = 11 : i64} {
  func.func @_fusion_kernel(%arg0: i32, %arg1: memref<1x32x512xf32, #tpu.memory_space<vmem>>, %arg2: memref<1x32x512xf32, #tpu.memory_space<vmem>>, %arg3: memref<480x128xf32, #tpu.memory_space<vmem>>, %arg4: memref<408x512xf32, #tpu.memory_space<vmem>>, %arg5: memref<1x64x512xf32, #tpu.memory_space<vmem>>, %arg6: memref<64x512xf32, #tpu.memory_space<vmem>>) attributes {dimension_semantics = [#tpu.dimension_semantics<parallel>], iteration_bounds = array<i64: 2>, scalar_prefetch = 0 : i64, scratch_operands = 1 : i64, tpu.core_type = #tpu.core_type<tc>, window_params = [{transform_indices = @transform_0, window_bounds = array<i64: 1, 32, 512>}, {transform_indices = @transform_1, window_bounds = array<i64: 1, 32, 512>}, {pipeline_mode = #tpu.pipeline_mode<synchronous>, transform_indices = @transform_2, window_bounds = array<i64: 480, 128>}, {pipeline_mode = #tpu.pipeline_mode<synchronous>, transform_indices = @transform_3, window_bounds = array<i64: 408, 512>}, {transform_indices = @transform_4, window_bounds = array<i64: 1, 64, 512>}]} {
    %c0 = arith.constant 0 : index
    %c0_0 = arith.constant 0 : index
    %c0_1 = arith.constant 0 : index
    %0 = vector.load %arg1[%c0, %c0_0, %c0_1] : memref<1x32x512xf32, #tpu.memory_space<vmem>>, vector<1x32x512xf32>
    %1 = vector.shape_cast %0 : vector<1x32x512xf32> to vector<32x512xf32>
    %c0_2 = arith.constant 0 : index
    %c0_3 = arith.constant 0 : index
    %c0_4 = arith.constant 0 : index
    %2 = vector.load %arg2[%c0_2, %c0_3, %c0_4] : memref<1x32x512xf32, #tpu.memory_space<vmem>>, vector<1x32x512xf32>
    %3 = vector.shape_cast %2 : vector<1x32x512xf32> to vector<32x512xf32>
    %4 = vector.extract_strided_slice %3 {offsets = [0, 0], sizes = [32, 256], strides = [1, 1]} : vector<32x512xf32> to vector<32x256xf32>
    %5 = vector.extract_strided_slice %1 {offsets = [0, 0], sizes = [32, 256], strides = [1, 1]} : vector<32x512xf32> to vector<32x256xf32>
    %cst = arith.constant 0.000000e+00 : f32
    %6 = vector.broadcast %cst : f32 to vector<32x256xf32>
    %7 = arith.cmpf oeq, %4, %6 : vector<32x256xf32>
    %8 = arith.extui %7 : vector<32x256xi1> to vector<32x256xi32>
    %9 = arith.sitofp %8 : vector<32x256xi32> to vector<32x256xf32>
    %10 = vector.shape_cast %9 : vector<32x256xf32> to vector<1x32x256xf32>
    %cst_5 = arith.constant dense<0.000000e+00> : vector<1xf32>
    %11 = vector.multi_reduction <add>, %10, %cst_5 [1, 2] : vector<1x32x256xf32> to vector<1xf32>
    %12 = vector.shape_cast %11 : vector<1xf32> to vector<1x1x1xf32>
    %13 = vector.extract %12[0, 0, 0] : f32 from vector<1x1x1xf32>
    %cst_6 = arith.constant 1.22070313E-4 : f32
    %14 = arith.mulf %13, %cst_6 : f32
    %15 = vector.shape_cast %5 : vector<32x256xf32> to vector<1x32x256xf32>
    %cst_7 = arith.constant dense<0.000000e+00> : vector<1xf32>
    %16 = vector.multi_reduction <add>, %15, %cst_7 [1, 2] : vector<1x32x256xf32> to vector<1xf32>
    %17 = vector.shape_cast %16 : vector<1xf32> to vector<1x1x1xf32>
    %18 = vector.extract %17[0, 0, 0] : f32 from vector<1x1x1xf32>
    %19 = arith.mulf %5, %5 : vector<32x256xf32>
    %20 = vector.shape_cast %19 : vector<32x256xf32> to vector<1x32x256xf32>
    %cst_8 = arith.constant dense<0.000000e+00> : vector<1xf32>
    %21 = vector.multi_reduction <add>, %20, %cst_8 [1, 2] : vector<1x32x256xf32> to vector<1xf32>
    %22 = vector.shape_cast %21 : vector<1xf32> to vector<1x1x1xf32>
    %23 = vector.extract %22[0, 0, 0] : f32 from vector<1x1x1xf32>
    %24 = arith.mulf %18, %18 : f32
    %cst_9 = arith.constant 1.22070313E-4 : f32
    %25 = arith.mulf %24, %cst_9 : f32
    %26 = arith.subf %23, %25 : f32
    %cst_10 = arith.constant 1.22085214E-4 : f32
    %27 = arith.mulf %26, %cst_10 : f32
    %28 = vector.extract_strided_slice %3 {offsets = [0, 256], sizes = [32, 256], strides = [1, 1]} : vector<32x512xf32> to vector<32x256xf32>
    %29 = vector.extract_strided_slice %1 {offsets = [0, 256], sizes = [32, 256], strides = [1, 1]} : vector<32x512xf32> to vector<32x256xf32>
    %cst_11 = arith.constant 0.000000e+00 : f32
    %30 = vector.broadcast %cst_11 : f32 to vector<32x256xf32>
    %31 = arith.cmpf oeq, %28, %30 : vector<32x256xf32>
    %32 = arith.extui %31 : vector<32x256xi1> to vector<32x256xi32>
    %33 = arith.sitofp %32 : vector<32x256xi32> to vector<32x256xf32>
    %34 = vector.shape_cast %33 : vector<32x256xf32> to vector<1x32x256xf32>
    %cst_12 = arith.constant dense<0.000000e+00> : vector<1xf32>
    %35 = vector.multi_reduction <add>, %34, %cst_12 [1, 2] : vector<1x32x256xf32> to vector<1xf32>
    %36 = vector.shape_cast %35 : vector<1xf32> to vector<1x1x1xf32>
    %37 = vector.extract %36[0, 0, 0] : f32 from vector<1x1x1xf32>
    %cst_13 = arith.constant 1.22070313E-4 : f32
    %38 = arith.mulf %37, %cst_13 : f32
    %39 = vector.shape_cast %29 : vector<32x256xf32> to vector<1x32x256xf32>
    %cst_14 = arith.constant dense<0.000000e+00> : vector<1xf32>
    %40 = vector.multi_reduction <add>, %39, %cst_14 [1, 2] : vector<1x32x256xf32> to vector<1xf32>
    %41 = vector.shape_cast %40 : vector<1xf32> to vector<1x1x1xf32>
    %42 = vector.extract %41[0, 0, 0] : f32 from vector<1x1x1xf32>
    %43 = arith.mulf %29, %29 : vector<32x256xf32>
    %44 = vector.shape_cast %43 : vector<32x256xf32> to vector<1x32x256xf32>
    %cst_15 = arith.constant dense<0.000000e+00> : vector<1xf32>
    %45 = vector.multi_reduction <add>, %44, %cst_15 [1, 2] : vector<1x32x256xf32> to vector<1xf32>
    %46 = vector.shape_cast %45 : vector<1xf32> to vector<1x1x1xf32>
    %47 = vector.extract %46[0, 0, 0] : f32 from vector<1x1x1xf32>
    %48 = arith.mulf %42, %42 : f32
    %cst_16 = arith.constant 1.22070313E-4 : f32
    %49 = arith.mulf %48, %cst_16 : f32
    %50 = arith.subf %47, %49 : f32
    %cst_17 = arith.constant 1.22085214E-4 : f32
    %51 = arith.mulf %50, %cst_17 : f32
    %c0_18 = arith.constant 0 : index
    %c0_19 = arith.constant 0 : index
    %52 = vector.load %arg3[%c0_18, %c0_19] : memref<480x128xf32, #tpu.memory_space<vmem>>, vector<96x32xf32>
    %cst_20 = arith.constant dense<0.000000e+00> : vector<96x512xf32>
    %53 = tpu.matmul %52, %1, %cst_20 {dimension_numbers = #tpu.dot_dimension_numbers<[1], [0], [0], [1], [0, 0, 1, 1], [], []>} : vector<96x32xf32>, vector<32x512xf32>, vector<96x512xf32> -> vector<96x512xf32>
    %c0_21 = arith.constant 0 : index
    %c0_22 = arith.constant 0 : index
    %54 = vector.load %arg4[%c0_21, %c0_22] : memref<408x512xf32, #tpu.memory_space<vmem>>, vector<96x512xf32>
    %55 = arith.addf %53, %54 : vector<96x512xf32>
    %c96 = arith.constant 96 : index
    %c0_23 = arith.constant 0 : index
    %56 = vector.load %arg3[%c96, %c0_23] : memref<480x128xf32, #tpu.memory_space<vmem>>, vector<96x32xf32>
    %cst_24 = arith.constant dense<0.000000e+00> : vector<96x512xf32>
    %57 = tpu.matmul %56, %3, %cst_24 {dimension_numbers = #tpu.dot_dimension_numbers<[1], [0], [0], [1], [0, 0, 1, 1], [], []>} : vector<96x32xf32>, vector<32x512xf32>, vector<96x512xf32> -> vector<96x512xf32>
    %c96_25 = arith.constant 96 : index
    %c0_26 = arith.constant 0 : index
    %58 = vector.load %arg4[%c96_25, %c0_26] : memref<408x512xf32, #tpu.memory_space<vmem>>, vector<96x512xf32>
    %59 = arith.addf %57, %58 : vector<96x512xf32>
    %60 = vector.extract_strided_slice %55 {offsets = [0, 0], sizes = [32, 512], strides = [1, 1]} : vector<96x512xf32> to vector<32x512xf32>
    %61 = vector.extract_strided_slice %55 {offsets = [32, 0], sizes = [32, 512], strides = [1, 1]} : vector<96x512xf32> to vector<32x512xf32>
    %62 = vector.extract_strided_slice %55 {offsets = [64, 0], sizes = [32, 512], strides = [1, 1]} : vector<96x512xf32> to vector<32x512xf32>
    %63 = vector.extract_strided_slice %59 {offsets = [0, 0], sizes = [32, 512], strides = [1, 1]} : vector<96x512xf32> to vector<32x512xf32>
    %64 = vector.extract_strided_slice %59 {offsets = [32, 0], sizes = [32, 512], strides = [1, 1]} : vector<96x512xf32> to vector<32x512xf32>
    %65 = vector.extract_strided_slice %59 {offsets = [64, 0], sizes = [32, 512], strides = [1, 1]} : vector<96x512xf32> to vector<32x512xf32>
    %c416 = arith.constant 416 : index
    %c0_27 = arith.constant 0 : index
    %66 = vector.load %arg3[%c416, %c0_27] : memref<480x128xf32, #tpu.memory_space<vmem>>, vector<32x32xf32>
    %c448 = arith.constant 448 : index
    %c0_28 = arith.constant 0 : index
    %67 = vector.load %arg3[%c448, %c0_28] : memref<480x128xf32, #tpu.memory_space<vmem>>, vector<32x32xf32>
    %68 = vector.extract_strided_slice %60 {offsets = [0, 0], sizes = [32, 256], strides = [1, 1]} : vector<32x512xf32> to vector<32x256xf32>
    %69 = vector.extract_strided_slice %64 {offsets = [0, 0], sizes = [32, 256], strides = [1, 1]} : vector<32x512xf32> to vector<32x256xf32>
    %cst_29 = arith.constant dense<0.000000e+00> : vector<32x32xf32>
    %70 = tpu.matmul %68, %69, %cst_29 {dimension_numbers = #tpu.dot_dimension_numbers<[1], [1], [0], [0], [0, 0, 1, 0], [], []>} : vector<32x256xf32>, vector<32x256xf32>, vector<32x32xf32> -> vector<32x32xf32>
    %cst_30 = arith.constant 5.000000e-01 : f32
    %71 = vector.broadcast %cst_30 : f32 to vector<32x32xf32>
    %72 = arith.mulf %70, %71 : vector<32x32xf32>
    %73 = arith.addf %72, %66 : vector<32x32xf32>
    %cst_31 = arith.constant dense<0xFF800000> : vector<32xf32>
    %74 = vector.multi_reduction <maximumf>, %73, %cst_31 [1] : vector<32x32xf32> to vector<32xf32>
    %75 = vector.shape_cast %74 : vector<32xf32> to vector<32x1xf32>
    %76 = vector.broadcast %75 : vector<32x1xf32> to vector<32x32xf32>
    %77 = arith.subf %73, %76 : vector<32x32xf32>
    %78 = math.exp %77 : vector<32x32xf32>
    %cst_32 = arith.constant dense<0.000000e+00> : vector<32xf32>
    %79 = vector.multi_reduction <add>, %78, %cst_32 [1] : vector<32x32xf32> to vector<32xf32>
    %80 = vector.shape_cast %79 : vector<32xf32> to vector<32x1xf32>
    %81 = tpu.reciprocal %80 {approx = true} : vector<32x1xf32> -> vector<32x1xf32>
    %82 = arith.mulf %80, %81 : vector<32x1xf32>
    %cst_33 = arith.constant 2.000000e+00 : f32
    %83 = vector.broadcast %cst_33 : f32 to vector<32x1xf32>
    %84 = arith.subf %83, %82 : vector<32x1xf32>
    %85 = arith.mulf %81, %84 : vector<32x1xf32>
    %86 = vector.broadcast %85 : vector<32x1xf32> to vector<32x32xf32>
    %87 = arith.mulf %78, %86 : vector<32x32xf32>
    %88 = vector.extract_strided_slice %65 {offsets = [0, 0], sizes = [32, 256], strides = [1, 1]} : vector<32x512xf32> to vector<32x256xf32>
    %cst_34 = arith.constant dense<0.000000e+00> : vector<32x256xf32>
    %89 = tpu.matmul %87, %88, %cst_34 {dimension_numbers = #tpu.dot_dimension_numbers<[1], [0], [0], [1], [0, 0, 1, 1], [], []>} : vector<32x32xf32>, vector<32x256xf32>, vector<32x256xf32> -> vector<32x256xf32>
    %90 = vector.extract_strided_slice %60 {offsets = [0, 256], sizes = [32, 256], strides = [1, 1]} : vector<32x512xf32> to vector<32x256xf32>
    %91 = vector.extract_strided_slice %64 {offsets = [0, 256], sizes = [32, 256], strides = [1, 1]} : vector<32x512xf32> to vector<32x256xf32>
    %cst_35 = arith.constant dense<0.000000e+00> : vector<32x32xf32>
    %92 = tpu.matmul %90, %91, %cst_35 {dimension_numbers = #tpu.dot_dimension_numbers<[1], [1], [0], [0], [0, 0, 1, 0], [], []>} : vector<32x256xf32>, vector<32x256xf32>, vector<32x32xf32> -> vector<32x32xf32>
    %cst_36 = arith.constant 5.000000e-01 : f32
    %93 = vector.broadcast %cst_36 : f32 to vector<32x32xf32>
    %94 = arith.mulf %92, %93 : vector<32x32xf32>
    %95 = arith.addf %94, %66 : vector<32x32xf32>
    %cst_37 = arith.constant dense<0xFF800000> : vector<32xf32>
    %96 = vector.multi_reduction <maximumf>, %95, %cst_37 [1] : vector<32x32xf32> to vector<32xf32>
    %97 = vector.shape_cast %96 : vector<32xf32> to vector<32x1xf32>
    %98 = vector.broadcast %97 : vector<32x1xf32> to vector<32x32xf32>
    %99 = arith.subf %95, %98 : vector<32x32xf32>
    %100 = math.exp %99 : vector<32x32xf32>
    %cst_38 = arith.constant dense<0.000000e+00> : vector<32xf32>
    %101 = vector.multi_reduction <add>, %100, %cst_38 [1] : vector<32x32xf32> to vector<32xf32>
    %102 = vector.shape_cast %101 : vector<32xf32> to vector<32x1xf32>
    %103 = tpu.reciprocal %102 {approx = true} : vector<32x1xf32> -> vector<32x1xf32>
    %104 = arith.mulf %102, %103 : vector<32x1xf32>
    %cst_39 = arith.constant 2.000000e+00 : f32
    %105 = vector.broadcast %cst_39 : f32 to vector<32x1xf32>
    %106 = arith.subf %105, %104 : vector<32x1xf32>
    %107 = arith.mulf %103, %106 : vector<32x1xf32>
    %108 = vector.broadcast %107 : vector<32x1xf32> to vector<32x32xf32>
    %109 = arith.mulf %100, %108 : vector<32x32xf32>
    %110 = vector.extract_strided_slice %65 {offsets = [0, 256], sizes = [32, 256], strides = [1, 1]} : vector<32x512xf32> to vector<32x256xf32>
    %cst_40 = arith.constant dense<0.000000e+00> : vector<32x256xf32>
    %111 = tpu.matmul %109, %110, %cst_40 {dimension_numbers = #tpu.dot_dimension_numbers<[1], [0], [0], [1], [0, 0, 1, 1], [], []>} : vector<32x32xf32>, vector<32x256xf32>, vector<32x256xf32> -> vector<32x256xf32>
    %112 = tpu.concatenate %89, %111 in 1 : vector<32x256xf32>, vector<32x256xf32> -> vector<32x512xf32>
    %113 = vector.extract_strided_slice %63 {offsets = [0, 0], sizes = [32, 256], strides = [1, 1]} : vector<32x512xf32> to vector<32x256xf32>
    %114 = vector.extract_strided_slice %61 {offsets = [0, 0], sizes = [32, 256], strides = [1, 1]} : vector<32x512xf32> to vector<32x256xf32>
    %cst_41 = arith.constant dense<0.000000e+00> : vector<32x32xf32>
    %115 = tpu.matmul %113, %114, %cst_41 {dimension_numbers = #tpu.dot_dimension_numbers<[1], [1], [0], [0], [0, 0, 1, 0], [], []>} : vector<32x256xf32>, vector<32x256xf32>, vector<32x32xf32> -> vector<32x32xf32>
    %cst_42 = arith.constant 5.000000e-01 : f32
    %116 = vector.broadcast %cst_42 : f32 to vector<32x32xf32>
    %117 = arith.mulf %115, %116 : vector<32x32xf32>
    %118 = arith.addf %117, %67 : vector<32x32xf32>
    %cst_43 = arith.constant dense<0xFF800000> : vector<32xf32>
    %119 = vector.multi_reduction <maximumf>, %118, %cst_43 [1] : vector<32x32xf32> to vector<32xf32>
    %120 = vector.shape_cast %119 : vector<32xf32> to vector<32x1xf32>
    %121 = vector.broadcast %120 : vector<32x1xf32> to vector<32x32xf32>
    %122 = arith.subf %118, %121 : vector<32x32xf32>
    %123 = math.exp %122 : vector<32x32xf32>
    %cst_44 = arith.constant dense<0.000000e+00> : vector<32xf32>
    %124 = vector.multi_reduction <add>, %123, %cst_44 [1] : vector<32x32xf32> to vector<32xf32>
    %125 = vector.shape_cast %124 : vector<32xf32> to vector<32x1xf32>
    %126 = tpu.reciprocal %125 {approx = true} : vector<32x1xf32> -> vector<32x1xf32>
    %127 = arith.mulf %125, %126 : vector<32x1xf32>
    %cst_45 = arith.constant 2.000000e+00 : f32
    %128 = vector.broadcast %cst_45 : f32 to vector<32x1xf32>
    %129 = arith.subf %128, %127 : vector<32x1xf32>
    %130 = arith.mulf %126, %129 : vector<32x1xf32>
    %131 = vector.broadcast %130 : vector<32x1xf32> to vector<32x32xf32>
    %132 = arith.mulf %123, %131 : vector<32x32xf32>
    %133 = vector.extract_strided_slice %62 {offsets = [0, 0], sizes = [32, 256], strides = [1, 1]} : vector<32x512xf32> to vector<32x256xf32>
    %cst_46 = arith.constant dense<0.000000e+00> : vector<32x256xf32>
    %134 = tpu.matmul %132, %133, %cst_46 {dimension_numbers = #tpu.dot_dimension_numbers<[1], [0], [0], [1], [0, 0, 1, 1], [], []>} : vector<32x32xf32>, vector<32x256xf32>, vector<32x256xf32> -> vector<32x256xf32>
    %135 = vector.extract_strided_slice %63 {offsets = [0, 256], sizes = [32, 256], strides = [1, 1]} : vector<32x512xf32> to vector<32x256xf32>
    %136 = vector.extract_strided_slice %61 {offsets = [0, 256], sizes = [32, 256], strides = [1, 1]} : vector<32x512xf32> to vector<32x256xf32>
    %cst_47 = arith.constant dense<0.000000e+00> : vector<32x32xf32>
    %137 = tpu.matmul %135, %136, %cst_47 {dimension_numbers = #tpu.dot_dimension_numbers<[1], [1], [0], [0], [0, 0, 1, 0], [], []>} : vector<32x256xf32>, vector<32x256xf32>, vector<32x32xf32> -> vector<32x32xf32>
    %cst_48 = arith.constant 5.000000e-01 : f32
    %138 = vector.broadcast %cst_48 : f32 to vector<32x32xf32>
    %139 = arith.mulf %137, %138 : vector<32x32xf32>
    %140 = arith.addf %139, %67 : vector<32x32xf32>
    %cst_49 = arith.constant dense<0xFF800000> : vector<32xf32>
    %141 = vector.multi_reduction <maximumf>, %140, %cst_49 [1] : vector<32x32xf32> to vector<32xf32>
    %142 = vector.shape_cast %141 : vector<32xf32> to vector<32x1xf32>
    %143 = vector.broadcast %142 : vector<32x1xf32> to vector<32x32xf32>
    %144 = arith.subf %140, %143 : vector<32x32xf32>
    %145 = math.exp %144 : vector<32x32xf32>
    %cst_50 = arith.constant dense<0.000000e+00> : vector<32xf32>
    %146 = vector.multi_reduction <add>, %145, %cst_50 [1] : vector<32x32xf32> to vector<32xf32>
    %147 = vector.shape_cast %146 : vector<32xf32> to vector<32x1xf32>
    %148 = tpu.reciprocal %147 {approx = true} : vector<32x1xf32> -> vector<32x1xf32>
    %149 = arith.mulf %147, %148 : vector<32x1xf32>
    %cst_51 = arith.constant 2.000000e+00 : f32
    %150 = vector.broadcast %cst_51 : f32 to vector<32x1xf32>
    %151 = arith.subf %150, %149 : vector<32x1xf32>
    %152 = arith.mulf %148, %151 : vector<32x1xf32>
    %153 = vector.broadcast %152 : vector<32x1xf32> to vector<32x32xf32>
    %154 = arith.mulf %145, %153 : vector<32x32xf32>
    %155 = vector.extract_strided_slice %62 {offsets = [0, 256], sizes = [32, 256], strides = [1, 1]} : vector<32x512xf32> to vector<32x256xf32>
    %cst_52 = arith.constant dense<0.000000e+00> : vector<32x256xf32>
    %156 = tpu.matmul %154, %155, %cst_52 {dimension_numbers = #tpu.dot_dimension_numbers<[1], [0], [0], [1], [0, 0, 1, 1], [], []>} : vector<32x32xf32>, vector<32x256xf32>, vector<32x256xf32> -> vector<32x256xf32>
    %157 = tpu.concatenate %134, %156 in 1 : vector<32x256xf32>, vector<32x256xf32> -> vector<32x512xf32>
    %c192 = arith.constant 192 : index
    %c0_53 = arith.constant 0 : index
    %158 = vector.load %arg3[%c192, %c0_53] : memref<480x128xf32, #tpu.memory_space<vmem>>, vector<32x32xf32>
    %cst_54 = arith.constant dense<0.000000e+00> : vector<32x512xf32>
    %159 = tpu.matmul %158, %112, %cst_54 {dimension_numbers = #tpu.dot_dimension_numbers<[1], [0], [0], [1], [0, 0, 1, 1], [], []>} : vector<32x32xf32>, vector<32x512xf32>, vector<32x512xf32> -> vector<32x512xf32>
    %c192_55 = arith.constant 192 : index
    %c0_56 = arith.constant 0 : index
    %160 = vector.load %arg4[%c192_55, %c0_56] : memref<408x512xf32, #tpu.memory_space<vmem>>, vector<32x512xf32>
    %161 = arith.addf %159, %160 : vector<32x512xf32>
    %162 = arith.addf %1, %161 : vector<32x512xf32>
    %c224 = arith.constant 224 : index
    %c0_57 = arith.constant 0 : index
    %163 = vector.load %arg3[%c224, %c0_57] : memref<480x128xf32, #tpu.memory_space<vmem>>, vector<32x32xf32>
    %cst_58 = arith.constant dense<0.000000e+00> : vector<32x512xf32>
    %164 = tpu.matmul %163, %157, %cst_58 {dimension_numbers = #tpu.dot_dimension_numbers<[1], [0], [0], [1], [0, 0, 1, 1], [], []>} : vector<32x32xf32>, vector<32x512xf32>, vector<32x512xf32> -> vector<32x512xf32>
    %c224_59 = arith.constant 224 : index
    %c0_60 = arith.constant 0 : index
    %165 = vector.load %arg4[%c224_59, %c0_60] : memref<408x512xf32, #tpu.memory_space<vmem>>, vector<32x512xf32>
    %166 = arith.addf %164, %165 : vector<32x512xf32>
    %167 = arith.addf %3, %166 : vector<32x512xf32>
    %c256 = arith.constant 256 : index
    %c0_61 = arith.constant 0 : index
    %168 = vector.load %arg3[%c256, %c0_61] : memref<480x128xf32, #tpu.memory_space<vmem>>, vector<8x32xf32>
    %c256_62 = arith.constant 256 : index
    %c0_63 = arith.constant 0 : index
    %169 = vector.load %arg4[%c256_62, %c0_63] : memref<408x512xf32, #tpu.memory_space<vmem>>, vector<8x1xf32>
    %c264 = arith.constant 264 : index
    %c0_64 = arith.constant 0 : index
    %170 = vector.load %arg3[%c264, %c0_64] : memref<480x128xf32, #tpu.memory_space<vmem>>, vector<32x8xf32>
    %c264_65 = arith.constant 264 : index
    %c0_66 = arith.constant 0 : index
    %171 = vector.load %arg4[%c264_65, %c0_66] : memref<408x512xf32, #tpu.memory_space<vmem>>, vector<32x1xf32>
    %172 = vector.extract_strided_slice %162 {offsets = [0, 0], sizes = [32, 256], strides = [1, 1]} : vector<32x512xf32> to vector<32x256xf32>
    %cst_67 = arith.constant dense<0.000000e+00> : vector<32xf32>
    %173 = vector.multi_reduction <add>, %172, %cst_67 [1] : vector<32x256xf32> to vector<32xf32>
    %174 = vector.shape_cast %173 : vector<32xf32> to vector<32x1xf32>
    %cst_68 = arith.constant 2.560000e+02 : f32
    %175 = vector.broadcast %cst_68 : f32 to vector<32x1xf32>
    %176 = arith.divf %174, %175 : vector<32x1xf32>
    %cst_69 = arith.constant dense<0.000000e+00> : vector<8x1xf32>
    %177 = tpu.matmul %168, %176, %cst_69 {dimension_numbers = #tpu.dot_dimension_numbers<[1], [0], [0], [1], [0, 0, 1, 1], [], []>} : vector<8x32xf32>, vector<32x1xf32>, vector<8x1xf32> -> vector<8x1xf32>
    %178 = arith.addf %177, %169 : vector<8x1xf32>
    %cst_70 = arith.constant 0.000000e+00 : f32
    %179 = vector.broadcast %cst_70 : f32 to vector<8x1xf32>
    %180 = arith.maximumf %178, %179 : vector<8x1xf32>
    %cst_71 = arith.constant dense<0.000000e+00> : vector<32x1xf32>
    %181 = tpu.matmul %170, %180, %cst_71 {dimension_numbers = #tpu.dot_dimension_numbers<[1], [0], [0], [1], [0, 0, 1, 1], [], []>} : vector<32x8xf32>, vector<8x1xf32>, vector<32x1xf32> -> vector<32x1xf32>
    %182 = arith.addf %181, %171 : vector<32x1xf32>
    %183 = arith.negf %182 : vector<32x1xf32>
    %184 = math.exp %183 : vector<32x1xf32>
    %cst_72 = arith.constant 1.000000e+00 : f32
    %185 = vector.broadcast %cst_72 : f32 to vector<32x1xf32>
    %186 = arith.addf %185, %184 : vector<32x1xf32>
    %187 = arith.divf %185, %186 : vector<32x1xf32>
    %188 = vector.broadcast %187 : vector<32x1xf32> to vector<32x256xf32>
    %189 = arith.mulf %172, %188 : vector<32x256xf32>
    %190 = vector.extract_strided_slice %162 {offsets = [0, 256], sizes = [32, 256], strides = [1, 1]} : vector<32x512xf32> to vector<32x256xf32>
    %cst_73 = arith.constant dense<0.000000e+00> : vector<32xf32>
    %191 = vector.multi_reduction <add>, %190, %cst_73 [1] : vector<32x256xf32> to vector<32xf32>
    %192 = vector.shape_cast %191 : vector<32xf32> to vector<32x1xf32>
    %cst_74 = arith.constant 2.560000e+02 : f32
    %193 = vector.broadcast %cst_74 : f32 to vector<32x1xf32>
    %194 = arith.divf %192, %193 : vector<32x1xf32>
    %cst_75 = arith.constant dense<0.000000e+00> : vector<8x1xf32>
    %195 = tpu.matmul %168, %194, %cst_75 {dimension_numbers = #tpu.dot_dimension_numbers<[1], [0], [0], [1], [0, 0, 1, 1], [], []>} : vector<8x32xf32>, vector<32x1xf32>, vector<8x1xf32> -> vector<8x1xf32>
    %196 = arith.addf %195, %169 : vector<8x1xf32>
    %cst_76 = arith.constant 0.000000e+00 : f32
    %197 = vector.broadcast %cst_76 : f32 to vector<8x1xf32>
    %198 = arith.maximumf %196, %197 : vector<8x1xf32>
    %cst_77 = arith.constant dense<0.000000e+00> : vector<32x1xf32>
    %199 = tpu.matmul %170, %198, %cst_77 {dimension_numbers = #tpu.dot_dimension_numbers<[1], [0], [0], [1], [0, 0, 1, 1], [], []>} : vector<32x8xf32>, vector<8x1xf32>, vector<32x1xf32> -> vector<32x1xf32>
    %200 = arith.addf %199, %171 : vector<32x1xf32>
    %201 = arith.negf %200 : vector<32x1xf32>
    %202 = math.exp %201 : vector<32x1xf32>
    %cst_78 = arith.constant 1.000000e+00 : f32
    %203 = vector.broadcast %cst_78 : f32 to vector<32x1xf32>
    %204 = arith.addf %203, %202 : vector<32x1xf32>
    %205 = arith.divf %203, %204 : vector<32x1xf32>
    %206 = vector.broadcast %205 : vector<32x1xf32> to vector<32x256xf32>
    %207 = arith.mulf %190, %206 : vector<32x256xf32>
    %208 = tpu.concatenate %189, %207 in 1 : vector<32x256xf32>, vector<32x256xf32> -> vector<32x512xf32>
    %c296 = arith.constant 296 : index
    %c0_79 = arith.constant 0 : index
    %209 = vector.load %arg3[%c296, %c0_79] : memref<480x128xf32, #tpu.memory_space<vmem>>, vector<8x32xf32>
    %c296_80 = arith.constant 296 : index
    %c0_81 = arith.constant 0 : index
    %210 = vector.load %arg4[%c296_80, %c0_81] : memref<408x512xf32, #tpu.memory_space<vmem>>, vector<8x1xf32>
    %c304 = arith.constant 304 : index
    %c0_82 = arith.constant 0 : index
    %211 = vector.load %arg3[%c304, %c0_82] : memref<480x128xf32, #tpu.memory_space<vmem>>, vector<32x8xf32>
    %c304_83 = arith.constant 304 : index
    %c0_84 = arith.constant 0 : index
    %212 = vector.load %arg4[%c304_83, %c0_84] : memref<408x512xf32, #tpu.memory_space<vmem>>, vector<32x1xf32>
    %213 = vector.extract_strided_slice %167 {offsets = [0, 0], sizes = [32, 256], strides = [1, 1]} : vector<32x512xf32> to vector<32x256xf32>
    %cst_85 = arith.constant dense<0.000000e+00> : vector<32xf32>
    %214 = vector.multi_reduction <add>, %213, %cst_85 [1] : vector<32x256xf32> to vector<32xf32>
    %215 = vector.shape_cast %214 : vector<32xf32> to vector<32x1xf32>
    %cst_86 = arith.constant 2.560000e+02 : f32
    %216 = vector.broadcast %cst_86 : f32 to vector<32x1xf32>
    %217 = arith.divf %215, %216 : vector<32x1xf32>
    %cst_87 = arith.constant dense<0.000000e+00> : vector<8x1xf32>
    %218 = tpu.matmul %209, %217, %cst_87 {dimension_numbers = #tpu.dot_dimension_numbers<[1], [0], [0], [1], [0, 0, 1, 1], [], []>} : vector<8x32xf32>, vector<32x1xf32>, vector<8x1xf32> -> vector<8x1xf32>
    %219 = arith.addf %218, %210 : vector<8x1xf32>
    %cst_88 = arith.constant 0.000000e+00 : f32
    %220 = vector.broadcast %cst_88 : f32 to vector<8x1xf32>
    %221 = arith.maximumf %219, %220 : vector<8x1xf32>
    %cst_89 = arith.constant dense<0.000000e+00> : vector<32x1xf32>
    %222 = tpu.matmul %211, %221, %cst_89 {dimension_numbers = #tpu.dot_dimension_numbers<[1], [0], [0], [1], [0, 0, 1, 1], [], []>} : vector<32x8xf32>, vector<8x1xf32>, vector<32x1xf32> -> vector<32x1xf32>
    %223 = arith.addf %222, %212 : vector<32x1xf32>
    %224 = arith.negf %223 : vector<32x1xf32>
    %225 = math.exp %224 : vector<32x1xf32>
    %cst_90 = arith.constant 1.000000e+00 : f32
    %226 = vector.broadcast %cst_90 : f32 to vector<32x1xf32>
    %227 = arith.addf %226, %225 : vector<32x1xf32>
    %228 = arith.divf %226, %227 : vector<32x1xf32>
    %229 = vector.broadcast %228 : vector<32x1xf32> to vector<32x256xf32>
    %230 = arith.mulf %213, %229 : vector<32x256xf32>
    %231 = vector.extract_strided_slice %167 {offsets = [0, 256], sizes = [32, 256], strides = [1, 1]} : vector<32x512xf32> to vector<32x256xf32>
    %cst_91 = arith.constant dense<0.000000e+00> : vector<32xf32>
    %232 = vector.multi_reduction <add>, %231, %cst_91 [1] : vector<32x256xf32> to vector<32xf32>
    %233 = vector.shape_cast %232 : vector<32xf32> to vector<32x1xf32>
    %cst_92 = arith.constant 2.560000e+02 : f32
    %234 = vector.broadcast %cst_92 : f32 to vector<32x1xf32>
    %235 = arith.divf %233, %234 : vector<32x1xf32>
    %cst_93 = arith.constant dense<0.000000e+00> : vector<8x1xf32>
    %236 = tpu.matmul %209, %235, %cst_93 {dimension_numbers = #tpu.dot_dimension_numbers<[1], [0], [0], [1], [0, 0, 1, 1], [], []>} : vector<8x32xf32>, vector<32x1xf32>, vector<8x1xf32> -> vector<8x1xf32>
    %237 = arith.addf %236, %210 : vector<8x1xf32>
    %cst_94 = arith.constant 0.000000e+00 : f32
    %238 = vector.broadcast %cst_94 : f32 to vector<8x1xf32>
    %239 = arith.maximumf %237, %238 : vector<8x1xf32>
    %cst_95 = arith.constant dense<0.000000e+00> : vector<32x1xf32>
    %240 = tpu.matmul %211, %239, %cst_95 {dimension_numbers = #tpu.dot_dimension_numbers<[1], [0], [0], [1], [0, 0, 1, 1], [], []>} : vector<32x8xf32>, vector<8x1xf32>, vector<32x1xf32> -> vector<32x1xf32>
    %241 = arith.addf %240, %212 : vector<32x1xf32>
    %242 = arith.negf %241 : vector<32x1xf32>
    %243 = math.exp %242 : vector<32x1xf32>
    %cst_96 = arith.constant 1.000000e+00 : f32
    %244 = vector.broadcast %cst_96 : f32 to vector<32x1xf32>
    %245 = arith.addf %244, %243 : vector<32x1xf32>
    %246 = arith.divf %244, %245 : vector<32x1xf32>
    %247 = vector.broadcast %246 : vector<32x1xf32> to vector<32x256xf32>
    %248 = arith.mulf %231, %247 : vector<32x256xf32>
    %249 = tpu.concatenate %230, %248 in 1 : vector<32x256xf32>, vector<32x256xf32> -> vector<32x512xf32>
    %250 = arith.mulf %208, %208 : vector<32x512xf32>
    %cst_97 = arith.constant dense<0.000000e+00> : vector<512xf32>
    %251 = vector.multi_reduction <add>, %250, %cst_97 [0] : vector<32x512xf32> to vector<512xf32>
    %252 = vector.shape_cast %251 : vector<512xf32> to vector<1x512xf32>
    %253 = math.sqrt %252 : vector<1x512xf32>
    %cst_98 = arith.constant 9.99999997E-7 : f32
    %254 = vector.broadcast %cst_98 : f32 to vector<1x512xf32>
    %255 = arith.addf %253, %254 : vector<1x512xf32>
    %256 = tpu.reciprocal %255 {approx = true} : vector<1x512xf32> -> vector<1x512xf32>
    %257 = arith.mulf %255, %256 : vector<1x512xf32>
    %cst_99 = arith.constant 2.000000e+00 : f32
    %258 = vector.broadcast %cst_99 : f32 to vector<1x512xf32>
    %259 = arith.subf %258, %257 : vector<1x512xf32>
    %260 = arith.mulf %256, %259 : vector<1x512xf32>
    %261 = vector.broadcast %260 : vector<1x512xf32> to vector<32x512xf32>
    %262 = arith.mulf %208, %261 : vector<32x512xf32>
    %263 = arith.mulf %249, %249 : vector<32x512xf32>
    %cst_100 = arith.constant dense<0.000000e+00> : vector<512xf32>
    %264 = vector.multi_reduction <add>, %263, %cst_100 [0] : vector<32x512xf32> to vector<512xf32>
    %265 = vector.shape_cast %264 : vector<512xf32> to vector<1x512xf32>
    %266 = math.sqrt %265 : vector<1x512xf32>
    %cst_101 = arith.constant 9.99999997E-7 : f32
    %267 = vector.broadcast %cst_101 : f32 to vector<1x512xf32>
    %268 = arith.addf %266, %267 : vector<1x512xf32>
    %269 = tpu.reciprocal %268 {approx = true} : vector<1x512xf32> -> vector<1x512xf32>
    %270 = arith.mulf %268, %269 : vector<1x512xf32>
    %cst_102 = arith.constant 2.000000e+00 : f32
    %271 = vector.broadcast %cst_102 : f32 to vector<1x512xf32>
    %272 = arith.subf %271, %270 : vector<1x512xf32>
    %273 = arith.mulf %269, %272 : vector<1x512xf32>
    %274 = vector.broadcast %273 : vector<1x512xf32> to vector<32x512xf32>
    %275 = arith.mulf %249, %274 : vector<32x512xf32>
    %c0_103 = arith.constant 0 : index
    %c0_104 = arith.constant 0 : index
    %276 = vector.load %arg6[%c0_103, %c0_104] : memref<64x512xf32, #tpu.memory_space<vmem>>, vector<32x512xf32>
    tpu.vector_store %arg6[%c0_103, %c0_104], %262 {strides = array<i32>} : memref<64x512xf32, #tpu.memory_space<vmem>>, vector<32x512xf32>,
    %c32 = arith.constant 32 : index
    %c0_105 = arith.constant 0 : index
    %277 = vector.load %arg6[%c32, %c0_105] : memref<64x512xf32, #tpu.memory_space<vmem>>, vector<32x512xf32>
    tpu.vector_store %arg6[%c32, %c0_105], %275 {strides = array<i32>} : memref<64x512xf32, #tpu.memory_space<vmem>>, vector<32x512xf32>,
    %c344 = arith.constant 344 : index
    %c0_106 = arith.constant 0 : index
    %278 = vector.load %arg3[%c344, %c0_106] : memref<480x128xf32, #tpu.memory_space<vmem>>, vector<8x8xf32>
    %279 = vector.extract_strided_slice %278 {offsets = [0, 0], sizes = [8, 1], strides = [1, 1]} : vector<8x8xf32> to vector<8x1xf32>
    %280 = vector.broadcast %14 : f32 to vector<8x1xf32>
    %281 = arith.mulf %279, %280 : vector<8x1xf32>
    %282 = vector.extract_strided_slice %278 {offsets = [0, 1], sizes = [8, 1], strides = [1, 1]} : vector<8x8xf32> to vector<8x1xf32>
    %283 = vector.broadcast %27 : f32 to vector<8x1xf32>
    %284 = arith.mulf %282, %283 : vector<8x1xf32>
    %285 = arith.addf %281, %284 : vector<8x1xf32>
    %286 = vector.shape_cast %285 : vector<8x1xf32> to vector<8x1xf32>
    %287 = vector.broadcast %286 : vector<8x1xf32> to vector<8x256xf32>
    %288 = vector.extract_strided_slice %278 {offsets = [0, 0], sizes = [8, 1], strides = [1, 1]} : vector<8x8xf32> to vector<8x1xf32>
    %289 = vector.broadcast %38 : f32 to vector<8x1xf32>
    %290 = arith.mulf %288, %289 : vector<8x1xf32>
    %291 = vector.extract_strided_slice %278 {offsets = [0, 1], sizes = [8, 1], strides = [1, 1]} : vector<8x8xf32> to vector<8x1xf32>
    %292 = vector.broadcast %51 : f32 to vector<8x1xf32>
    %293 = arith.mulf %291, %292 : vector<8x1xf32>
    %294 = arith.addf %290, %293 : vector<8x1xf32>
    %295 = vector.shape_cast %294 : vector<8x1xf32> to vector<8x1xf32>
    %296 = vector.broadcast %295 : vector<8x1xf32> to vector<8x256xf32>
    %297 = tpu.concatenate %287, %296 in 1 : vector<8x256xf32>, vector<8x256xf32> -> vector<8x512xf32>
    %c336 = arith.constant 336 : index
    %c0_107 = arith.constant 0 : index
    %298 = vector.load %arg3[%c336, %c0_107] : memref<480x128xf32, #tpu.memory_space<vmem>>, vector<8x64xf32>
    %c0_108 = arith.constant 0 : index
    %c0_109 = arith.constant 0 : index
    %299 = vector.load %arg6[%c0_108, %c0_109] : memref<64x512xf32, #tpu.memory_space<vmem>>, vector<64x512xf32>
    %cst_110 = arith.constant dense<0.000000e+00> : vector<8x512xf32>
    %300 = tpu.matmul %298, %299, %cst_110 {dimension_numbers = #tpu.dot_dimension_numbers<[1], [0], [0], [1], [0, 0, 1, 1], [], []>} : vector<8x64xf32>, vector<64x512xf32>, vector<8x512xf32> -> vector<8x512xf32>
    %301 = arith.addf %300, %297 : vector<8x512xf32>
    %c336_111 = arith.constant 336 : index
    %c0_112 = arith.constant 0 : index
    %302 = vector.load %arg4[%c336_111, %c0_112] : memref<408x512xf32, #tpu.memory_space<vmem>>, vector<8x512xf32>
    %303 = arith.addf %301, %302 : vector<8x512xf32>
    %304 = arith.negf %303 : vector<8x512xf32>
    %305 = math.exp %304 : vector<8x512xf32>
    %cst_113 = arith.constant 1.000000e+00 : f32
    %306 = vector.broadcast %cst_113 : f32 to vector<8x512xf32>
    %307 = arith.addf %306, %305 : vector<8x512xf32>
    %308 = arith.divf %306, %307 : vector<8x512xf32>
    %309 = vector.extract_strided_slice %308 {offsets = [0, 0], sizes = [1, 512], strides = [1, 1]} : vector<8x512xf32> to vector<1x512xf32>
    %310 = vector.broadcast %309 : vector<1x512xf32> to vector<32x512xf32>
    %311 = arith.mulf %262, %310 : vector<32x512xf32>
    %c0_114 = arith.constant 0 : index
    %c0_115 = arith.constant 0 : index
    %312 = vector.load %arg6[%c0_114, %c0_115] : memref<64x512xf32, #tpu.memory_space<vmem>>, vector<32x512xf32>
    tpu.vector_store %arg6[%c0_114, %c0_115], %311 {strides = array<i32>} : memref<64x512xf32, #tpu.memory_space<vmem>>, vector<32x512xf32>,
    %313 = vector.extract_strided_slice %308 {offsets = [1, 0], sizes = [1, 512], strides = [1, 1]} : vector<8x512xf32> to vector<1x512xf32>
    %314 = vector.broadcast %313 : vector<1x512xf32> to vector<32x512xf32>
    %315 = arith.mulf %275, %314 : vector<32x512xf32>
    %c32_116 = arith.constant 32 : index
    %c0_117 = arith.constant 0 : index
    %316 = vector.load %arg6[%c32_116, %c0_117] : memref<64x512xf32, #tpu.memory_space<vmem>>, vector<32x512xf32>
    tpu.vector_store %arg6[%c32_116, %c0_117], %315 {strides = array<i32>} : memref<64x512xf32, #tpu.memory_space<vmem>>, vector<32x512xf32>,
    %c352 = arith.constant 352 : index
    %c0_118 = arith.constant 0 : index
    %317 = vector.load %arg3[%c352, %c0_118] : memref<480x128xf32, #tpu.memory_space<vmem>>, vector<64x64xf32>
    %c0_119 = arith.constant 0 : index
    %c0_120 = arith.constant 0 : index
    %318 = vector.load %arg6[%c0_119, %c0_120] : memref<64x512xf32, #tpu.memory_space<vmem>>, vector<64x512xf32>
    %cst_121 = arith.constant dense<0.000000e+00> : vector<64x512xf32>
    %319 = tpu.matmul %317, %318, %cst_121 {dimension_numbers = #tpu.dot_dimension_numbers<[1], [0], [0], [1], [0, 0, 1, 1], [], []>} : vector<64x64xf32>, vector<64x512xf32>, vector<64x512xf32> -> vector<64x512xf32>
    %c344_122 = arith.constant 344 : index
    %c0_123 = arith.constant 0 : index
    %320 = vector.load %arg4[%c344_122, %c0_123] : memref<408x512xf32, #tpu.memory_space<vmem>>, vector<64x512xf32>
    %321 = arith.addf %319, %320 : vector<64x512xf32>
    %c0_124 = arith.constant 0 : index
    %c0_125 = arith.constant 0 : index
    %c0_126 = arith.constant 0 : index
    %322 = vector.load %arg5[%c0_124, %c0_125, %c0_126] : memref<1x64x512xf32, #tpu.memory_space<vmem>>, vector<1x64x512xf32>
    %323 = vector.shape_cast %322 : vector<1x64x512xf32> to vector<64x512xf32>
    %324 = vector.shape_cast %321 : vector<64x512xf32> to vector<1x64x512xf32>
    tpu.vector_store %arg5[%c0_124, %c0_125, %c0_126], %324 {strides = array<i32>} : memref<1x64x512xf32, #tpu.memory_space<vmem>>, vector<1x64x512xf32>,
    return
  }
  func.func @transform_0(%arg0: i32) -> (i32, i32, i32) {
    %c0_i32 = arith.constant 0 : i32
    %c0_i32_0 = arith.constant 0 : i32
    %c0_i32_1 = arith.constant 0 : i32
    return %arg0, %c0_i32, %c0_i32_0 : i32, i32, i32
  }
  func.func @transform_1(%arg0: i32) -> (i32, i32, i32) {
    %c0_i32 = arith.constant 0 : i32
    %c0_i32_0 = arith.constant 0 : i32
    %c0_i32_1 = arith.constant 0 : i32
    return %arg0, %c0_i32, %c0_i32_0 : i32, i32, i32
  }
  func.func @transform_2(%arg0: i32) -> (i32, i32) {
    %c0_i32 = arith.constant 0 : i32
    %c0_i32_0 = arith.constant 0 : i32
    %c0_i32_1 = arith.constant 0 : i32
    return %c0_i32, %c0_i32_0 : i32, i32
  }
  func.func @transform_3(%arg0: i32) -> (i32, i32) {
    %c0_i32 = arith.constant 0 : i32
    %c0_i32_0 = arith.constant 0 : i32
    %c0_i32_1 = arith.constant 0 : i32
    return %c0_i32, %c0_i32_0 : i32, i32
  }
  func.func @transform_4(%arg0: i32) -> (i32, i32, i32) {
    %c0_i32 = arith.constant 0 : i32
    %c0_i32_0 = arith.constant 0 : i32
    %c0_i32_1 = arith.constant 0 : i32
    return %arg0, %c0_i32, %c0_i32_0 : i32, i32, i32
  }
}

</mosaic_0001>

<bundles_post_ra>
// kernel: tpu_custom_call.1
= control target key start
LH: loop header
LB: loop body
LE: loop exit
PB: predicated region body
PF: predicated region fallthrough
CT: control target
= control target key end

     0   :  { %s7447_s0 = inlined_call_operand.hbm [shape: f32[2,32,512], index: 0, kind: input, shape index: {}]   ;;  %s7448_s1 = inlined_call_operand.hbm [shape: f32[2,32,512], index: 1, kind: input, shape index: {}]   ;;  %s7449_s2 = inlined_call_operand.hbm [shape: f32[480,128], index: 2, kind: input, shape index: {}]   ;;  %s7450_s3 = inlined_call_operand.hbm [shape: f32[408,512], index: 3, kind: input, shape index: {}]   ;;  %s7451_s4 = inlined_call_operand.hbm [shape: f32[2,64,512], index: 4, kind: output, shape index: {}]  }
   0x1   :  { %7506 = sst [smem:[#allocation46_spill]] %s7447_s0 }
   0x2   :  { %9 = vsyncpa [#allocation4], 0 }
   0x3   :  { %11 = vsyncpa [#allocation4 + $0x1], 0 }
   0x4   :  { %12 = vsyncpa [#allocation7], 0 }
   0x5   :  { %14 = vsyncpa [#allocation7 + $0x1], 0 }
   0x6   :  { %15 = vsyncpa [#allocation10], 0 }
   0x7   :  { %16 = vsyncpa [#allocation5], 0 }
   0x8   :  { %18 = vsyncpa [#allocation5 + $0x1], 0  ;;  %s5772_s15 = smov 0   ;;  %s5774_s16 = smov 0  }
   0x9   :  { %s5776_s17 = smov 0   ;;  %s5778_s18 = smov 0  }
   0xa LB: > { %s5793_s19 = sadd.s32 4294967295, %s5729_s18   ;;  %s4719_s20 = sadd.s32 4294967294, %s5729_s18   ;;  %s5729_s18 = sphi %s5778_s18, %s7654_s18   ;;  %s5725_s17 = sphi %s5776_s17, %s7653_s17   ;;  %s5721_s16 = sphi %s5774_s16, %s7652_s16   ;;  %s5717_s15 = sphi %s5772_s15, %s7651_s15  }
   0xb   : > { %p44_p0 = scmp.ne.s32.totalorder %s5721_s16, %s5717_s15  ;;  %p7452_p1 = scmp.eq.s32.totalorder %s5793_s19, 0 }
   0xc   : > { %p142_p3 = scmp.eq.s32.totalorder %s4719_s20, 1  ;;  %p4720_p5 = scmp.ge.s32.totalorder %s5729_s18, 1 }
   0xd   : > { %p5802_p4 = por %p7452_p1, %p44_p0  ;;  %p149_p7 = scmp.lt.s32.totalorder %s5729_s18, 3 }
   0xe   : > { %p5807_p6 = por %p142_p3, %p44_p0  ;;  %s5731_s24 = smov [#allocation8]  }
   0xf   : > { %s7507_s21 = scalar_select %p5802_p4, 1, 0 }
  0x10   : > { %s7508_s22 = scalar_select %p5807_p6, 1, 0 }
  0x11   : > { %p5812_p8 = pnand %p4720_p5, %p149_p7  ;;  %s161_s25 = sshll.u32 %s5731_s24, 4  ;;  %s5816_s25 = int_to_ptr.vmem [resolvable:$true] %s161_s25 }
  0x12   : > { %s5732_s27 = smov [#allocation9]   ;;  %s5535_s5 = scalar_lea.hbm %s7449_s2, 7680 }
  0x13   : > { %p5256_p9 = pneg %p5812_p8  ;;  %s174_s28 = sshll.u32 %s5732_s27, 4  ;;  %s5827_s28 = int_to_ptr.vmem [resolvable:$true] %s174_s28 }
  0x14   : > { %p5536_p12 = scmp.ne.s32.totalorder %s7449_s2, %s5535_s5  ;;  %p5542_p5 = scmp.lt.u32.totalorder %s5535_s5, %s7449_s2 }
  0x15   : > { %p5823_p11 = pnand %p5256_p9, %p7452_p1 }
  0x17   : > { %p5537_p13 = pneg %p5823_p11 }
  0x19   : > { %p5538_p0 = pnand %p5537_p13, %p5536_p12 }
  0x1b   : > { %p5539_p3 = pneg %p5538_p0 }
  0x1d   : > { %p5544_p7 = pnand %p5542_p5, %p5539_p3 }
  0x1f   : > { %5547 = shalt.err (!%p5544_p7)
}
  0x20   : > { %s5548_s10 = scalar_lea.vmem %s5816_s25, 7680  ;;  %p5556_p2 = scmp.lt.s32.totalorder %s5816_s25, %s5816_s25 }
  0x21   : > { %p5549_p9 = scmp.ne.s32.totalorder %s5816_s25, %s5548_s10  ;;  %p5557_p12 = scmp.lt.s32.totalorder %s5548_s10, %s5548_s10 }
  0x23   : > { %p5551_p10 = pnand %p5549_p9, %p5537_p13  ;;  %p5558_p0 = por %p5557_p12, %p5556_p2 }
  0x25   : > { %p5552_p1 = pneg %p5551_p10 }
  0x27   : > { %p5559_p6 = pnand %p5558_p0, %p5552_p1 }
  0x29   : > { %5562 = shalt.err (!%p5559_p6)
}
  0x2a   : > { %s5733_s11 = smov 128   ;;  %s5734_s12 = smov 8  }
  0x2b   : > { %5259 = dma.hbm_to_vmem [thread:$0]  (!%p5823_p11), %s7449_s2, 7680, %s5816_s25, [#allocation7], %s5733_s11, %s5733_s11, %s5734_s12  }
  0x2c   : > { %s5563_s27 = scalar_lea.hbm %s7450_s3, 26112 }
  0x2d   : > { %p5564_p2 = scmp.ne.s32.totalorder %s7450_s3, %s5563_s27  ;;  %p5570_p10 = scmp.lt.u32.totalorder %s5563_s27, %s7450_s3 }
  0x2f   : > { %p5566_p1 = pnand %p5564_p2, %p5537_p13 }
  0x31   : > { %p5567_p6 = pneg %p5566_p1 }
  0x33   : > { %p5572_p3 = pnand %p5570_p10, %p5567_p6 }
  0x35   : > { %5575 = shalt.err (!%p5572_p3)
}
  0x36   : > { %s5576_s25 = scalar_lea.vmem %s5827_s28, 26112  ;;  %p5584_p12 = scmp.lt.s32.totalorder %s5827_s28, %s5827_s28 }
  0x37   : > { %p5577_p5 = scmp.ne.s32.totalorder %s5827_s28, %s5576_s25  ;;  %p5585_p0 = scmp.lt.s32.totalorder %s5576_s25, %s5576_s25 }
  0x39   : > { %p5579_p7 = pnand %p5577_p5, %p5537_p13  ;;  %p5586_p2 = por %p5585_p0, %p5584_p12 }
  0x3b   : > { %p5580_p9 = pneg %p5579_p7 }
  0x3d   : > { %p5587_p1 = pnand %p5586_p2, %p5580_p9 }
  0x3f   : > { %5590 = shalt.err (!%p5587_p1)
}
  0x40   : > { %s7453_s7 = smov 512   ;;  %s7455_s8 = smov 32  }
  0x41   : > { %5262 = dma.hbm_to_vmem [thread:$0]  (!%p5823_p11), %s7450_s3, 26112, %s5827_s28, [#allocation10], %s7453_s7, %s7453_s7, %s7455_s8  }
  0x42   : > { %s5885_s11 = sadd.s32 1, %s5729_s18   ;;  %s31_s13 = sadd.s32 1, %s5725_s17 }
  0x43   : > { %s28_s12 = ssub.s32 %s5729_s18, %s5885_s11  ;;  %p38_p6 = scmp.ne.s32.totalorder %s5725_s17, %s5721_s16 }
  0x44   : > { %p29_p13 = scmp.eq.s32.totalorder %s28_s12, 0  ;;  %p39_p10 = scmp.eq.s32.totalorder %s5729_s18, 0 }
  0x45   : > { %p7511_p5 = scmp.eq.s32.totalorder %s5793_s19, 1  ;;  %p5276_p9 = scmp.lt.s32.totalorder %s5729_s18, 2 }
  0x46   : > { %s5894_s14 = scalar_select %p29_p13, %s5725_s17, %s31_s13  }
  0x47   : > { %p40_p3 = por %p39_p10, %p38_p6  ;;  %p5898_p7 = por %p7511_p5, %p38_p6 }
  0x48   : > { %s188_s20 = sand.u32 1, %s5725_s17   ;;  %s4895_s28 = sshll.u32 %s5729_s18, 11 }
  0x49   : > { %s7512_s26 = scalar_select %p5898_p7, 1, 0 }
  0x4a   : > { %s4724_s24 = sshll.u32 %s188_s20, 7  ;;  %s7513_s0 = sld [smem:[#allocation46_spill]] }
  0x4b   : > { %s192_s5 = scalar_lea.vmem [#allocation3], %s4724_s24  ;;  %p5912_p11 = pnand %p5276_p9, %p40_p3 }
  0x4c   : > { %s199_s6 = sshll.u32 %s192_s5, 4  ;;  %s5919_s12 = scalar_lea.hbm %s7448_s1, %s4895_s28  ;;  %s5910_s6 = int_to_ptr.vmem [resolvable:$true] %s199_s6 }
  0x4d   : > { %s213_s13 = scalar_lea.vmem [#allocation6], %s4724_s24  ;;  %s5923_s29 = scalar_lea.sflag [#allocation4], %s188_s20 }
  0x4e   : > { %s5921_s27 = sshll.u32 %s213_s13, 4  ;;  %p5593_p0 = pneg %p5912_p11  ;;  %s5955_s27 = int_to_ptr.vmem [resolvable:$true] %s5921_s27 }
  0x50   : > { %s5908_s30 = scalar_lea.hbm %s7513_s0, %s4895_s28  ;;  %s5596_s9 = scalar_lea.hbm %s7513_s0, 4096 }
  0x51   : > { %s5591_s5 = scalar_lea.hbm %s5908_s30, 2048  ;;  %p5597_p13 = scmp.lt.u32.totalorder %s5908_s30, %s7513_s0 }
  0x52   : > { %p5592_p12 = scmp.ne.s32.totalorder %s5908_s30, %s5591_s5  ;;  %p5598_p6 = scmp.lt.u32.totalorder %s5596_s9, %s5591_s5 }
  0x53   : > { %p5600_p3 = scmp.lt.u32.totalorder %s5591_s5, %s5908_s30 }
  0x54   : > { %p5594_p2 = pnand %p5593_p0, %p5592_p12  ;;  %p5599_p10 = por %p5598_p6, %p5597_p13 }
  0x56   : > { %p5595_p1 = pneg %p5594_p2  ;;  %p5601_p5 = por %p5600_p3, %p5599_p10 }
  0x58   : > { %p5602_p9 = pnand %p5601_p5, %p5595_p1 }
  0x5a   : > { %5605 = shalt.err (!%p5602_p9)
}
  0x5b   : > { %s5606_s20 = scalar_lea.vmem %s5910_s6, 2048  ;;  %s5737_s7 = smov [#allocation3]  }
  0x5c   : > { %p5607_p12 = scmp.ne.s32.totalorder %s5910_s6, %s5606_s20  ;;  %s5611_s8 = sshll.u32 %s5737_s7, 4  ;;  %s5612_s8 = int_to_ptr.vmem [resolvable:$false] %s5611_s8 }
  0x5d   : > { %s5613_s24 = scalar_lea.vmem %s5612_s8, 4096  ;;  %p5614_p4 = scmp.lt.s32.totalorder %s5910_s6, %s5612_s8 }
  0x5e   : > { %p5609_p2 = pnand %p5607_p12, %p5593_p0  ;;  %p5615_p13 = scmp.lt.s32.totalorder %s5613_s24, %s5606_s20 }
  0x60   : > { %p5610_p7 = pneg %p5609_p2  ;;  %p5616_p6 = por %p5615_p13, %p5614_p4 }
  0x62   : > { %p5617_p10 = pnand %p5616_p6, %p5610_p7 }
  0x64   : > { %5620 = shalt.err (!%p5617_p10)
}
  0x65   : > { %s7515_s13 = smov 32   ;;  %s7516_s5 = smov 512  }
  0x66   : > { %5266 = dma.hbm_to_vmem [thread:$0]  (!%p5912_p11), %s5908_s30, 2048, %s5910_s6, %s5923_s29, %s7516_s5, %s7516_s5, %s7515_s13  }
  0x67   : > { %s209_s9 = sand.u32 1, %s5729_s18   ;;  %s5621_s28 = scalar_lea.hbm %s5919_s12, 2048 }
  0x68   : > { %s5958_s10 = scalar_lea.sflag [#allocation7], %s209_s9  ;;  %p5622_p4 = scmp.ne.s32.totalorder %s5919_s12, %s5621_s28 }
  0x69   : > { %s5626_s8 = scalar_lea.hbm %s7448_s1, 4096  ;;  %p5627_p3 = scmp.lt.u32.totalorder %s5919_s12, %s7448_s1 }
  0x6a   : > { %p5624_p7 = pnand %p5622_p4, %p5593_p0  ;;  %p5628_p5 = scmp.lt.u32.totalorder %s5626_s8, %s5621_s28 }
  0x6b   : > { %p5630_p12 = scmp.lt.u32.totalorder %s5621_s28, %s5919_s12 }
  0x6c   : > { %p5625_p1 = pneg %p5624_p7  ;;  %p5629_p9 = por %p5628_p5, %p5627_p3 }
  0x6e   : > { %p5631_p2 = por %p5630_p12, %p5629_p9 }
  0x70   : > { %p5632_p13 = pnand %p5631_p2, %p5625_p1 }
  0x72   : > { %5635 = shalt.err (!%p5632_p13)
}
  0x73   : > { %s5636_s30 = scalar_lea.vmem %s5955_s27, 2048  ;;  %s5738_s6 = smov [#allocation6]  }
  0x74   : > { %p5637_p6 = scmp.ne.s32.totalorder %s5955_s27, %s5636_s30  ;;  %s5641_s29 = sshll.u32 %s5738_s6, 4  ;;  %s5642_s29 = int_to_ptr.vmem [resolvable:$false] %s5641_s29 }
  0x75   : > { %s5643_s0 = scalar_lea.vmem %s5642_s29, 4096  ;;  %p5644_p7 = scmp.lt.s32.totalorder %s5955_s27, %s5642_s29 }
  0x76   : > { %p5639_p10 = pnand %p5637_p6, %p5593_p0  ;;  %p5645_p3 = scmp.lt.s32.totalorder %s5643_s0, %s5636_s30 }
  0x78   : > { %p5640_p4 = pneg %p5639_p10  ;;  %p5646_p5 = por %p5645_p3, %p5644_p7 }
  0x7a   : > { %p5647_p9 = pnand %p5646_p5, %p5640_p4 }
  0x7c   : > { %5650 = shalt.err (!%p5647_p9)
}
  0x7d   : > { %5269 = dma.hbm_to_vmem [thread:$0]  (!%p5912_p11), %s5919_s12, 2048, %s5955_s27, %s5958_s10, %s7516_s5, %s7516_s5, %s7515_s13  }
  0x7e   : > { %232 = sbr.rel (%p5812_p8) target bundleno = 2938 (0xb7a), region = 36 }
  0x85   : > { %s5990_s9 = sand.u32 1, %s5721_s16   ;;  %p7517_p0 = scmp.ne.s32.totalorder %s7507_s21, 0 }
  0x86   : > { %s4731_s28 = sshll.u32 %s5990_s9, 7  ;;  %s235_s20 = scalar_lea.sflag [#allocation4], %s5990_s9 }
  0x87   : > { %s5994_s7 = scalar_lea.vmem [#allocation3], %s4731_s28 }
  0x88   : > { %5696 = dma.done.wait (%p7517_p0), %s235_s20, 2048  }
  0x89   : > { %5698 = vsyncadd (%p7517_p0), %s235_s20, 4294965248  ;;  %s243_s25 = sand.u32 1, %s5793_s19   ;;  %s6001_s12 = scalar_lea.vmem [#allocation6], %s4731_s28 }
  0x8a   : > { %s244_s23 = scalar_lea.sflag [#allocation7], %s243_s25 }
  0x8b   : > { %5700 = dma.done.wait (%p7517_p0), %s244_s23, 2048  }
  0x8c   : > { %5702 = vsyncadd (%p7517_p0), %s244_s23, 4294965248  ;;  %p7518_p8 = scmp.eq.s32.totalorder %s5793_s19, 0 }
  0x8e   : > { %5704 = dma.done.wait (%p7518_p8), [#allocation7], 7680   ;;  %p7519_p11 = pmov %p7518_p8 }
  0x8f   : > { %p7520_p1 = pmov %p7518_p8 }
  0x90   : > { %5706 = vsyncadd (%p7519_p11), [#allocation7], 4294959616 }
  0x91   : > { %5708 = dma.done.wait (%p7520_p1), [#allocation10], 26112   ;;  %p7521_p12 = pmov %p7520_p1 }
  0x92   : > { %v7459_v0 = vmov 0.0   ;;  %v286_v1 = vld [vmem:[%s5994_s7 + $0x8] sm:$0xff]  ;;  %v285_v3 = vld [vmem:[%s5994_s7] sm:$0xff]  ;;  %v288_v12 = vld [vmem:[%s5994_s7 + $0x18] sm:$0xff]  ;;  %vm547_vm0 = vcmask 261120   ;;  %vm5741_vm1 = vmmov 0  }
  0x93   : > { %5710 = vsyncadd (%p7521_p12), [#allocation10], 4294941184  ;;  %648 = vmatprep.mubr.f32.mxu0 %v7459_v0  ;;  %785 = vmatprep.mubr.f32.mxu1 %v7459_v0  ;;  %v290_v2 = vld [vmem:[%s5994_s7 + $0x28] sm:$0xff]  ;;  %v289_v5 = vld [vmem:[%s5994_s7 + $0x20] sm:$0xff]  ;;  %vm2789_vm2 = vcmask 64512   ;;  %p7648_p13 = scmp.ne.s32.totalorder %s7512_s26, 0 }
  0x94   : > { %v5014_v4 = vpack.c.bf16 %v290_v2, %v286_v1  ;;  %v294_v6 = vld [vmem:[%s5994_s7 + $0x48] sm:$0xff]  ;;  %v5016_v8 = vpack.c.bf16 %v289_v5, %v285_v3  ;;  %v293_v10 = vld [vmem:[%s5994_s7 + $0x40] sm:$0xff]  ;;  %v292_v14 = vld [vmem:[%s5994_s7 + $0x38] sm:$0xff] }
  0x95   : > { %v298_v7 = vld [vmem:[%s5994_s7 + $0x68] sm:$0xff]  ;;  %v297_v11 = vld [vmem:[%s5994_s7 + $0x60] sm:$0xff]  ;;  %v287_v15 = vld [vmem:[%s5994_s7 + $0x10] sm:$0xff]  ;;  %v5022_v17 = vpack.c.bf16 %v292_v14, %v288_v12 }
  0x96   : > { %v5018_v9 = vpack.c.bf16 %v298_v7, %v294_v6  ;;  %5015 = vmatprep.subr.bf16.mxu0 %v5014_v4  ;;  %v5020_v13 = vpack.c.bf16 %v297_v11, %v293_v10  ;;  %v291_v16 = vld [vmem:[%s5994_s7 + $0x30] sm:$0xff]  ;;  %v296_v18 = vld [vmem:[%s5994_s7 + $0x58] sm:$0xff]  ;;  %v487_v24 = vld [vmem:[#allocation8] sm:$0xff] }
  0x97   : > { %5017 = vmatpush1.bf16.msra.mxu0 %v5016_v8  ;;  %v300_v19 = vld [vmem:[%s5994_s7 + $0x78] sm:$0xff]  ;;  %v5024_v20 = vpack.c.bf16 %v291_v16, %v287_v15  ;;  %v295_v22 = vld [vmem:[%s5994_s7 + $0x50] sm:$0xff]  ;;  %5023 = vmatprep.subr.bf16.mxu1 %v5022_v17  ;;  %v302_v26 = vld [vmem:[%s6001_s12 + $0x8] sm:$0xff] }
  0x98   : > { %5019 = vmatprep.subr.bf16.mxu0 %v5018_v9  ;;  %v5026_v21 = vpack.c.bf16 %v300_v19, %v296_v18  ;;  %v299_v23 = vld [vmem:[%s5994_s7 + $0x70] sm:$0xff]  ;;  %v306_v27 = vld [vmem:[%s6001_s12 + $0x28] sm:$0xff]  ;;  %v301_v29 = vld [vmem:[%s6001_s12] sm:$0xff] }
  0x99   : > { %5025 = vmatpush1.bf16.msra.mxu1 %v5024_v20  ;;  %v5028_v25 = vpack.c.bf16 %v299_v23, %v295_v22  ;;  %v5030_v28 = vpack.c.bf16 %v306_v27, %v302_v26  ;;  %v305_v30 = vld [vmem:[%s6001_s12 + $0x20] sm:$0xff]  ;;  %v310_v32 = vld [vmem:[%s6001_s12 + $0x48] sm:$0xff]  ;;  %v304_v38 = vld [vmem:[%s6001_s12 + $0x18] sm:$0xff] }
  0x9a   : > { %5027 = vmatprep.subr.bf16.mxu1 %v5026_v21  ;;  %v5032_v31 = vpack.c.bf16 %v305_v30, %v301_v29  ;;  %v314_v33 = vld [vmem:[%s6001_s12 + $0x68] sm:$0xff]  ;;  %v309_v34 = vld [vmem:[%s6001_s12 + $0x40] sm:$0xff]  ;;  %v308_v40 = vld [vmem:[%s6001_s12 + $0x38] sm:$0xff] }
  0x9b   : > { %5021 = vmatpush1.bf16.msra.mxu0 %v5020_v13  ;;  %v488_v35 = vld [vmem:[#allocation8 + $0x8] sm:$0xff]  ;;  %v5034_v36 = vpack.c.bf16 %v314_v33, %v310_v32  ;;  %v313_v37 = vld [vmem:[%s6001_s12 + $0x60] sm:$0xff]  ;;  %v303_v41 = vld [vmem:[%s6001_s12 + $0x10] sm:$0xff]  ;;  %v5038_v43 = vpack.c.bf16 %v308_v40, %v304_v38 }
  0x9c   : > { %5031 = vmatprep.subr.bf16.mxu0 %v5030_v28  ;;  %v5036_v39 = vpack.c.bf16 %v313_v37, %v309_v34  ;;  %v307_v42 = vld [vmem:[%s6001_s12 + $0x30] sm:$0xff]  ;;  %v312_v45 = vld [vmem:[%s6001_s12 + $0x58] sm:$0xff]  ;;  %v491_v53 = vld [vmem:[#allocation8 + $0x20] sm:$0xff] }
  0x9d   : > { %5029 = vmatpush1.bf16.msra.mxu1 %v5028_v25  ;;  %v5040_v44 = vpack.c.bf16 %v307_v42, %v303_v41  ;;  %v316_v46 = vld [vmem:[%s6001_s12 + $0x78] sm:$0xff]  ;;  %v311_v47 = vld [vmem:[%s6001_s12 + $0x50] sm:$0xff]  ;;  %v492_v54 = vld [vmem:[#allocation8 + $0x28] sm:$0xff] }
  0x9e   : > { %4752 = vmatmul.mubr.msk.f32.vlgmr.msra.gmra.mrb[0].mxu0 %vm547_vm0, %v487_v24  ;;  %v489_v48 = vld [vmem:[#allocation8 + $0x10] sm:$0xff]  ;;  %5039 = vmatprep.subr.bf16.mxu1 %v5038_v43  ;;  %v5042_v50 = vpack.c.bf16 %v316_v46, %v312_v45  ;;  %v490_v52 = vld [vmem:[#allocation8 + $0x18] sm:$0xff]  ;;  %v495_v57 = vld [vmem:[#allocation8 + $0x40] sm:$0xff] }
  0x9f   : > { %654 = vmatprep.mubr.f32.mxu0 %v7459_v0  ;;  %5033 = vmatpush1.bf16.msra.mxu0 %v5032_v31  ;;  %v315_v49 = vld [vmem:[%s6001_s12 + $0x70] sm:$0xff]  ;;  %v494_v56 = vld [vmem:[#allocation8 + $0x38] sm:$0xff]  ;;  %v496_v58 = vld [vmem:[#allocation8 + $0x48] sm:$0xff] }
  0xa0   : > { %5035 = vmatprep.subr.bf16.mxu0 %v5034_v36  ;;  %4764 = vmatmul.mubr.msk.f32.vlgmr.msra.gmra.mrb[0].mxu1 %vm547_vm0, %v487_v24  ;;  %v5044_v51 = vpack.c.bf16 %v315_v49, %v311_v47  ;;  %v493_v55 = vld [vmem:[#allocation8 + $0x30] sm:$0xff]  ;;  %v498_v60 = vld [vmem:[#allocation8 + $0x58] sm:$0xff]  ;;  %v858_v61 = vld [vmem:[#allocation8 + $0x60] sm:$0xff] }
  0xa1   : > { %791 = vmatprep.mubr.f32.mxu1 %v7459_v0  ;;  %5041 = vmatpush1.bf16.msra.mxu1 %v5040_v44  ;;  %v497_v59 = vld [vmem:[#allocation8 + $0x50] sm:$0xff]  ;;  %v859_v62 = vld [vmem:[#allocation8 + $0x68] sm:$0xff]  ;;  %v861_v1 = vld [vmem:[#allocation8 + $0x78] sm:$0xff] }
  0xa2   : > { %4753 = vmatmul.mubr.msk.f32.gmra.mrb[2].mxu0 %vm547_vm0, %v488_v35  ;;  %5043 = vmatprep.subr.bf16.mxu1 %v5042_v50  ;;  %v860_v63 = vld [vmem:[#allocation8 + $0x70] sm:$0xff]  ;;  %v862_v2 = vld [vmem:[#allocation8 + $0x80] sm:$0xff]  ;;  %v863_v3 = vld [vmem:[#allocation8 + $0x88] sm:$0xff] }
  0xa3   : > { %660 = vmatprep.mubr.f32.mxu0 %v7459_v0  ;;  %5037 = vmatpush1.bf16.msra.mxu0 %v5036_v39  ;;  %v864_v4 = vld [vmem:[#allocation8 + $0x90] sm:$0xff]  ;;  %v865_v5 = vld [vmem:[#allocation8 + $0x98] sm:$0xff]  ;;  %v866_v6 = vld [vmem:[#allocation8 + $0xa0] sm:$0xff] }
  0xa4   : > { %4765 = vmatmul.mubr.msk.f32.gmra.mrb[2].mxu1 %vm547_vm0, %v488_v35  ;;  %v867_v7 = vld [vmem:[#allocation8 + $0xa8] sm:$0xff]  ;;  %v868_v8 = vld [vmem:[#allocation8 + $0xb0] sm:$0xff]  ;;  %v869_v9 = vld [vmem:[#allocation8 + $0xb8] sm:$0xff] }
  0xa5   : > { %797 = vmatprep.mubr.f32.mxu1 %v7459_v0  ;;  %5045 = vmatpush1.bf16.msra.mxu1 %v5044_v51  ;;  %v500_v10 = vld [vmem:[#allocation9 + $0x8] sm:$0xff]  ;;  %v515_v30 = vld [vmem:[#allocation9 + $0x80] sm:$0xff]  ;;  %v517_v35 = vld [vmem:[#allocation9 + $0x90] sm:$0xff] }
  0xa6   : > { %4754 = vmatmul.mubr.msk.f32.gmra.mrb[4].mxu0 %vm547_vm0, %v489_v48  ;;  %v519_v31 = vld [vmem:[#allocation9 + $0xa0] sm:$0xff]  ;;  %v516_v32 = vld [vmem:[#allocation9 + $0x88] sm:$0xff]  ;;  %v518_v40 = vld [vmem:[#allocation9 + $0x98] sm:$0xff] }
  0xa7   : > { %666 = vmatprep.mubr.f32.mxu0 %v7459_v0  ;;  %v520_v33 = vld [vmem:[#allocation9 + $0xa8] sm:$0xff]  ;;  %v521_v44 = vld [vmem:[#allocation9 + $0xb0] sm:$0xff]  ;;  %v522_v47 = vld [vmem:[#allocation9 + $0xb8] sm:$0xff] }
  0xa8   : > { %4766 = vmatmul.mubr.msk.f32.gmra.mrb[4].mxu1 %vm547_vm0, %v489_v48 }
  0xa9   : > { %803 = vmatprep.mubr.f32.mxu1 %v7459_v0 }
  0xaa   : > { %4755 = vmatmul.mubr.msk.f32.gmra.mrb[6].mxu0 %vm547_vm0, %v490_v52 }
  0xab   : > { %672 = vmatprep.mubr.f32.mxu0 %v7459_v0 }
  0xac   : > { %4767 = vmatmul.mubr.msk.f32.gmra.mrb[6].mxu1 %vm547_vm0, %v490_v52 }
  0xad   : > { %809 = vmatprep.mubr.f32.mxu1 %v7459_v0 }
  0xae   : > { %4756 = vmatmul.mubr.msk.f32.gmra.mrb[8].mxu0 %vm547_vm0, %v491_v53 }
  0xaf   : > { %678 = vmatprep.mubr.f32.mxu0 %v7459_v0 }
  0xb0   : > { %4768 = vmatmul.mubr.msk.f32.gmra.mrb[8].mxu1 %vm547_vm0, %v491_v53 }
  0xb1   : > { %815 = vmatprep.mubr.f32.mxu1 %v7459_v0 }
  0xb2   : > { %4757 = vmatmul.mubr.msk.f32.gmra.mrb[10].mxu0 %vm547_vm0, %v492_v54 }
  0xb3   : > { %684 = vmatprep.mubr.f32.mxu0 %v7459_v0 }
  0xb4   : > { %4769 = vmatmul.mubr.msk.f32.gmra.mrb[10].mxu1 %vm547_vm0, %v492_v54 }
  0xb5   : > { %821 = vmatprep.mubr.f32.mxu1 %v7459_v0 }
  0xb6   : > { %4758 = vmatmul.mubr.msk.f32.gmra.mrb[12].mxu0 %vm547_vm0, %v493_v55 }
  0xb7   : > { %690 = vmatprep.mubr.f32.mxu0 %v7459_v0 }
  0xb8   : > { %4770 = vmatmul.mubr.msk.f32.gmra.mrb[12].mxu1 %vm547_vm0, %v493_v55  ;;  %v523_v55 = vld [vmem:[#allocation9 + $0xc0] sm:$0xff] }
  0xb9   : > { %827 = vmatprep.mubr.f32.mxu1 %v7459_v0 }
  0xba   : > { %4759 = vmatmul.mubr.msk.f32.gmra.mrb[14].mxu0 %vm547_vm0, %v494_v56 }
  0xbb   : > { %696 = vmatprep.mubr.f32.mxu0 %v7459_v0 }
  0xbc   : > { %4771 = vmatmul.mubr.msk.f32.gmra.mrb[14].mxu1 %vm547_vm0, %v494_v56  ;;  %v527_v56 = vld [vmem:[#allocation9 + $0xe0] sm:$0xff] }
  0xbd   : > { %833 = vmatprep.mubr.f32.mxu1 %v7459_v0 }
  0xbe   : > { %4760 = vmatmul.mubr.msk.f32.gmra.mrb[16].mxu0 %vm547_vm0, %v495_v57 }
  0xbf   : > { %702 = vmatprep.mubr.f32.mxu0 %v7459_v0 }
  0xc0   : > { %4772 = vmatmul.mubr.msk.f32.gmra.mrb[16].mxu1 %vm547_vm0, %v495_v57 }
  0xc1   : > { %839 = vmatprep.mubr.f32.mxu1 %v7459_v0 }
  0xc2   : > { %4761 = vmatmul.mubr.msk.f32.gmra.mrb[18].mxu0 %vm547_vm0, %v496_v58 }
  0xc3   : > { %708 = vmatprep.mubr.f32.mxu0 %v7459_v0 }
  0xc4   : > { %4773 = vmatmul.mubr.msk.f32.gmra.mrb[18].mxu1 %vm547_vm0, %v496_v58  ;;  %v524_v58 = vld [vmem:[#allocation9 + $0xc8] sm:$0xff] }
  0xc5   : > { %845 = vmatprep.mubr.f32.mxu1 %v7459_v0 }
  0xc6   : > { %4762 = vmatmul.mubr.msk.f32.gmra.mrb[20].mxu0 %vm547_vm0, %v497_v59 }
  0xc7   : > { %714 = vmatprep.mubr.f32.mxu0 %v7459_v0 }
  0xc8   : > { %4774 = vmatmul.mubr.msk.f32.gmra.mrb[20].mxu1 %vm547_vm0, %v497_v59  ;;  %v528_v59 = vld [vmem:[#allocation9 + $0xe8] sm:$0xff] }
  0xc9   : > { %851 = vmatprep.mubr.f32.mxu1 %v7459_v0 }
  0xca   : > { %4763 = vmatmul.mubr.msk.f32.gmra.mrb[22].mxu0 %vm547_vm0, %v498_v60 }
  0xcb   : > { %1018 = vmatprep.mubr.f32.mxu0 %v7459_v0 }
  0xcc   : > { %4775 = vmatmul.mubr.msk.f32.gmra.mrb[22].mxu1 %vm547_vm0, %v498_v60 }
  0xcd   : > { %1155 = vmatprep.mubr.f32.mxu1 %v7459_v0 }
  0xce   : > { %4776 = vmatmul.mubr.msk.f32.vlgmr.msra.gmra.mrb[24].mxu0 %vm547_vm0, %v858_v61 }
  0xcf   : > { %1024 = vmatprep.mubr.f32.mxu0 %v7459_v0 }
  0xd0   : > { %4788 = vmatmul.mubr.msk.f32.vlgmr.msra.gmra.mrb[24].mxu1 %vm547_vm0, %v858_v61 }
  0xd1   : > { %1161 = vmatprep.mubr.f32.mxu1 %v7459_v0 }
  0xd2   : > { %4777 = vmatmul.mubr.msk.f32.gmra.mrb[26].mxu0 %vm547_vm0, %v859_v62 }
  0xd3   : > { %1030 = vmatprep.mubr.f32.mxu0 %v7459_v0 }
  0xd4   : > { %4789 = vmatmul.mubr.msk.f32.gmra.mrb[26].mxu1 %vm547_vm0, %v859_v62 }
  0xd5   : > { %1167 = vmatprep.mubr.f32.mxu1 %v7459_v0 }
  0xd6   : > { %4778 = vmatmul.mubr.msk.f32.gmra.mrb[28].mxu0 %vm547_vm0, %v860_v63 }
  0xd7   : > { %1036 = vmatprep.mubr.f32.mxu0 %v7459_v0 }
  0xd8   : > { %4790 = vmatmul.mubr.msk.f32.gmra.mrb[28].mxu1 %vm547_vm0, %v860_v63  ;;  %v525_v63 = vld [vmem:[#allocation9 + $0xd0] sm:$0xff] }
  0xd9   : > { %1173 = vmatprep.mubr.f32.mxu1 %v7459_v0 }
  0xda   : > { %4779 = vmatmul.mubr.msk.f32.gmra.mrb[30].mxu0 %vm547_vm0, %v861_v1 }
  0xdb   : > { %1042 = vmatprep.mubr.f32.mxu0 %v7459_v0 }
  0xdc   : > { %4791 = vmatmul.mubr.msk.f32.gmra.mrb[30].mxu1 %vm547_vm0, %v861_v1 }
  0xdd   : > { %1179 = vmatprep.mubr.f32.mxu1 %v7459_v0 }
  0xde   : > { %4780 = vmatmul.mubr.msk.f32.gmra.mrb[32].mxu0 %vm547_vm0, %v862_v2 }
  0xdf   : > { %1048 = vmatprep.mubr.f32.mxu0 %v7459_v0 }
  0xe0   : > { %4792 = vmatmul.mubr.msk.f32.gmra.mrb[32].mxu1 %vm547_vm0, %v862_v2 }
  0xe1   : > { %1185 = vmatprep.mubr.f32.mxu1 %v7459_v0 }
  0xe2   : > { %4781 = vmatmul.mubr.msk.f32.gmra.mrb[34].mxu0 %vm547_vm0, %v863_v3 }
  0xe3   : > { %1054 = vmatprep.mubr.f32.mxu0 %v7459_v0 }
  0xe4   : > { %4793 = vmatmul.mubr.msk.f32.gmra.mrb[34].mxu1 %vm547_vm0, %v863_v3 }
  0xe5   : > { %1191 = vmatprep.mubr.f32.mxu1 %v7459_v0 }
  0xe6   : > { %4782 = vmatmul.mubr.msk.f32.gmra.mrb[36].mxu0 %vm547_vm0, %v864_v4 }
  0xe7   : > { %1060 = vmatprep.mubr.f32.mxu0 %v7459_v0 }
  0xe8   : > { %4794 = vmatmul.mubr.msk.f32.gmra.mrb[36].mxu1 %vm547_vm0, %v864_v4 }
  0xe9   : > { %1197 = vmatprep.mubr.f32.mxu1 %v7459_v0 }
  0xea   : > { %4783 = vmatmul.mubr.msk.f32.gmra.mrb[38].mxu0 %vm547_vm0, %v865_v5 }
  0xeb   : > { %1066 = vmatprep.mubr.f32.mxu0 %v7459_v0 }
  0xec   : > { %4795 = vmatmul.mubr.msk.f32.gmra.mrb[38].mxu1 %vm547_vm0, %v865_v5  ;;  %v526_v5 = vld [vmem:[#allocation9 + $0xd8] sm:$0xff] }
  0xed   : > { %1203 = vmatprep.mubr.f32.mxu1 %v7459_v0 }
  0xee   : > { %4784 = vmatmul.mubr.msk.f32.gmra.mrb[40].mxu0 %vm547_vm0, %v866_v6 }
  0xef   : > { %1072 = vmatprep.mubr.f32.mxu0 %v7459_v0 }
  0xf0   : > { %4796 = vmatmul.mubr.msk.f32.gmra.mrb[40].mxu1 %vm547_vm0, %v866_v6 }
  0xf1   : > { %1209 = vmatprep.mubr.f32.mxu1 %v7459_v0 }
  0xf2   : > { %4785 = vmatmul.mubr.msk.f32.gmra.mrb[42].mxu0 %vm547_vm0, %v867_v7 }
  0xf3   : > { %1078 = vmatprep.mubr.f32.mxu0 %v7459_v0 }
  0xf4   : > { %4797 = vmatmul.mubr.msk.f32.gmra.mrb[42].mxu1 %vm547_vm0, %v867_v7 }
  0xf5   : > { %1215 = vmatprep.mubr.f32.mxu1 %v7459_v0 }
  0xf6   : > { %4786 = vmatmul.mubr.msk.f32.gmra.mrb[44].mxu0 %vm547_vm0, %v868_v8 }
  0xf7   : > { %1084 = vmatprep.mubr.f32.mxu0 %v7459_v0 }
  0xf8   : > { %4798 = vmatmul.mubr.msk.f32.gmra.mrb[44].mxu1 %vm547_vm0, %v868_v8 }
  0xf9   : > { %1221 = vmatprep.mubr.f32.mxu1 %v7459_v0 }
  0xfa   : > { %4787 = vmatmul.mubr.msk.f32.gmra.mrb[46].mxu0 %vm547_vm0, %v869_v9 }
  0xfc   : > { %4799 = vmatmul.mubr.msk.f32.gmra.mrb[46].mxu1 %vm547_vm0, %v869_v9  ;;  %v529_v9 = vld [vmem:[#allocation9 + $0xf0] sm:$0xff] }
  0xfd   : > { %1461 = vmatprep.mubr.f32.mxu1 %v7459_v0  ;;  %v542_v0 = vld [vmem:[#allocation9 + $0x158] sm:$0xff] }
 0x171   : > { %v6144_v11 = vpop.f32.mrb[0].mxu0 }
 0x172   : > { %v652_v12 = vpop.f32.mrb[1].mxu0 }
 0x173   : > { %v653_v13 = vadd.f32 %v652_v12, %v500_v10  ;;  %v6148_v15 = vpop.f32.mrb[0].mxu1 }
 0x174   : > { %v6152_v17 = vpop.f32.mrb[1].mxu1 }
 0x175   : > { %v6146_v14 = vpop.f32.mrb[2].mxu0  ;;  %1300 = vmatprep.mubr.f32.mxu0 %v653_v13  ;;  %v530_v13 = vld [vmem:[#allocation9 + $0xf8] sm:$0xff] }
 0x176   : > { %v6150_v16 = vpop.f32.mrb[3].mxu0 }
 0x177   : > { %v6156_v19 = vpop.f32.mrb[2].mxu1 }
 0x178   : > { %v6160_v21 = vpop.f32.mrb[3].mxu1 }
 0x179   : > { %v6154_v18 = vpop.f32.mrb[4].mxu0 }
 0x17a   : > { %v6158_v20 = vpop.f32.mrb[5].mxu0 }
 0x17b   : > { %v6164_v23 = vpop.f32.mrb[4].mxu1 }
 0x17c   : > { %v6168_v25 = vpop.f32.mrb[5].mxu1 }
 0x17d   : > { %v6162_v22 = vpop.f32.mrb[6].mxu0 }
 0x17e   : > { %v6166_v24 = vpop.f32.mrb[7].mxu0 }
 0x17f   : > { %v6170_v27 = vpop.f32.mrb[6].mxu1 }
 0x180   : > { %v6172_v29 = vpop.f32.mrb[7].mxu1 }
 0x181   : > { %v674_v26 = vpop.f32.mrb[8].mxu0 }
 0x182   : > { %v676_v28 = vpop.f32.mrb[9].mxu0  ;;  %v6174_v37 = vadd.f32 %v674_v26, %v515_v30 }
 0x183   : > { %v811_v36 = vpop.f32.mrb[8].mxu1  ;;  %v6178_v42 = vadd.f32 %v676_v28, %v516_v32 }
 0x184   : > { %v813_v41 = vpop.f32.mrb[9].mxu1  ;;  %v6184_v46 = vadd.f32 %v811_v36, %v517_v35  ;;  %v531_v35 = vld [vmem:[#allocation9 + $0x100] sm:$0xff] }
 0x185   : > { %v680_v34 = vpop.f32.mrb[10].mxu0  ;;  %v6188_v50 = vadd.f32 %v813_v41, %v518_v40  ;;  %v535_v36 = vld [vmem:[#allocation9 + $0x120] sm:$0xff]  ;;  %v532_v40 = vld [vmem:[#allocation9 + $0x108] sm:$0xff] }
 0x186   : > { %v6176_v38 = vadd.f32 %v680_v34, %v519_v31  ;;  %v682_v39 = vpop.f32.mrb[11].mxu0  ;;  %v536_v41 = vld [vmem:[#allocation9 + $0x128] sm:$0xff] }
 0x187   : > { %v6180_v43 = vadd.f32 %v682_v39, %v520_v33  ;;  %v817_v51 = vpop.f32.mrb[10].mxu1 }
 0x188   : > { %v6190_v53 = vadd.f32 %v817_v51, %v521_v44  ;;  %v819_v54 = vpop.f32.mrb[11].mxu1  ;;  %v533_v51 = vld [vmem:[#allocation9 + $0x110] sm:$0xff] }
 0x189   : > { %v686_v49 = vpop.f32.mrb[12].mxu0  ;;  %v6192_v57 = vadd.f32 %v819_v54, %v522_v47 }
 0x18a   : > { %v688_v52 = vpop.f32.mrb[13].mxu0  ;;  %v6198_v2 = vadd.f32 %v686_v49, %v523_v55  ;;  %v545_v49 = vld [vmem:[#allocation9 + $0x170] sm:$0xff] }
 0x18b   : > { %v823_v1 = vpop.f32.mrb[12].mxu1  ;;  %v6202_v7 = vadd.f32 %v688_v52, %v524_v58  ;;  %v534_v58 = vld [vmem:[#allocation9 + $0x118] sm:$0xff] }
 0x18c   : > { %v825_v6 = vpop.f32.mrb[13].mxu1  ;;  %v6208_v12 = vadd.f32 %v823_v1, %v525_v63  ;;  %v537_v1 = vld [vmem:[#allocation9 + $0x130] sm:$0xff] }
 0x18d   : > { %v692_v61 = vpop.f32.mrb[14].mxu0  ;;  %v6212_v30 = vadd.f32 %v825_v6, %v526_v5  ;;  %v538_v6 = vld [vmem:[#allocation9 + $0x138] sm:$0xff] }
 0x18e   : > { %v6200_v3 = vadd.f32 %v692_v61, %v527_v56  ;;  %v694_v4 = vpop.f32.mrb[15].mxu0  ;;  %7522 = vst [vmem:[#allocation17_spill] sm:$0xff] %v6208_v12 }
 0x18f   : > { %v6204_v8 = vadd.f32 %v694_v4, %v528_v59  ;;  %v829_v31 = vpop.f32.mrb[14].mxu1  ;;  %v546_v4 = vld [vmem:[#allocation9 + $0x178] sm:$0xff] }
 0x190   : > { %v6214_v33 = vadd.f32 %v829_v31, %v529_v9  ;;  %v831_v34 = vpop.f32.mrb[15].mxu1 }
 0x191   : > { %v698_v28 = vpop.f32.mrb[16].mxu0  ;;  %v6216_v39 = vadd.f32 %v831_v34, %v530_v13 }
 0x192   : > { %v700_v32 = vpop.f32.mrb[17].mxu0  ;;  %7523 = vst [vmem:[#allocation18_spill] sm:$0xff] %v6214_v33  ;;  %v6222_v54 = vadd.f32 %v698_v28, %v531_v35 }
 0x193   : > { %v835_v52 = vpop.f32.mrb[16].mxu1  ;;  %v6226_v61 = vadd.f32 %v700_v32, %v532_v40  ;;  %v543_v40 = vld [vmem:[#allocation9 + $0x160] sm:$0xff] }
 0x194   : > { %7524 = vst [vmem:[#allocation19_spill] sm:$0xff] %v6222_v54  ;;  %v837_v59 = vpop.f32.mrb[17].mxu1  ;;  %v6232_v5 = vadd.f32 %v835_v52, %v533_v51 }
 0x195   : > { %v704_v47 = vpop.f32.mrb[18].mxu0  ;;  %7526 = vst [vmem:[#allocation21_spill] sm:$0xff] %v6226_v61  ;;  %v6236_v28 = vadd.f32 %v837_v59, %v534_v58  ;;  %v541_v58 = vld [vmem:[#allocation9 + $0x150] sm:$0xff] }
 0x196   : > { %v6224_v55 = vadd.f32 %v704_v47, %v535_v36  ;;  %v706_v56 = vpop.f32.mrb[19].mxu0  ;;  %7528 = vst [vmem:[#allocation23_spill] sm:$0xff] %v6232_v5  ;;  %v539_v36 = vld [vmem:[#allocation9 + $0x140] sm:$0xff]  ;;  %v540_v47 = vld [vmem:[#allocation9 + $0x148] sm:$0xff] }
 0x197   : > { %v6228_v63 = vadd.f32 %v706_v56, %v536_v41  ;;  %7529 = vst [vmem:[#allocation24_spill] sm:$0xff] %v6236_v28  ;;  %v841_v31 = vpop.f32.mrb[18].mxu1  ;;  %v544_v56 = vld [vmem:[#allocation9 + $0x168] sm:$0xff]  ;;  %v888_v28 = vld [vmem:[#allocation9 + $0x210] sm:$0xff] }
 0x198   : > { %7525 = vst [vmem:[#allocation20_spill] sm:$0xff] %v6224_v55  ;;  %v6238_v35 = vadd.f32 %v841_v31, %v537_v1  ;;  %v843_v32 = vpop.f32.mrb[19].mxu1  ;;  %v891_v5 = vld [vmem:[#allocation9 + $0x228] sm:$0xff] }
 0x199   : > { %7527 = vst [vmem:[#allocation22_spill] sm:$0xff] %v6228_v63  ;;  %v710_v13 = vpop.f32.mrb[20].mxu0  ;;  %v6240_v41 = vadd.f32 %v843_v32, %v538_v6  ;;  %v892_v63 = vld [vmem:[#allocation9 + $0x230] sm:$0xff] }
 0x19a   : > { %v712_v34 = vpop.f32.mrb[21].mxu0  ;;  %7530 = vst [vmem:[#allocation25_spill] sm:$0xff] %v6238_v35  ;;  %v6246_v9 = vadd.f32 %v710_v13, %v539_v36 }
 0x19b   : > { %7531 = vst [vmem:[#allocation26_spill] sm:$0xff] %v6240_v41  ;;  %v847_v59 = vpop.f32.mrb[20].mxu1  ;;  %v6250_v6 = vadd.f32 %v712_v34, %v540_v47 }
 0x19c   : > { %7532 = vst [vmem:[#allocation27_spill] sm:$0xff] %v6246_v9  ;;  %v849_v44 = vpop.f32.mrb[21].mxu1  ;;  %v6256_v60 = vadd.f32 %v847_v59, %v541_v58 }
 0x19d   : > { %v716_v52 = vpop.f32.mrb[22].mxu0  ;;  %7534 = vst [vmem:[#allocation29_spill] sm:$0xff] %v6250_v6 }
 0x19e   : > { %v6248_v1 = vadd.f32 %v716_v52, %v543_v40  ;;  %v718_v31 = vpop.f32.mrb[23].mxu0  ;;  %7536 = vst [vmem:[#allocation31_spill] sm:$0xff] %v6256_v60  ;;  %v6262_v40 = vadd.f32 %v849_v44, %v542_v0 }
 0x19f   : > { %v6252_v32 = vadd.f32 %v718_v31, %v544_v56  ;;  %v853_v52 = vpop.f32.mrb[22].mxu1 }
 0x1a0   : > { %7533 = vst [vmem:[#allocation28_spill] sm:$0xff] %v6248_v1  ;;  %7537 = vst [vmem:[#allocation32_spill] sm:$0xff] %v6262_v40  ;;  %v6266_v34 = vadd.f32 %v853_v52, %v545_v49  ;;  %v855_v47 = vpop.f32.mrb[23].mxu1  ;;  %v890_v40 = vld [vmem:[#allocation9 + $0x220] sm:$0xff] }
 0x1a1   : > { %7535 = vst [vmem:[#allocation30_spill] sm:$0xff] %v6252_v32  ;;  %v6260_v36 = vpop.f32.mrb[24].mxu0  ;;  %v6268_v56 = vadd.f32 %v855_v47, %v546_v4  ;;  %v889_v32 = vld [vmem:[#allocation9 + $0x218] sm:$0xff] }
 0x1a2   : > { %v6264_v62 = vpop.f32.mrb[25].mxu0  ;;  %7538 = vst [vmem:[#allocation33_spill] sm:$0xff] %v6266_v34  ;;  %v886_v34 = vld [vmem:[#allocation9 + $0x200] sm:$0xff] }
 0x1a3   : > { %7539 = vst [vmem:[#allocation34_spill] sm:$0xff] %v6268_v56  ;;  %v6276_v51 = vpop.f32.mrb[24].mxu1  ;;  %v887_v56 = vld [vmem:[#allocation9 + $0x208] sm:$0xff] }
 0x1a4   : > { %7540 = vst [vmem:[#allocation35_spill] sm:$0xff] %v6276_v51  ;;  %v6280_v44 = vpop.f32.mrb[25].mxu1 }
 0x1a5   : > { %v6272_v59 = vpop.f32.mrb[26].mxu0  ;;  %7541 = vst [vmem:[#allocation36_spill] sm:$0xff] %v6280_v44 }
 0x1a6   : > { %v6278_v0 = vpop.f32.mrb[27].mxu0 }
 0x1a7   : > { %v6284_v49 = vpop.f32.mrb[26].mxu1 }
 0x1a8   : > { %7543 = vst [vmem:[#allocation38_spill] sm:$0xff] %v6284_v49  ;;  %v6288_v52 = vpop.f32.mrb[27].mxu1 }
 0x1a9   : > { %v6282_v13 = vpop.f32.mrb[28].mxu0  ;;  %7544 = vst [vmem:[#allocation39_spill] sm:$0xff] %v6288_v52 }
 0x1aa   : > { %7542 = vst [vmem:[#allocation37_spill] sm:$0xff] %v6282_v13  ;;  %v6286_v4 = vpop.f32.mrb[29].mxu0  ;;  %v903_v13 = vld [vmem:[#allocation9 + $0x288] sm:$0xff] }
 0x1ab   : > { %v6292_v58 = vpop.f32.mrb[28].mxu1 }
 0x1ac   : > { %7546 = vst [vmem:[#allocation41_spill] sm:$0xff] %v6292_v58  ;;  %v6296_v31 = vpop.f32.mrb[29].mxu1 }
 0x1ad   : > { %v6290_v47 = vpop.f32.mrb[30].mxu0  ;;  %7548 = vst [vmem:[#allocation43_spill] sm:$0xff] %v6296_v31  ;;  %v893_v31 = vld [vmem:[#allocation9 + $0x238] sm:$0xff] }
 0x1ae   : > { %7545 = vst [vmem:[#allocation40_spill] sm:$0xff] %v6290_v47  ;;  %v6294_v10 = vpop.f32.mrb[31].mxu0 }
 0x1af   : > { %7547 = vst [vmem:[#allocation42_spill] sm:$0xff] %v6294_v10  ;;  %v6298_v45 = vpop.f32.mrb[30].mxu1 }
 0x1b0   : > { %7549 = vst [vmem:[#allocation44_spill] sm:$0xff] %v6298_v45  ;;  %v6300_v60 = vpop.f32.mrb[31].mxu1 }
 0x1b1   : > { %v1044_v26 = vpop.f32.mrb[32].mxu0  ;;  %7550 = vst [vmem:[#allocation45_spill] sm:$0xff] %v6300_v60 }
 0x1b2   : > { %v1046_v48 = vpop.f32.mrb[33].mxu0  ;;  %v1045_v9 = vadd.f32 %v1044_v26, %v886_v34  ;;  %v894_v26 = vld [vmem:[#allocation9 + $0x240] sm:$0xff]  ;;  %v895_v34 = vld [vmem:[#allocation9 + $0x248] sm:$0xff] }
 0x1b3   : > { %v1181_v41 = vpop.f32.mrb[32].mxu1  ;;  %v1047_v55 = vadd.f32 %v1046_v48, %v887_v56  ;;  %v899_v48 = vld [vmem:[#allocation9 + $0x268] sm:$0xff] }
 0x1b4   : > { %v1183_v54 = vpop.f32.mrb[33].mxu1  ;;  %v6302_v45 = vadd.f32 %v1181_v41, %v888_v28 }
 0x1b5   : > { %v1050_v35 = vpop.f32.mrb[34].mxu0  ;;  %v1184_v52 = vadd.f32 %v1183_v54, %v889_v32 }
 0x1b6   : > { %v1051_v1 = vadd.f32 %v1050_v35, %v890_v40  ;;  %v1052_v6 = vpop.f32.mrb[35].mxu0  ;;  %v898_v35 = vld [vmem:[#allocation9 + $0x260] sm:$0xff] }
 0x1b7   : > { %v1053_v61 = vadd.f32 %v1052_v6, %v891_v5  ;;  %v1187_v51 = vpop.f32.mrb[34].mxu1 }
 0x1b8   : > { %v5048_v58 = vpack.c.bf16 %v1051_v1, %v1045_v9  ;;  %v6304_v47 = vadd.f32 %v1187_v51, %v892_v63  ;;  %v1189_v12 = vpop.f32.mrb[35].mxu1  ;;  %v897_v63 = vld [vmem:[#allocation9 + $0x258] sm:$0xff] }
 0x1b9   : > { %v5046_v60 = vpack.c.bf16 %v1053_v61, %v1047_v55  ;;  %v1056_v49 = vpop.f32.mrb[36].mxu0  ;;  %v1190_v40 = vadd.f32 %v1189_v12, %v893_v31  ;;  %v896_v55 = vld [vmem:[#allocation9 + $0x250] sm:$0xff] }
 0x1ba   : > { %v1058_v44 = vpop.f32.mrb[37].mxu0  ;;  %v5064_v5 = vpack.c.bf16 %v6304_v47, %v6302_v45  ;;  %v1057_v54 = vadd.f32 %v1056_v49, %v894_v26  ;;  %v902_v45 = vld [vmem:[#allocation9 + $0x280] sm:$0xff] }
 0x1bb   : > { %5047 = vmatprep.subr.bf16.mxu0 %v5046_v60  ;;  %v5062_v28 = vpack.c.bf16 %v1190_v40, %v1184_v52  ;;  %v1193_v61 = vpop.f32.mrb[36].mxu1  ;;  %v1059_v6 = vadd.f32 %v1058_v44, %v895_v34  ;;  %v900_v60 = vld [vmem:[#allocation9 + $0x270] sm:$0xff] }
 0x1bc   : > { %5049 = vmatpush1.bf16.xpose.msra.mxu0 %v5048_v58  ;;  %v1195_v51 = vpop.f32.mrb[37].mxu1  ;;  %v6308_v12 = vadd.f32 %v1193_v61, %v896_v55  ;;  %v901_v58 = vld [vmem:[#allocation9 + $0x278] sm:$0xff] }
 0x1bd   : > { %v1062_v9 = vpop.f32.mrb[38].mxu0  ;;  %v1196_v33 = vadd.f32 %v1195_v51, %v897_v63  ;;  %v504_v63 = vld [vmem:[#allocation9 + $0x28] sm:$0xff] }
 0x1be   : > { %v1063_v41 = vadd.f32 %v1062_v9, %v898_v35  ;;  %v1064_v1 = vpop.f32.mrb[39].mxu0  ;;  %v906_v35 = vld [vmem:[#allocation9 + $0x2a0] sm:$0xff] }
 0x1bf   : > { %v1065_v32 = vadd.f32 %v1064_v1, %v899_v48  ;;  %v1199_v10 = vpop.f32.mrb[38].mxu1  ;;  %v907_v48 = vld [vmem:[#allocation9 + $0x2a8] sm:$0xff] }
 0x1c0   : > { %v5052_v56 = vpack.c.bf16 %v1063_v41, %v1057_v54  ;;  %v1200_v52 = vadd.f32 %v1199_v10, %v900_v60  ;;  %v1201_v40 = vpop.f32.mrb[39].mxu1  ;;  %v499_v54 = vld [vmem:[#allocation9] sm:$0xff] }
 0x1c1   : > { %v5050_v31 = vpack.c.bf16 %v1065_v32, %v1059_v6  ;;  %v1068_v47 = vpop.f32.mrb[40].mxu0  ;;  %v1202_v26 = vadd.f32 %v1201_v40, %v901_v58  ;;  %v651_v6 = vadd.f32 %v6144_v11, %v499_v54  ;;  %v910_v60 = vld [vmem:[#allocation9 + $0x2c0] sm:$0xff] }
 0x1c2   : > { %v1070_v49 = vpop.f32.mrb[41].mxu0  ;;  %v5068_v44 = vpack.c.bf16 %v1200_v52, %v6308_v12  ;;  %v1069_v34 = vadd.f32 %v1068_v47, %v902_v45  ;;  %v659_v12 = vadd.f32 %v6150_v16, %v504_v63  ;;  %v915_v47 = vld [vmem:[#allocation9 + $0x2e8] sm:$0xff]  ;;  %v511_v54 = vld [vmem:[#allocation9 + $0x60] sm:$0xff] }
 0x1c3   : > { %5051 = vmatprep.subr.bf16.mxu0 %v5050_v31  ;;  %v5066_v9 = vpack.c.bf16 %v1202_v26, %v1196_v33  ;;  %v1071_v55 = vadd.f32 %v1070_v49, %v903_v13  ;;  %v911_v31 = vld [vmem:[#allocation9 + $0x2c8] sm:$0xff]  ;;  %v914_v33 = vld [vmem:[#allocation9 + $0x2e0] sm:$0xff] }
 0x1c4   : > { %5053 = vmatpush1.bf16.xpose.msra.mxu0 %v5052_v56  ;;  %v503_v56 = vld [vmem:[#allocation9 + $0x20] sm:$0xff] }
 0x1c5   : > { %5063 = vmatprep.subr.bf16.mxu0 %v5062_v28  ;;  %v1074_v61 = vpop.f32.mrb[42].mxu0  ;;  %v508_v28 = vld [vmem:[#allocation9 + $0x48] sm:$0xff]  ;;  %v657_v52 = vadd.f32 %v6146_v14, %v503_v56  ;;  %v507_v49 = vld [vmem:[#allocation9 + $0x40] sm:$0xff] }
 0x1c6   : > { %v1075_v41 = vadd.f32 %v1074_v61, %v906_v35  ;;  %v1076_v1 = vpop.f32.mrb[43].mxu0  ;;  %v665_v26 = vadd.f32 %v6158_v20, %v508_v28  ;;  %v669_v20 = vadd.f32 %v6162_v22, %v511_v54  ;;  %v7552_v22 = vpack.c.bf16 %v6176_v38, %v6174_v37  ;;  %v870_v38 = vld [vmem:[#allocation9 + $0x180] sm:$0xff]  ;;  %v885_v54 = vld [vmem:[#allocation9 + $0x1f8] sm:$0xff] }
 0x1c7   : > { %v1077_v10 = vadd.f32 %v1076_v1, %v907_v48  ;;  %v501_v1 = vld [vmem:[#allocation9 + $0x10] sm:$0xff] }
 0x1c8   : > { %v5056_v51 = vpack.c.bf16 %v1075_v41, %v1069_v34  ;;  %v512_v34 = vld [vmem:[#allocation9 + $0x68] sm:$0xff]  ;;  %v7551_v41 = vpack.c.bf16 %v6180_v43, %v6178_v42  ;;  %v509_v43 = vld [vmem:[#allocation9 + $0x50] sm:$0xff] }
 0x1c9   : > { %v5054_v32 = vpack.c.bf16 %v1077_v10, %v1071_v55  ;;  %v1080_v58 = vpop.f32.mrb[44].mxu0  ;;  %v671_v14 = vadd.f32 %v6166_v24, %v512_v34  ;;  %v788_v24 = vadd.f32 %v6148_v15, %v501_v1  ;;  %v505_v10 = vld [vmem:[#allocation9 + $0x30] sm:$0xff]  ;;  %v514_v15 = vld [vmem:[#allocation9 + $0x78] sm:$0xff]  ;;  %v7567_v34 = vld [vmem:[#allocation38_spill] sm:$0xff] }
 0x1ca   : > { %v1082_v45 = vpop.f32.mrb[45].mxu0  ;;  %v1081_v13 = vadd.f32 %v1080_v58, %v910_v60  ;;  %v794_v42 = vadd.f32 %v6156_v19, %v505_v10  ;;  %v808_v60 = vadd.f32 %v6172_v29, %v514_v15  ;;  %v871_v58 = vld [vmem:[#allocation9 + $0x188] sm:$0xff]  ;;  %v7554_v19 = vpack.c.bf16 %v6200_v3, %v6198_v2 }
 0x1cb   : > { %1301 = vmatmul.mubr.f32.vlgmr.msra.gmra.mrb[48].mxu0 %v651_v6  ;;  %5055 = vmatprep.subr.bf16.mxu1 %v5054_v32  ;;  %v1083_v11 = vadd.f32 %v1082_v45, %v911_v31  ;;  %v510_v6 = vld [vmem:[#allocation9 + $0x58] sm:$0xff]  ;;  %v513_v32 = vld [vmem:[#allocation9 + $0x70] sm:$0xff]  ;;  %v1021_v29 = vadd.f32 %v6260_v36, %v870_v38  ;;  %v883_v3 = vld [vmem:[#allocation9 + $0x1e8] sm:$0xff] }
 0x1cc   : > { %1305 = vmatprep.mubr.f32.mxu0 %v659_v12  ;;  %5065 = vmatpush1.bf16.xpose.msra.mxu0 %v5064_v5  ;;  %v663_v5 = vadd.f32 %v6154_v18, %v507_v49  ;;  %v506_v18 = vld [vmem:[#allocation9 + $0x38] sm:$0xff]  ;;  %v806_v37 = vadd.f32 %v6170_v27, %v513_v32  ;;  %v879_v12 = vld [vmem:[#allocation9 + $0x1c8] sm:$0xff]  ;;  %v7556_v27 = vpack.c.bf16 %v6190_v53, %v6184_v46  ;;  %v7558_v36 = vld [vmem:[#allocation37_spill] sm:$0xff] }
 0x1cd   : > { %5067 = vmatprep.subr.bf16.mxu0 %v5066_v9  ;;  %v1086_v40 = vpop.f32.mrb[46].mxu0  ;;  %5057 = vmatpush1.bf16.msra.mxu1 %v5056_v51  ;;  %v502_v9 = vld [vmem:[#allocation9 + $0x18] sm:$0xff]  ;;  %v796_v51 = vadd.f32 %v6160_v21, %v506_v18  ;;  %v800_v21 = vadd.f32 %v6164_v23, %v509_v43  ;;  %v875_v23 = vld [vmem:[#allocation9 + $0x1a8] sm:$0xff]  ;;  %v1035_v2 = vadd.f32 %v6286_v4, %v879_v12  ;;  %v882_v31 = vld [vmem:[#allocation9 + $0x1e0] sm:$0xff] }
 0x1ce   : > { %v1087_v16 = vadd.f32 %v1086_v40, %v914_v33  ;;  %v1088_v35 = vpop.f32.mrb[47].mxu0  ;;  %v790_v63 = vadd.f32 %v6152_v17, %v502_v9  ;;  %v7553_v17 = vpack.c.bf16 %v6204_v8, %v6202_v7  ;;  %v1023_v7 = vadd.f32 %v6264_v62, %v871_v58  ;;  %v874_v8 = vld [vmem:[#allocation9 + $0x1a0] sm:$0xff]  ;;  %v7559_v45 = vld [vmem:[#allocation42_spill] sm:$0xff]  ;;  %v873_v33 = vld [vmem:[#allocation9 + $0x198] sm:$0xff] }
 0x1cf   : > { %1306 = vmatmul.mubr.f32.gmra.mrb[50].mxu0 %v657_v52  ;;  %v1089_v48 = vadd.f32 %v1088_v35, %v915_v47  ;;  %v1029_v56 = vadd.f32 %v6278_v0, %v875_v23  ;;  %v878_v62 = vld [vmem:[#allocation9 + $0x1c0] sm:$0xff]  ;;  %v1041_v28 = vadd.f32 %v7559_v45, %v883_v3  ;;  %v7560_v46 = vld [vmem:[#allocation18_spill] sm:$0xff]  ;;  %v7564_v47 = vld [vmem:[#allocation36_spill] sm:$0xff] }
 0x1d0   : > { %1310 = vmatprep.mubr.f32.mxu0 %v665_v26  ;;  %v5060_v55 = vpack.c.bf16 %v1087_v16, %v1081_v13  ;;  %v1033_v0 = vadd.f32 %v7558_v36, %v878_v62  ;;  %v7561_v53 = vld [vmem:[#allocation17_spill] sm:$0xff]  ;;  %v872_v13 = vld [vmem:[#allocation9 + $0x190] sm:$0xff]  ;;  %v1160_v4 = vadd.f32 %v7564_v47, %v873_v33  ;;  %v877_v52 = vld [vmem:[#allocation9 + $0x1b8] sm:$0xff] }
 0x1d1   : > { %v5058_v61 = vpack.c.bf16 %v1089_v48, %v1083_v11  ;;  %v7565_v11 = vld [vmem:[#allocation35_spill] sm:$0xff]  ;;  %v881_v35 = vld [vmem:[#allocation9 + $0x1d8] sm:$0xff]  ;;  %v1229_v43 = vld [vmem:[#allocation8 + $0x1a8] sm:$0xff] }
 0x1d2   : > { %v1158_v40 = vadd.f32 %v7565_v11, %v872_v13  ;;  %v876_v49 = vld [vmem:[#allocation9 + $0x1b0] sm:$0xff]  ;;  %v1231_v23 = vld [vmem:[#allocation8 + $0x1b8] sm:$0xff]  ;;  %v1232_v11 = vld [vmem:[#allocation8 + $0x1c0] sm:$0xff] }
 0x1d3   : > { %1311 = vmatmul.mubr.f32.gmra.mrb[52].mxu0 %v663_v5  ;;  %5059 = vmatprep.subr.bf16.mxu1 %v5058_v61  ;;  %v7566_v26 = vld [vmem:[#allocation39_spill] sm:$0xff]  ;;  %v1164_v48 = vadd.f32 %v7567_v34, %v876_v49  ;;  %v1233_v34 = vld [vmem:[#allocation8 + $0x1c8] sm:$0xff] }
 0x1d4   : > { %1315 = vmatprep.mubr.f32.mxu0 %v671_v14  ;;  %5069 = vmatpush1.bf16.xpose.msra.mxu0 %v5068_v44  ;;  %v802_v44 = vadd.f32 %v6168_v25, %v510_v6  ;;  %v7555_v25 = vpack.c.bf16 %v6192_v57, %v6188_v50  ;;  %v1027_v50 = vadd.f32 %v6272_v59, %v874_v8  ;;  %v7568_v5 = vld [vmem:[#allocation43_spill] sm:$0xff]  ;;  %v7569_v14 = vld [vmem:[#allocation41_spill] sm:$0xff] }
 0x1d5   : > { %5079 = vmatprep.subr.bf16.mxu0 %v7551_v41  ;;  %5061 = vmatpush1.bf16.msra.mxu1 %v5060_v55  ;;  %v7557_v57 = vpack.c.bf16 %v6216_v39, %v6212_v30  ;;  %v7562_v59 = vpack.c.bf16 %v7560_v46, %v7561_v53  ;;  %v7563_v30 = vld [vmem:[#allocation40_spill] sm:$0xff]  ;;  %v1166_v16 = vadd.f32 %v7566_v26, %v877_v52  ;;  %v880_v55 = vld [vmem:[#allocation9 + $0x1d0] sm:$0xff]  ;;  %v7570_v41 = vld [vmem:[#allocation45_spill] sm:$0xff] }
 0x1d6   : > { %v1039_v39 = vadd.f32 %v7563_v30, %v882_v31  ;;  %v1172_v61 = vadd.f32 %v7568_v5, %v881_v35  ;;  %v1170_v9 = vadd.f32 %v7569_v14, %v880_v55  ;;  %v1178_v1 = vadd.f32 %v7570_v41, %v885_v54  ;;  %v1230_v58 = vld [vmem:[#allocation8 + $0x1b0] sm:$0xff] }
 0x1d7   : > { %1316 = vmatmul.mubr.f32.gmra.mrb[54].mxu0 %v669_v20  ;;  %v884_v20 = vld [vmem:[#allocation9 + $0x1f0] sm:$0xff] }
 0x1d8   : > { %1550 = vmatprep.mubr.f32.mxu0 %v790_v63  ;;  %v7571_v63 = vld [vmem:[#allocation44_spill] sm:$0xff]  ;;  %v1234_v14 = vld [vmem:[#allocation8 + $0x1d0] sm:$0xff] }
 0x1d9   : > { %v1176_v18 = vadd.f32 %v7571_v63, %v884_v20 }
 0x1db   : > { %1551 = vmatmul.mubr.f32.vlgmr.msra.gmra.mrb[56].mxu0 %v788_v24  ;;  %v7572_v24 = vmov 0.0  }
 0x1dc   : > { %1555 = vmatprep.mubr.f32.mxu0 %v796_v51  ;;  %5081 = vmatpush1.bf16.xpose.msra.mxu0 %v7552_v22  ;;  %v1228_v51 = vld [vmem:[#allocation8 + $0x1a0] sm:$0xff] }
 0x1dd   : > { %5083 = vmatprep.subr.bf16.mxu0 %v7553_v17 }
 0x1df   : > { %1556 = vmatmul.mubr.f32.gmra.mrb[58].mxu0 %v794_v42 }
 0x1e0   : > { %1560 = vmatprep.mubr.f32.mxu0 %v802_v44 }
 0x1e3   : > { %1561 = vmatmul.mubr.f32.gmra.mrb[60].mxu0 %v800_v21 }
 0x1e4   : > { %1565 = vmatprep.mubr.f32.mxu0 %v808_v60  ;;  %5085 = vmatpush1.bf16.xpose.msra.mxu0 %v7554_v19 }
 0x1e5   : > { %5095 = vmatprep.subr.bf16.mxu0 %v7555_v25 }
 0x1e7   : > { %1566 = vmatmul.mubr.f32.gmra.mrb[62].mxu0 %v806_v37 }
 0x1e8   : > { %1800 = vmatprep.mubr.f32.mxu0 %v1023_v7 }
 0x1eb   : > { %1801 = vmatmul.mubr.f32.vlgmr.msra.gmra.mrb[64].mxu0 %v1021_v29 }
 0x1ec   : > { %1805 = vmatprep.mubr.f32.mxu0 %v1029_v56  ;;  %5097 = vmatpush1.bf16.xpose.msra.mxu0 %v7556_v27 }
 0x1ed   : > { %5099 = vmatprep.subr.bf16.mxu0 %v7557_v57 }
 0x1ef   : > { %1806 = vmatmul.mubr.f32.gmra.mrb[66].mxu0 %v1027_v50 }
 0x1f0   : > { %1810 = vmatprep.mubr.f32.mxu0 %v1035_v2 }
 0x1f3   : > { %1811 = vmatmul.mubr.f32.gmra.mrb[68].mxu0 %v1033_v0 }
 0x1f4   : > { %1815 = vmatprep.mubr.f32.mxu0 %v1041_v28  ;;  %5101 = vmatpush1.bf16.xpose.msra.mxu0 %v7562_v59 }
 0x1f7   : > { %1816 = vmatmul.mubr.f32.gmra.mrb[70].mxu0 %v1039_v39 }
 0x1f8   : > { %2050 = vmatprep.mubr.f32.mxu0 %v1160_v4 }
 0x1fb   : > { %2051 = vmatmul.mubr.f32.vlgmr.msra.gmra.mrb[72].mxu0 %v1158_v40 }
 0x1fc   : > { %2055 = vmatprep.mubr.f32.mxu0 %v1166_v16 }
 0x1ff   : > { %2056 = vmatmul.mubr.f32.gmra.mrb[74].mxu0 %v1164_v48 }
 0x200   : > { %2060 = vmatprep.mubr.f32.mxu0 %v1172_v61 }
 0x203   : > { %2061 = vmatmul.mubr.f32.gmra.mrb[76].mxu0 %v1170_v9 }
 0x204   : > { %2065 = vmatprep.mubr.f32.mxu0 %v1178_v1 }
 0x207   : > { %2066 = vmatmul.mubr.f32.gmra.mrb[78].mxu0 %v1176_v18  ;;  %v1235_v18 = vld [vmem:[#allocation8 + $0x1d8] sm:$0xff] }
 0x208   : > { %2332 = vmatprep.mubr.f32.mxu0 %v7572_v24 }
 0x29e   : > { %v1302_v10 = vpop.f32.mrb[48].mxu0 }
 0x29f   : > { %v1321_v6 = vmul.f32 0.5, %v1302_v10  ;;  %v1304_v22 = vpop.f32.mrb[49].mxu0 }
 0x2a1   : > { %v6367_v42 = vadd.f32 %v1321_v6, %v1228_v51 }
 0x2a2   : > { %v1307_v17 = vpop.f32.mrb[50].mxu0 }
 0x2a3   : > { %v1322_v44 = vmul.f32 0.5, %v1307_v17  ;;  %v1309_v15 = vpop.f32.mrb[51].mxu0  ;;  %v1329_v21 = vsel %vm547_vm0, %v6367_v42, -inf }
 0x2a4   : > { %1330 = vmax.xlane.f32.xlu0 %v1329_v21 }
 0x2a5   : > { %v6371_v32 = vadd.f32 %v1322_v44, %v1229_v43 }
 0x2a6   : > { %v1312_v60 = vpop.f32.mrb[52].mxu0 }
 0x2a7   : > { %v1323_v19 = vmul.f32 0.5, %v1312_v60  ;;  %v1314_v37 = vpop.f32.mrb[53].mxu0  ;;  %v1332_v25 = vsel %vm547_vm0, %v6371_v32, -inf }
 0x2a8   : > { %1333 = vmax.xlane.f32.xlu0 %v1332_v25 }
 0x2a9   : > { %v6375_v38 = vadd.f32 %v1323_v19, %v1230_v58 }
 0x2aa   : > { %v1317_v7 = vpop.f32.mrb[54].mxu0 }
 0x2ab   : > { %v1324_v29 = vmul.f32 0.5, %v1317_v7  ;;  %v1319_v8 = vpop.f32.mrb[55].mxu0  ;;  %v1335_v56 = vsel %vm547_vm0, %v6375_v38, -inf }
 0x2ac   : > { %1336 = vmax.xlane.f32.xlu1 %v1335_v56 }
 0x2ad   : > { %v6379_v12 = vadd.f32 %v1324_v29, %v1231_v23 }
 0x2ae   : > { %v1552_v27 = vpop.f32.mrb[56].mxu0 }
 0x2af   : > { %v1571_v50 = vmul.f32 0.5, %v1552_v27  ;;  %v1554_v57 = vpop.f32.mrb[57].mxu0  ;;  %v1338_v62 = vsel %vm547_vm0, %v6379_v12, -inf }
 0x2b0   : > { %1339 = vmax.xlane.f32.xlu1 %v1338_v62 }
 0x2b1   : > { %v6383_v2 = vadd.f32 %v1571_v50, %v1228_v51 }
 0x2b2   : > { %v1557_v3 = vpop.f32.mrb[58].mxu0 }
 0x2b3   : > { %v1572_v36 = vmul.f32 0.5, %v1557_v3  ;;  %v1559_v0 = vpop.f32.mrb[59].mxu0  ;;  %v1579_v31 = vsel %vm547_vm0, %v6383_v2, -inf }
 0x2b4   : > { %1580 = vmax.xlane.f32.xlu0 %v1579_v31 }
 0x2b5   : > { %v6387_v45 = vadd.f32 %v1572_v36, %v1229_v43 }
 0x2b6   : > { %v1562_v28 = vpop.f32.mrb[60].mxu0 }
 0x2b7   : > { %v1573_v33 = vmul.f32 0.5, %v1562_v28  ;;  %v1564_v46 = vpop.f32.mrb[61].mxu0  ;;  %v1582_v53 = vsel %vm547_vm0, %v6387_v45, -inf }
 0x2b8   : > { %1583 = vmax.xlane.f32.xlu1 %v1582_v53 }
 0x2b9   : > { %v6391_v59 = vadd.f32 %v1573_v33, %v1230_v58 }
 0x2ba   : > { %v1567_v30 = vpop.f32.mrb[62].mxu0 }
 0x2bb   : > { %v1574_v39 = vmul.f32 0.5, %v1567_v30  ;;  %v1569_v13 = vpop.f32.mrb[63].mxu0  ;;  %v1585_v47 = vsel %vm547_vm0, %v6391_v59, -inf }
 0x2bc   : > { %1586 = vmax.xlane.f32.xlu0 %v1585_v47 }
 0x2bd   : > { %v6395_v4 = vadd.f32 %v1574_v39, %v1231_v23 }
 0x2be   : > { %v1802_v52 = vpop.f32.mrb[64].mxu0 }
 0x2bf   : > { %v1821_v40 = vmul.f32 0.5, %v1802_v52  ;;  %v1804_v49 = vpop.f32.mrb[65].mxu0  ;;  %v1588_v26 = vsel %vm547_vm0, %v6395_v4, -inf }
 0x2c0   : > { %1589 = vmax.xlane.f32.xlu1 %v1588_v26 }
 0x2c1   : > { %v6399_v16 = vadd.f32 %v1821_v40, %v1232_v11 }
 0x2c2   : > { %v1807_v35 = vpop.f32.mrb[66].mxu0 }
 0x2c3   : > { %v1822_v48 = vmul.f32 0.5, %v1807_v35  ;;  %v1809_v55 = vpop.f32.mrb[67].mxu0  ;;  %v1829_v5 = vsel %vm547_vm0, %v6399_v16, -inf }
 0x2c4   : > { %1830 = vmax.xlane.f32.xlu0 %v1829_v5 }
 0x2c5   : > { %v6403_v61 = vadd.f32 %v1822_v48, %v1233_v34 }
 0x2c6   : > { %v1812_v54 = vpop.f32.mrb[68].mxu0 }
 0x2c7   : > { %v1823_v9 = vmul.f32 0.5, %v1812_v54  ;;  %v1814_v20 = vpop.f32.mrb[69].mxu0  ;;  %v1832_v41 = vsel %vm547_vm0, %v6403_v61, -inf }
 0x2c8   : > { %1833 = vmax.xlane.f32.xlu1 %v1832_v41 }
 0x2c9   : > { %v6407_v1 = vadd.f32 %v1823_v9, %v1234_v14 }
 0x2ca   : > { %v1817_v63 = vpop.f32.mrb[70].mxu0 }
 0x2cb   : > { %v1824_v10 = vmul.f32 0.5, %v1817_v63  ;;  %v1819_v51 = vpop.f32.mrb[71].mxu0  ;;  %v1835_v6 = vsel %vm547_vm0, %v6407_v1, -inf }
 0x2cc   : > { %1836 = vmax.xlane.f32.xlu0 %v1835_v6 }
 0x2cd   : > { %v6411_v22 = vadd.f32 %v1824_v10, %v1235_v18 }
 0x2ce   : > { %v2052_v17 = vpop.f32.mrb[72].mxu0 }
 0x2cf   : > { %v2071_v43 = vmul.f32 0.5, %v2052_v17  ;;  %v2054_v44 = vpop.f32.mrb[73].mxu0  ;;  %v1838_v15 = vsel %vm547_vm0, %v6411_v22, -inf }
 0x2d0   : > { %1839 = vmax.xlane.f32.xlu1 %v1838_v15 }
 0x2d1   : > { %v6415_v21 = vadd.f32 %v2071_v43, %v1232_v11 }
 0x2d2   : > { %v2057_v60 = vpop.f32.mrb[74].mxu0 }
 0x2d3   : > { %v2072_v58 = vmul.f32 0.5, %v2057_v60  ;;  %v2059_v19 = vpop.f32.mrb[75].mxu0  ;;  %v2079_v37 = vsel %vm547_vm0, %v6415_v21, -inf }
 0x2d4   : > { %2080 = vmax.xlane.f32.xlu0 %v2079_v37  ;;  %v1205_v37 = vpop.f32.mrb[40].mxu1 }
 0x2d5   : > { %v6419_v25 = vadd.f32 %v2072_v58, %v1233_v34 }
 0x2d6   : > { %v2062_v7 = vpop.f32.mrb[76].mxu0 }
 0x2d7   : > { %v2073_v23 = vmul.f32 0.5, %v2062_v7  ;;  %v2064_v29 = vpop.f32.mrb[77].mxu0  ;;  %v2082_v8 = vsel %vm547_vm0, %v6419_v25, -inf  ;;  %v1207_v7 = vpop.f32.mrb[41].mxu1 }
 0x2d8   : > { %2083 = vmax.xlane.f32.xlu1 %v2082_v8  ;;  %v1211_v8 = vpop.f32.mrb[42].mxu1 }
 0x2d9   : > { %v6423_v56 = vadd.f32 %v2073_v23, %v1234_v14 }
 0x2da   : > { %v2067_v27 = vpop.f32.mrb[78].mxu0 }
 0x2db   : > { %v2074_v50 = vmul.f32 0.5, %v2067_v27  ;;  %v2069_v57 = vpop.f32.mrb[79].mxu0  ;;  %v2085_v62 = vsel %vm547_vm0, %v6423_v56, -inf }
 0x2dc   : > { %2086 = vmax.xlane.f32.xlu0 %v2085_v62  ;;  %v905_v57 = vld [vmem:[#allocation9 + $0x298] sm:$0xff]  ;;  %v908_v62 = vld [vmem:[#allocation9 + $0x2b0] sm:$0xff] }
 0x2dd   : > { %v6427_v3 = vadd.f32 %v2074_v50, %v1235_v18  ;;  %v904_v50 = vld [vmem:[#allocation9 + $0x290] sm:$0xff] }
 0x2df   : > { %v2088_v36 = vsel %vm547_vm0, %v6427_v3, -inf }
 0x2e0   : > { %2089 = vmax.xlane.f32.xlu1 %v2088_v36  ;;  %v1213_v36 = vpop.f32.mrb[43].mxu1 }
 0x331   : > { %v1331_v0 = vpop.xlane.xlu0 %1330 }
 0x332   : > { %v1341_v31 = vsub.f32 %v6367_v42, %v1331_v0 }
 0x334   : > { %v1345_v28 = vmul.f32 1.442695, %v1341_v31  ;;  %v1208_v31 = vadd.f32 %v1207_v7, %v905_v57 }
 0x335   : > { %v1334_v33 = vpop.xlane.xlu0 %1333 }
 0x336   : > { %5327 = vpow2.f32 %v1345_v28  ;;  %v1342_v46 = vsub.f32 %v6371_v32, %v1334_v33  ;;  %v909_v28 = vld [vmem:[#allocation9 + $0x2b8] sm:$0xff]  ;;  %v1217_v33 = vpop.f32.mrb[44].mxu1 }
 0x338   : > { %v1347_v53 = vmul.f32 1.442695, %v1342_v46  ;;  %v6477_v46 = vadd.f32 %v1211_v8, %v908_v62 }
 0x339   : > { %v1337_v30 = vpop.xlane.xlu1 %1336 }
 0x33a   : > { %5329 = vpow2.f32 %v1347_v53  ;;  %v1343_v39 = vsub.f32 %v6375_v38, %v1337_v30  ;;  %v1214_v53 = vadd.f32 %v1213_v36, %v909_v28  ;;  %v1219_v30 = vpop.f32.mrb[45].mxu1 }
 0x33c   : > { %v1349_v13 = vmul.f32 1.442695, %v1343_v39 }
 0x33d   : > { %v1340_v47 = vpop.xlane.xlu1 %1339 }
 0x33e   : > { %5331 = vpow2.f32 %v1349_v13  ;;  %v1344_v52 = vsub.f32 %v6379_v12, %v1340_v47  ;;  %v1223_v47 = vpop.f32.mrb[46].mxu1 }
 0x340   : > { %v6435_v11 = vpop.eup %5327  ;;  %v1351_v40 = vmul.f32 1.442695, %v1344_v52 }
 0x341   : > { %v1581_v49 = vpop.xlane.xlu0 %1580  ;;  %v1353_v42 = vsel %vm547_vm0, %v6435_v11, 0.0 }
 0x342   : > { %5333 = vpow2.f32 %v1351_v40  ;;  %v1591_v32 = vsub.f32 %v6383_v2, %v1581_v49  ;;  %1354 = vadd.xlane.f32.xlu0 %v1353_v42  ;;  %v5070_v49 = vpack.c.bf16 %v1214_v53, %v1208_v31  ;;  %v913_v42 = vld [vmem:[#allocation9 + $0x2d8] sm:$0xff] }
 0x344   : > { %v6440_v26 = vpop.eup %5329  ;;  %v1595_v35 = vmul.f32 1.442695, %v1591_v32  ;;  %v917_v32 = vld [vmem:[#allocation9 + $0x2f8] sm:$0xff]  ;;  %5071 = vmatprep.subr.bf16.mxu1 %v5070_v49 }
 0x345   : > { %v1584_v38 = vpop.xlane.xlu1 %1583  ;;  %v1356_v34 = vsel %vm547_vm0, %v6440_v26, 0.0 }
 0x346   : > { %5335 = vpow2.f32 %v1595_v35  ;;  %v1592_v12 = vsub.f32 %v6387_v45, %v1584_v38  ;;  %1357 = vadd.xlane.f32.xlu1 %v1356_v34  ;;  %v1225_v35 = vpop.f32.mrb[47].mxu1  ;;  %v912_v34 = vld [vmem:[#allocation9 + $0x2d0] sm:$0xff] }
 0x348   : > { %v6445_v48 = vpop.eup %5331  ;;  %v1597_v55 = vmul.f32 1.442695, %v1592_v12  ;;  %v6486_v12 = vadd.f32 %v1219_v30, %v913_v42 }
 0x349   : > { %v1587_v5 = vpop.xlane.xlu0 %1586  ;;  %v1359_v54 = vsel %vm547_vm0, %v6445_v48, 0.0 }
 0x34a   : > { %5337 = vpow2.f32 %v1597_v55  ;;  %v1593_v2 = vsub.f32 %v6391_v59, %v1587_v5  ;;  %1360 = vadd.xlane.f32.xlu0 %v1359_v54  ;;  %v916_v55 = vld [vmem:[#allocation9 + $0x2f0] sm:$0xff]  ;;  %v6488_v5 = vadd.f32 %v1225_v35, %v917_v32  ;;  %v6490_v54 = vadd.f32 %v1217_v33, %v912_v34 }
 0x34c   : > { %v6450_v14 = vpop.eup %5333  ;;  %v1599_v9 = vmul.f32 1.442695, %v1593_v2  ;;  %v6492_v2 = vadd.f32 %v1223_v47, %v916_v55 }
 0x34d   : > { %v1590_v20 = vpop.xlane.xlu1 %1589  ;;  %v1362_v41 = vsel %vm547_vm0, %v6450_v14, 0.0 }
 0x34e   : > { %5339 = vpow2.f32 %v1599_v9  ;;  %v1594_v45 = vsub.f32 %v6395_v4, %v1590_v20  ;;  %1363 = vadd.xlane.f32.xlu1 %v1362_v41  ;;  %v5074_v41 = vpack.c.bf16 %v6488_v5, %v6486_v12 }
 0x350   : > { %v6455_v63 = vpop.eup %5335  ;;  %v1601_v18 = vmul.f32 1.442695, %v1594_v45 }
 0x351   : > { %v1831_v10 = vpop.xlane.xlu0 %1830  ;;  %v1603_v51 = vsel %vm547_vm0, %v6455_v63, 0.0 }
 0x352   : > { %5341 = vpow2.f32 %v1601_v18  ;;  %v1841_v59 = vsub.f32 %v6399_v16, %v1831_v10  ;;  %1604 = vadd.xlane.f32.xlu0 %v1603_v51  ;;  %v5076_v18 = vpack.c.bf16 %v6492_v2, %v6490_v54 }
 0x354   : > { %v6460_v6 = vpop.eup %5337  ;;  %v1845_v17 = vmul.f32 1.442695, %v1841_v59 }
 0x355   : > { %v1834_v43 = vpop.xlane.xlu1 %1833  ;;  %v1606_v44 = vsel %vm547_vm0, %v6460_v6, 0.0 }
 0x356   : > { %5343 = vpow2.f32 %v1845_v17  ;;  %v1842_v4 = vsub.f32 %v6403_v61, %v1834_v43  ;;  %1607 = vadd.xlane.f32.xlu1 %v1606_v44 }
 0x358   : > { %v6465_v15 = vpop.eup %5339  ;;  %v1847_v60 = vmul.f32 1.442695, %v1842_v4 }
 0x359   : > { %v1837_v58 = vpop.xlane.xlu0 %1836  ;;  %v1609_v19 = vsel %vm547_vm0, %v6465_v15, 0.0 }
 0x35a   : > { %5345 = vpow2.f32 %v1847_v60  ;;  %v1843_v16 = vsub.f32 %v6407_v1, %v1837_v58  ;;  %1610 = vadd.xlane.f32.xlu0 %v1609_v19  ;;  %v6475_v1 = vadd.f32 %v1205_v37, %v904_v50 }
 0x35c   : > { %v6470_v23 = vpop.eup %5341  ;;  %v1849_v29 = vmul.f32 1.442695, %v1843_v16 }
 0x35d   : > { %v1840_v27 = vpop.xlane.xlu1 %1839  ;;  %v1612_v61 = vsel %vm547_vm0, %v6470_v23, 0.0 }
 0x35e   : > { %5347 = vpow2.f32 %v1849_v29  ;;  %v1844_v0 = vsub.f32 %v6411_v22, %v1840_v27  ;;  %1613 = vadd.xlane.f32.xlu1 %v1612_v61  ;;  %v5072_v22 = vpack.c.bf16 %v6477_v46, %v6475_v1 }
 0x360   : > { %v6479_v39 = vpop.eup %5343  ;;  %v1851_v13 = vmul.f32 1.442695, %v1844_v0 }
 0x361   : > { %v2081_v52 = vpop.xlane.xlu0 %2080  ;;  %v1853_v40 = vsel %vm547_vm0, %v6479_v39, 0.0 }
 0x362   : > { %5349 = vpow2.f32 %v1851_v13  ;;  %v2091_v38 = vsub.f32 %v6415_v21, %v2081_v52  ;;  %1854 = vadd.xlane.f32.xlu0 %v1853_v40 }
 0x364   : > { %v6494_v9 = vpop.eup %5345  ;;  %v2095_v20 = vmul.f32 1.442695, %v2091_v38 }
 0x365   : > { %v2084_v45 = vpop.xlane.xlu1 %2083  ;;  %v1856_v21 = vsel %vm547_vm0, %v6494_v9, 0.0 }
 0x366   : > { %5351 = vpow2.f32 %v2095_v20  ;;  %v2092_v10 = vsub.f32 %v6419_v25, %v2084_v45  ;;  %1857 = vadd.xlane.f32.xlu1 %v1856_v21 }
 0x368   : > { %v6503_v51 = vpop.eup %5347  ;;  %v2097_v59 = vmul.f32 1.442695, %v2092_v10 }
 0x369   : > { %v2087_v17 = vpop.xlane.xlu0 %2086  ;;  %v1859_v43 = vsel %vm547_vm0, %v6503_v51, 0.0 }
 0x36a   : > { %5353 = vpow2.f32 %v2097_v59  ;;  %v2093_v44 = vsub.f32 %v6423_v56, %v2087_v17  ;;  %1860 = vadd.xlane.f32.xlu0 %v1859_v43 }
 0x36c   : > { %v6508_v4 = vpop.eup %5349  ;;  %v2099_v60 = vmul.f32 1.442695, %v2093_v44 }
 0x36d   : > { %v2090_v58 = vpop.xlane.xlu1 %2089  ;;  %v1862_v19 = vsel %vm547_vm0, %v6508_v4, 0.0 }
 0x36e   : > { %5355 = vpow2.f32 %v2099_v60  ;;  %v2094_v25 = vsub.f32 %v6427_v3, %v2090_v58  ;;  %1863 = vadd.xlane.f32.xlu1 %v1862_v19 }
 0x370   : > { %v6513_v16 = vpop.eup %5351  ;;  %v2101_v37 = vmul.f32 1.442695, %v2094_v25  ;;  %v7577_v25 = vld [vmem:[#allocation19_spill] sm:$0xff] }
 0x371   : > { %v2103_v7 = vsel %vm547_vm0, %v6513_v16, 0.0 }
 0x372   : > { %5357 = vpow2.f32 %v2101_v37  ;;  %2104 = vadd.xlane.f32.xlu0 %v2103_v7 }
 0x374   : > { %v6517_v56 = vpop.eup %5353 }
 0x375   : > { %v2106_v29 = vsel %vm547_vm0, %v6517_v56, 0.0 }
 0x376   : > { %2107 = vadd.xlane.f32.xlu1 %v2106_v29 }
 0x378   : > { %v6521_v8 = vpop.eup %5355 }
 0x379   : > { %v2109_v3 = vsel %vm547_vm0, %v6521_v8, 0.0 }
 0x37a   : > { %2110 = vadd.xlane.f32.xlu0 %v2109_v3  ;;  %v7579_v3 = vld [vmem:[#allocation30_spill] sm:$0xff] }
 0x37c   : > { %v6525_v27 = vpop.eup %5357 }
 0x37d   : > { %v2112_v61 = vsel %vm547_vm0, %v6525_v27, 0.0 }
 0x37e   : > { %2113 = vadd.xlane.f32.xlu1 %v2112_v61  ;;  %v7580_v61 = vld [vmem:[#allocation29_spill] sm:$0xff] }
 0x3cf   : > { %v1355_v50 = vpop.xlane.xlu0 %1354 }
 0x3d0   : > { %5359 = vrcp.f32 %v1355_v50 }
 0x3d3   : > { %v1358_v57 = vpop.xlane.xlu1 %1357 }
 0x3d4   : > { %5361 = vrcp.f32 %v1358_v57 }
 0x3d7   : > { %v1361_v62 = vpop.xlane.xlu0 %1360 }
 0x3d8   : > { %5363 = vrcp.f32 %v1361_v62 }
 0x3da   : > { %v5360_v36 = vpop.eup %5359 }
 0x3db   : > { %v1369_v0 = vmul.f32 %v5360_v36, %v1355_v50  ;;  %v1364_v31 = vpop.xlane.xlu1 %1363 }
 0x3dc   : > { %5365 = vrcp.f32 %v1364_v31 }
 0x3dd   : > { %v1373_v28 = vsub.f32 2.0, %v1369_v0  ;;  %v7582_v0 = vld [vmem:[#allocation28_spill] sm:$0xff] }
 0x3de   : > { %v5362_v33 = vpop.eup %5361 }
 0x3df   : > { %v1377_v53 = vmul.f32 %v5360_v36, %v1373_v28  ;;  %v1370_v30 = vmul.f32 %v5362_v33, %v1358_v57  ;;  %v1605_v13 = vpop.xlane.xlu0 %1604 }
 0x3e0   : > { %5367 = vrcp.f32 %v1605_v13 }
 0x3e1   : > { %v1381_v47 = vmul.f32 %v6435_v11, %v1377_v53  ;;  %v1374_v52 = vsub.f32 2.0, %v1370_v30  ;;  %v7585_v53 = vld [vmem:[#allocation26_spill] sm:$0xff]  ;;  %v7586_v30 = vld [vmem:[#allocation24_spill] sm:$0xff] }
 0x3e2   : > { %v5364_v40 = vpop.eup %5363 }
 0x3e3   : > { %v1378_v49 = vmul.f32 %v5362_v33, %v1374_v52  ;;  %v1371_v42 = vmul.f32 %v5364_v40, %v1361_v62  ;;  %4800 = vmatmul.mubr.msk.f32.vlgmr.msra.gmra.mrb[48].mxu1 %vm547_vm0, %v1381_v47  ;;  %v1608_v32 = vpop.xlane.xlu1 %1607 }
 0x3e4   : > { %5073 = vmatpush1.bf16.msra.mxu1 %v5072_v22  ;;  %5369 = vrcp.f32 %v1608_v32  ;;  %1467 = vmatprep.mubr.f32.mxu1 %v7572_v24  ;;  %v7573_v22 = vld [vmem:[#allocation22_spill] sm:$0xff] }
 0x3e5   : > { %v1382_v35 = vmul.f32 %v6440_v26, %v1378_v49  ;;  %v1375_v38 = vsub.f32 2.0, %v1371_v42  ;;  %5075 = vmatprep.subr.bf16.mxu1 %v5074_v41  ;;  %v7574_v26 = vld [vmem:[#allocation21_spill] sm:$0xff] }
 0x3e6   : > { %v5366_v34 = vpop.eup %5365  ;;  %v7575_v5 = vpack.c.bf16 %v7573_v22, %v7574_v26  ;;  %v7589_v26 = vld [vmem:[#allocation23_spill] sm:$0xff] }
 0x3e7   : > { %v1379_v11 = vmul.f32 %v5364_v40, %v1375_v38  ;;  %v1372_v12 = vmul.f32 %v5366_v34, %v1364_v31  ;;  %v1611_v55 = vpop.xlane.xlu0 %1610  ;;  %4801 = vmatmul.mubr.msk.f32.gmra.mrb[50].mxu1 %vm547_vm0, %v1382_v35  ;;  %v7583_v31 = vld [vmem:[#allocation27_spill] sm:$0xff] }
 0x3e8   : > { %5077 = vmatpush1.bf16.msra.mxu1 %v5076_v18  ;;  %5371 = vrcp.f32 %v1611_v55  ;;  %1473 = vmatprep.mubr.f32.mxu1 %v7572_v24  ;;  %v7584_v28 = vpack.c.bf16 %v7582_v0, %v7583_v31 }
 0x3e9   : > { %v1383_v1 = vmul.f32 %v6445_v48, %v1379_v11  ;;  %v1376_v46 = vsub.f32 2.0, %v1372_v12  ;;  %5087 = vmatprep.subr.bf16.mxu1 %v7575_v5 }
 0x3ea   : > { %v5368_v20 = vpop.eup %5367 }
 0x3eb   : > { %v1380_v41 = vmul.f32 %v5366_v34, %v1376_v46  ;;  %v1619_v45 = vmul.f32 %v5368_v20, %v1605_v13  ;;  %4802 = vmatmul.mubr.msk.f32.gmra.mrb[52].mxu1 %vm547_vm0, %v1383_v1  ;;  %v1614_v21 = vpop.xlane.xlu1 %1613  ;;  %v7587_v13 = vpack.c.bf16 %v7585_v53, %v7586_v30 }
 0x3ec   : > { %5373 = vrcp.f32 %v1614_v21  ;;  %1479 = vmatprep.mubr.f32.mxu1 %v7572_v24 }
 0x3ed   : > { %v1384_v54 = vmul.f32 %v6450_v14, %v1380_v41  ;;  %v1623_v2 = vsub.f32 2.0, %v1619_v45  ;;  %v7576_v14 = vld [vmem:[#allocation20_spill] sm:$0xff]  ;;  %v7591_v45 = vld [vmem:[#allocation34_spill] sm:$0xff] }
 0x3ee   : > { %v5370_v18 = vpop.eup %5369  ;;  %v7578_v37 = vpack.c.bf16 %v7576_v14, %v7577_v25 }
 0x3ef   : > { %v1627_v10 = vmul.f32 %v5368_v20, %v1623_v2  ;;  %v1620_v48 = vmul.f32 %v5370_v18, %v1608_v32  ;;  %v1855_v59 = vpop.xlane.xlu0 %1854  ;;  %4803 = vmatmul.mubr.msk.f32.gmra.mrb[54].mxu1 %vm547_vm0, %v1384_v54 }
 0x3f0   : > { %5375 = vrcp.f32 %v1855_v59  ;;  %1711 = vmatprep.mubr.f32.mxu1 %v7572_v24 }
 0x3f1   : > { %v1631_v17 = vmul.f32 %v6455_v63, %v1627_v10  ;;  %v1624_v43 = vsub.f32 2.0, %v1620_v48  ;;  %v7581_v63 = vpack.c.bf16 %v7579_v3, %v7580_v61  ;;  %v7594_v48 = vld [vmem:[#allocation33_spill] sm:$0xff] }
 0x3f2   : > { %v5372_v44 = vpop.eup %5371 }
 0x3f3   : > { %v1628_v60 = vmul.f32 %v5370_v18, %v1624_v43  ;;  %v1621_v58 = vmul.f32 %v5372_v44, %v1611_v55  ;;  %4804 = vmatmul.mubr.msk.f32.vlgmr.msra.gmra.mrb[56].mxu1 %vm547_vm0, %v1631_v17  ;;  %v1858_v19 = vpop.xlane.xlu1 %1857 }
 0x3f4   : > { %5089 = vmatpush1.bf16.msra.mxu1 %v7578_v37  ;;  %5377 = vrcp.f32 %v1858_v19  ;;  %1717 = vmatprep.mubr.f32.mxu1 %v7572_v24 }
 0x3f5   : > { %v1632_v7 = vmul.f32 %v6460_v6, %v1628_v60  ;;  %v1625_v29 = vsub.f32 2.0, %v1621_v58  ;;  %5091 = vmatprep.subr.bf16.mxu1 %v7581_v63 }
 0x3f6   : > { %v5374_v50 = vpop.eup %5373 }
 0x3f7   : > { %v1629_v57 = vmul.f32 %v5372_v44, %v1625_v29  ;;  %v1622_v62 = vmul.f32 %v5374_v50, %v1614_v21  ;;  %v1861_v36 = vpop.xlane.xlu0 %1860  ;;  %4805 = vmatmul.mubr.msk.f32.gmra.mrb[58].mxu1 %vm547_vm0, %v1632_v7  ;;  %v7592_v21 = vld [vmem:[#allocation32_spill] sm:$0xff] }
 0x3f8   : > { %5379 = vrcp.f32 %v1861_v36  ;;  %5093 = vmatpush1.bf16.msra.mxu1 %v7584_v28  ;;  %1723 = vmatprep.mubr.f32.mxu1 %v7572_v24 }
 0x3f9   : > { %v1633_v6 = vmul.f32 %v6465_v15, %v1629_v57  ;;  %v1626_v33 = vsub.f32 2.0, %v1622_v62  ;;  %5103 = vmatprep.subr.bf16.mxu1 %v7587_v13 }
 0x3fa   : > { %v5376_v47 = vpop.eup %5375 }
 0x3fb   : > { %v1630_v52 = vmul.f32 %v5374_v50, %v1626_v33  ;;  %v1869_v40 = vmul.f32 %v5376_v47, %v1855_v59  ;;  %4806 = vmatmul.mubr.msk.f32.gmra.mrb[60].mxu1 %vm547_vm0, %v1633_v6  ;;  %v1864_v49 = vpop.xlane.xlu1 %1863  ;;  %v7595_v59 = vld [vmem:[#allocation31_spill] sm:$0xff] }
 0x3fc   : > { %5381 = vrcp.f32 %v1864_v49  ;;  %1729 = vmatprep.mubr.f32.mxu1 %v7572_v24  ;;  %v7596_v17 = vpack.c.bf16 %v7594_v48, %v7595_v59 }
 0x3fd   : > { %v1634_v42 = vmul.f32 %v6470_v23, %v1630_v52  ;;  %v1873_v32 = vsub.f32 2.0, %v1869_v40  ;;  %v7588_v23 = vld [vmem:[#allocation25_spill] sm:$0xff] }
 0x3fe   : > { %v5378_v35 = vpop.eup %5377  ;;  %v7590_v5 = vpack.c.bf16 %v7588_v23, %v7589_v26 }
 0x3ff   : > { %v1877_v38 = vmul.f32 %v5376_v47, %v1873_v32  ;;  %v1870_v15 = vmul.f32 %v5378_v35, %v1858_v19  ;;  %v2105_v34 = vpop.xlane.xlu0 %2104  ;;  %4807 = vmatmul.mubr.msk.f32.gmra.mrb[62].mxu1 %vm547_vm0, %v1634_v42 }
 0x400   : > { %5383 = vrcp.f32 %v2105_v34  ;;  %1961 = vmatprep.mubr.f32.mxu1 %v7572_v24 }
 0x401   : > { %v1881_v11 = vmul.f32 %v6479_v39, %v1877_v38  ;;  %v1874_v12 = vsub.f32 2.0, %v1870_v15  ;;  %v7593_v39 = vpack.c.bf16 %v7591_v45, %v7592_v21  ;;  %v2236_v38 = vld [vmem:[#allocation8 + $0xc0] sm:$0xff] }
 0x402   : > { %v5380_v55 = vpop.eup %5379 }
 0x403   : > { %v1878_v1 = vmul.f32 %v5378_v35, %v1874_v12  ;;  %v1871_v46 = vmul.f32 %v5380_v55, %v1861_v36  ;;  %4808 = vmatmul.mubr.msk.f32.vlgmr.msra.gmra.mrb[64].mxu1 %vm547_vm0, %v1881_v11  ;;  %v2108_v22 = vpop.xlane.xlu1 %2107  ;;  %v2237_v12 = vld [vmem:[#allocation8 + $0xc8] sm:$0xff] }
 0x404   : > { %5105 = vmatpush1.bf16.msra.mxu1 %v7590_v5  ;;  %5385 = vrcp.f32 %v2108_v22  ;;  %1967 = vmatprep.mubr.f32.mxu1 %v7572_v24 }
 0x405   : > { %v1882_v20 = vmul.f32 %v6494_v9, %v1878_v1  ;;  %v1875_v41 = vsub.f32 2.0, %v1871_v46  ;;  %5107 = vmatprep.subr.bf16.mxu1 %v7593_v39 }
 0x406   : > { %v5382_v54 = vpop.eup %5381 }
 0x407   : > { %v1879_v2 = vmul.f32 %v5380_v55, %v1875_v41  ;;  %v1872_v18 = vmul.f32 %v5382_v54, %v1864_v49  ;;  %v2111_v10 = vpop.xlane.xlu0 %2110  ;;  %4809 = vmatmul.mubr.msk.f32.gmra.mrb[66].mxu1 %vm547_vm0, %v1882_v20  ;;  %v2239_v20 = vld [vmem:[#allocation8 + $0xd8] sm:$0xff] }
 0x408   : > { %5387 = vrcp.f32 %v2111_v10  ;;  %5109 = vmatpush1.bf16.msra.mxu1 %v7596_v17  ;;  %1973 = vmatprep.mubr.f32.mxu1 %v7572_v24 }
 0x409   : > { %v1883_v9 = vmul.f32 %v6503_v51, %v1879_v2  ;;  %v1876_v43 = vsub.f32 2.0, %v1872_v18 }
 0x40a   : > { %v5384_v44 = vpop.eup %5383 }
 0x40b   : > { %v1880_v60 = vmul.f32 %v5382_v54, %v1876_v43  ;;  %v2119_v58 = vmul.f32 %v5384_v44, %v2105_v34  ;;  %4810 = vmatmul.mubr.msk.f32.gmra.mrb[68].mxu1 %vm547_vm0, %v1883_v9  ;;  %v2114_v19 = vpop.xlane.xlu1 %2113 }
 0x40c   : > { %5389 = vrcp.f32 %v2114_v19  ;;  %1979 = vmatprep.mubr.f32.mxu1 %v7572_v24 }
 0x40d   : > { %v1884_v14 = vmul.f32 %v6508_v4, %v1880_v60  ;;  %v2123_v25 = vsub.f32 2.0, %v2119_v58  ;;  %v2462_v58 = vld [vmem:[#allocation8 + $0xe0] sm:$0xff] }
 0x40e   : > { %v5386_v37 = vpop.eup %5385 }
 0x40f   : > { %v2127_v7 = vmul.f32 %v5384_v44, %v2123_v25  ;;  %v2120_v29 = vmul.f32 %v5386_v37, %v2108_v22  ;;  %4811 = vmatmul.mubr.msk.f32.gmra.mrb[70].mxu1 %vm547_vm0, %v1884_v14  ;;  %v2238_v22 = vld [vmem:[#allocation8 + $0xd0] sm:$0xff] }
 0x410   : > { %2211 = vmatprep.mubr.f32.mxu1 %v7572_v24 }
 0x411   : > { %v2131_v51 = vmul.f32 %v6513_v16, %v2127_v7  ;;  %v2124_v3 = vsub.f32 2.0, %v2120_v29 }
 0x412   : > { %v5388_v61 = vpop.eup %5387 }
 0x413   : > { %v2128_v63 = vmul.f32 %v5386_v37, %v2124_v3  ;;  %v2121_v50 = vmul.f32 %v5388_v61, %v2111_v10  ;;  %4812 = vmatmul.mubr.msk.f32.vlgmr.msra.gmra.mrb[72].mxu1 %vm547_vm0, %v2131_v51  ;;  %v2463_v37 = vld [vmem:[#allocation8 + $0xe8] sm:$0xff]  ;;  %v2464_v3 = vld [vmem:[#allocation8 + $0xf0] sm:$0xff] }
 0x414   : > { %2217 = vmatprep.mubr.f32.mxu1 %v7572_v24 }
 0x415   : > { %v2132_v4 = vmul.f32 %v6517_v56, %v2128_v63  ;;  %v2125_v57 = vsub.f32 2.0, %v2121_v50 }
 0x416   : > { %v5390_v62 = vpop.eup %5389 }
 0x417   : > { %v2129_v36 = vmul.f32 %v5388_v61, %v2125_v57  ;;  %v2122_v0 = vmul.f32 %v5390_v62, %v2114_v19  ;;  %4813 = vmatmul.mubr.msk.f32.gmra.mrb[74].mxu1 %vm547_vm0, %v2132_v4  ;;  %v2465_v4 = vld [vmem:[#allocation8 + $0xf8] sm:$0xff] }
 0x418   : > { %2223 = vmatprep.mubr.f32.mxu1 %v7572_v24 }
 0x419   : > { %v2133_v16 = vmul.f32 %v6521_v8, %v2129_v36  ;;  %v2126_v31 = vsub.f32 2.0, %v2122_v0  ;;  %v2241_v36 = vld [vmem:[#allocation9 + $0x308] sm:$0xff] }
 0x41b   : > { %v2130_v28 = vmul.f32 %v5390_v62, %v2126_v31  ;;  %4814 = vmatmul.mubr.msk.f32.gmra.mrb[76].mxu1 %vm547_vm0, %v2133_v16  ;;  %v2240_v62 = vld [vmem:[#allocation9 + $0x300] sm:$0xff] }
 0x41c   : > { %2229 = vmatprep.mubr.f32.mxu1 %v7572_v24 }
 0x41d   : > { %v2134_v6 = vmul.f32 %v6525_v27, %v2130_v28 }
 0x41f   : > { %4815 = vmatmul.mubr.msk.f32.gmra.mrb[78].mxu1 %vm547_vm0, %v2134_v6  ;;  %v2244_v6 = vld [vmem:[#allocation9 + $0x320] sm:$0xff] }
 0x420   : > { %2421 = vmatprep.mubr.f32.mxu1 %v7572_v24 }
 0x4b6   : > { %v1463_v56 = vpop.f32.mrb[48].mxu1 }
 0x4b7   : > { %v1465_v33 = vpop.f32.mrb[49].mxu1 }
 0x4ba   : > { %v1469_v53 = vpop.f32.mrb[50].mxu1 }
 0x4bb   : > { %v5112_v30 = vpack.c.bf16 %v1469_v53, %v1463_v56  ;;  %v1471_v13 = vpop.f32.mrb[51].mxu1  ;;  %v6638_v56 = vld [vmem:[%s5994_s7] sm:$0xff]  ;;  %v2245_v53 = vld [vmem:[#allocation9 + $0x328] sm:$0xff] }
 0x4bc   : > { %v5110_v47 = vpack.c.bf16 %v1471_v13, %v1465_v33 }
 0x4be   : > { %v1475_v52 = vpop.f32.mrb[52].mxu1  ;;  %5111 = vmatprep.subr.bf16.mxu0 %v5110_v47 }
 0x4bf   : > { %v1477_v8 = vpop.f32.mrb[53].mxu1  ;;  %5113 = vmatpush1.bf16.msra.mxu0 %v5112_v30  ;;  %v6644_v30 = vld [vmem:[%s5994_s7 + $0x8] sm:$0xff] }
 0x4c2   : > { %v1481_v40 = vpop.f32.mrb[54].mxu1 }
 0x4c3   : > { %v5116_v49 = vpack.c.bf16 %v1481_v40, %v1475_v52  ;;  %v1483_v42 = vpop.f32.mrb[55].mxu1 }
 0x4c4   : > { %v5114_v32 = vpack.c.bf16 %v1483_v42, %v1477_v8 }
 0x4c6   : > { %v1713_v35 = vpop.f32.mrb[56].mxu1  ;;  %5115 = vmatprep.subr.bf16.mxu0 %v5114_v32  ;;  %v6652_v32 = vld [vmem:[%s5994_s7 + $0x20] sm:$0xff] }
 0x4c7   : > { %v1715_v27 = vpop.f32.mrb[57].mxu1  ;;  %5117 = vmatpush1.bf16.msra.mxu0 %v5116_v49  ;;  %v2248_v49 = vld [vmem:[#allocation9 + $0x340] sm:$0xff] }
 0x4ca   : > { %v1719_v15 = vpop.f32.mrb[58].mxu1  ;;  %4816 = vmatmul.mubr.msk.f32.vlgmr.msra.gmra.mrb[80].mxu0 %vm547_vm0, %v2236_v38 }
 0x4cb   : > { %v5120_v34 = vpack.c.bf16 %v1719_v15, %v1713_v35  ;;  %v1721_v11 = vpop.f32.mrb[59].mxu1  ;;  %2338 = vmatprep.mubr.f32.mxu0 %v7572_v24 }
 0x4cc   : > { %v5118_v55 = vpack.c.bf16 %v1721_v11, %v1715_v27  ;;  %v2249_v27 = vld [vmem:[#allocation9 + $0x348] sm:$0xff] }
 0x4ce   : > { %v1725_v1 = vpop.f32.mrb[60].mxu1  ;;  %4817 = vmatmul.mubr.msk.f32.gmra.mrb[82].mxu0 %vm547_vm0, %v2237_v12  ;;  %5119 = vmatprep.subr.bf16.mxu1 %v5118_v55 }
 0x4cf   : > { %v1727_v46 = vpop.f32.mrb[61].mxu1  ;;  %5121 = vmatpush1.bf16.msra.mxu1 %v5120_v34  ;;  %2344 = vmatprep.mubr.f32.mxu0 %v7572_v24 }
 0x4d2   : > { %v1731_v23 = vpop.f32.mrb[62].mxu1  ;;  %4818 = vmatmul.mubr.msk.f32.gmra.mrb[84].mxu0 %vm547_vm0, %v2238_v22 }
 0x4d3   : > { %v5124_v26 = vpack.c.bf16 %v1731_v23, %v1725_v1  ;;  %v1733_v5 = vpop.f32.mrb[63].mxu1  ;;  %2350 = vmatprep.mubr.f32.mxu0 %v7572_v24  ;;  %v2252_v1 = vld [vmem:[#allocation9 + $0x360] sm:$0xff] }
 0x4d4   : > { %v5122_v41 = vpack.c.bf16 %v1733_v5, %v1727_v46  ;;  %v6672_v5 = vld [vmem:[%s5994_s7 + $0x48] sm:$0xff] }
 0x4d6   : > { %v1963_v45 = vpop.f32.mrb[64].mxu1  ;;  %4819 = vmatmul.mubr.msk.f32.gmra.mrb[86].mxu0 %vm547_vm0, %v2239_v20  ;;  %5123 = vmatprep.subr.bf16.mxu1 %v5122_v41 }
 0x4d7   : > { %v1965_v21 = vpop.f32.mrb[65].mxu1  ;;  %5125 = vmatpush1.bf16.msra.mxu1 %v5124_v26  ;;  %2558 = vmatprep.mubr.f32.mxu0 %v7572_v24  ;;  %v2253_v26 = vld [vmem:[#allocation9 + $0x368] sm:$0xff] }
 0x4da   : > { %v1969_v39 = vpop.f32.mrb[66].mxu1  ;;  %4820 = vmatmul.mubr.msk.f32.vlgmr.msra.gmra.mrb[80].mxu1 %vm547_vm0, %v2236_v38  ;;  %v6658_v38 = vld [vmem:[%s5994_s7 + $0x28] sm:$0xff] }
 0x4db   : > { %v5128_v54 = vpack.c.bf16 %v1969_v39, %v1963_v45  ;;  %v1971_v2 = vpop.f32.mrb[67].mxu1  ;;  %2427 = vmatprep.mubr.f32.mxu1 %v7572_v24 }
 0x4dc   : > { %v5126_v18 = vpack.c.bf16 %v1971_v2, %v1965_v21  ;;  %v2242_v2 = vld [vmem:[#allocation9 + $0x310] sm:$0xff] }
 0x4de   : > { %v1975_v10 = vpop.f32.mrb[68].mxu1  ;;  %4821 = vmatmul.mubr.msk.f32.gmra.mrb[82].mxu1 %vm547_vm0, %v2237_v12  ;;  %5127 = vmatprep.subr.bf16.mxu0 %v5126_v18  ;;  %v6680_v18 = vld [vmem:[%s5994_s7 + $0x60] sm:$0xff] }
 0x4df   : > { %v1977_v48 = vpop.f32.mrb[69].mxu1  ;;  %5129 = vmatpush1.bf16.msra.mxu0 %v5128_v54  ;;  %2433 = vmatprep.mubr.f32.mxu1 %v7572_v24 }
 0x4e2   : > { %v1981_v59 = vpop.f32.mrb[70].mxu1  ;;  %4822 = vmatmul.mubr.msk.f32.gmra.mrb[84].mxu1 %vm547_vm0, %v2238_v22  ;;  %v6666_v22 = vld [vmem:[%s5994_s7 + $0x40] sm:$0xff] }
 0x4e3   : > { %v5132_v17 = vpack.c.bf16 %v1981_v59, %v1975_v10  ;;  %v1983_v9 = vpop.f32.mrb[71].mxu1  ;;  %2439 = vmatprep.mubr.f32.mxu1 %v7572_v24  ;;  %v6686_v59 = vld [vmem:[%s5994_s7 + $0x68] sm:$0xff] }
 0x4e4   : > { %v5130_v43 = vpack.c.bf16 %v1983_v9, %v1977_v48  ;;  %v2243_v48 = vld [vmem:[#allocation9 + $0x318] sm:$0xff] }
 0x4e6   : > { %v2213_v44 = vpop.f32.mrb[72].mxu1  ;;  %4823 = vmatmul.mubr.msk.f32.gmra.mrb[86].mxu1 %vm547_vm0, %v2239_v20  ;;  %5131 = vmatprep.subr.bf16.mxu0 %v5130_v43 }
 0x4e7   : > { %v2215_v60 = vpop.f32.mrb[73].mxu1  ;;  %5133 = vmatpush1.bf16.msra.mxu0 %v5132_v17  ;;  %2647 = vmatprep.mubr.f32.mxu1 %v7572_v24 }
 0x4ea   : > { %v2219_v19 = vpop.f32.mrb[74].mxu1  ;;  %4824 = vmatmul.mubr.msk.f32.vlgmr.msra.gmra.mrb[88].mxu0 %vm547_vm0, %v2462_v58 }
 0x4eb   : > { %v5136_v14 = vpack.c.bf16 %v2219_v19, %v2213_v44  ;;  %v2221_v25 = vpop.f32.mrb[75].mxu1  ;;  %2564 = vmatprep.mubr.f32.mxu0 %v7572_v24  ;;  %v2246_v19 = vld [vmem:[#allocation9 + $0x330] sm:$0xff] }
 0x4ec   : > { %v5134_v7 = vpack.c.bf16 %v2221_v25, %v2215_v60 }
 0x4ee   : > { %v2225_v29 = vpop.f32.mrb[76].mxu1  ;;  %4825 = vmatmul.mubr.msk.f32.gmra.mrb[90].mxu0 %vm547_vm0, %v2463_v37  ;;  %5135 = vmatprep.subr.bf16.mxu1 %v5134_v7  ;;  %v6700_v7 = vld [vmem:[%s5994_s7 + $0x18] sm:$0xff] }
 0x4ef   : > { %v2227_v51 = vpop.f32.mrb[77].mxu1  ;;  %5137 = vmatpush1.bf16.msra.mxu1 %v5136_v14  ;;  %2570 = vmatprep.mubr.f32.mxu0 %v7572_v24  ;;  %v6694_v14 = vld [vmem:[%s5994_s7 + $0x10] sm:$0xff] }
 0x4f2   : > { %v2231_v61 = vpop.f32.mrb[78].mxu1  ;;  %4826 = vmatmul.mubr.msk.f32.gmra.mrb[92].mxu0 %vm547_vm0, %v2464_v3 }
 0x4f3   : > { %v5140_v63 = vpack.c.bf16 %v2231_v61, %v2225_v29  ;;  %v2233_v50 = vpop.f32.mrb[79].mxu1  ;;  %2576 = vmatprep.mubr.f32.mxu0 %v7572_v24 }
 0x4f4   : > { %v5138_v57 = vpack.c.bf16 %v2233_v50, %v2227_v51  ;;  %v2250_v50 = vld [vmem:[#allocation9 + $0x350] sm:$0xff] }
 0x4f6   : > { %4827 = vmatmul.mubr.msk.f32.gmra.mrb[94].mxu0 %vm547_vm0, %v2465_v4  ;;  %5139 = vmatprep.subr.bf16.mxu1 %v5138_v57  ;;  %v6708_v57 = vld [vmem:[%s5994_s7 + $0x30] sm:$0xff] }
 0x4f7   : > { %5141 = vmatpush1.bf16.msra.mxu1 %v5140_v63  ;;  %4946 = vmatprep.mubr.msk.f32.mxu0 %vm5741_vm1, %v7572_v24 }
 0x4fa   : > { %4828 = vmatmul.mubr.msk.f32.vlgmr.msra.gmra.mrb[88].mxu1 %vm547_vm0, %v2462_v58 }
 0x4fb   : > { %2653 = vmatprep.mubr.f32.mxu1 %v7572_v24 }
 0x4fe   : > { %4829 = vmatmul.mubr.msk.f32.gmra.mrb[90].mxu1 %vm547_vm0, %v2463_v37  ;;  %v2247_v37 = vld [vmem:[#allocation9 + $0x338] sm:$0xff] }
 0x4ff   : > { %2659 = vmatprep.mubr.f32.mxu1 %v7572_v24 }
 0x502   : > { %4830 = vmatmul.mubr.msk.f32.gmra.mrb[92].mxu1 %vm547_vm0, %v2464_v3 }
 0x503   : > { %2665 = vmatprep.mubr.f32.mxu1 %v7572_v24 }
 0x506   : > { %4831 = vmatmul.mubr.msk.f32.gmra.mrb[94].mxu1 %vm547_vm0, %v2465_v4 }
 0x59d   : > { %v2334_v0 = vpop.f32.mrb[80].mxu0 }
 0x59e   : > { %v2335_v16 = vadd.f32 %v2334_v0, %v2240_v62  ;;  %v2336_v31 = vpop.f32.mrb[81].mxu0  ;;  %v6714_v0 = vld [vmem:[%s5994_s7 + $0x38] sm:$0xff] }
 0x59f   : > { %v2337_v28 = vadd.f32 %v2336_v31, %v2241_v36  ;;  %v2251_v36 = vld [vmem:[#allocation9 + $0x358] sm:$0xff] }
 0x5a0   : > { %v6641_v33 = vadd.f32 %v6638_v56, %v2335_v16 }
 0x5a1   : > { %v6647_v13 = vadd.f32 %v6644_v30, %v2337_v28  ;;  %v2340_v47 = vpop.f32.mrb[82].mxu0 }
 0x5a2   : > { %v2341_v52 = vadd.f32 %v2340_v47, %v2244_v6  ;;  %v2342_v8 = vpop.f32.mrb[83].mxu0  ;;  %v2254_v47 = vld [vmem:[#allocation9 + $0x370] sm:$0xff] }
 0x5a3   : > { %v2343_v40 = vadd.f32 %v2342_v8, %v2245_v53  ;;  %v2698_v42 = vadd.f32 %v6647_v13, %v6641_v33  ;;  %v6722_v8 = vld [vmem:[%s5994_s7 + $0x50] sm:$0xff] }
 0x5a4   : > { %v6655_v35 = vadd.f32 %v6652_v32, %v2341_v52 }
 0x5a5   : > { %v6661_v15 = vadd.f32 %v6658_v38, %v2343_v40  ;;  %v2346_v34 = vpop.f32.mrb[84].mxu0  ;;  %2699 = vadd.xlane.f32.xlu0 %v2698_v42  ;;  %v6728_v42 = vld [vmem:[%s5994_s7 + $0x58] sm:$0xff] }
 0x5a6   : > { %v2347_v11 = vadd.f32 %v2346_v34, %v2248_v49  ;;  %v2348_v12 = vpop.f32.mrb[85].mxu0  ;;  %v2255_v49 = vld [vmem:[#allocation9 + $0x378] sm:$0xff] }
 0x5a7   : > { %v2349_v55 = vadd.f32 %v2348_v12, %v2249_v27  ;;  %v2701_v46 = vadd.f32 %v6661_v15, %v6655_v35 }
 0x5a8   : > { %v6669_v23 = vadd.f32 %v6666_v22, %v2347_v11 }
 0x5a9   : > { %v6675_v20 = vadd.f32 %v6672_v5, %v2349_v55  ;;  %v2352_v41 = vpop.f32.mrb[86].mxu0  ;;  %2702 = vadd.xlane.f32.xlu1 %v2701_v46  ;;  %v7479_v55 = vmov 0.0|0.0  }
 0x5aa   : > { %v2353_v45 = vadd.f32 %v2352_v41, %v2252_v1  ;;  %v2354_v21 = vpop.f32.mrb[87].mxu0  ;;  %5142 = vmatprep.subr.bf16.mxu0 %v7479_v55  ;;  %v6737_v41 = vld [vmem:[%s5994_s7 + $0x70] sm:$0xff] }
 0x5ab   : > { %7597 = vst [vmem:[#allocation37_spill] sm:$0xff] %v6675_v20  ;;  %v2355_v39 = vadd.f32 %v2354_v21, %v2253_v26  ;;  %v2704_v54 = vadd.f32 %v6675_v20, %v6669_v23  ;;  %v2466_v26 = vld [vmem:[#allocation9 + $0x380] sm:$0xff]  ;;  %v2467_v21 = vld [vmem:[#allocation9 + $0x388] sm:$0xff] }
 0x5ac   : > { %v6683_v10 = vadd.f32 %v6680_v18, %v2353_v45 }
 0x5ad   : > { %v6689_v17 = vadd.f32 %v6686_v59, %v2355_v39  ;;  %2705 = vadd.xlane.f32.xlu0 %v2704_v54  ;;  %v2423_v9 = vpop.f32.mrb[80].mxu1  ;;  %v6743_v39 = vld [vmem:[%s5994_s7 + $0x78] sm:$0xff] }
 0x5ae   : > { %v2424_v43 = vadd.f32 %v2423_v9, %v2242_v2  ;;  %v2425_v44 = vpop.f32.mrb[81].mxu1 }
 0x5af   : > { %v2707_v60 = vadd.f32 %v6689_v17, %v6683_v10  ;;  %v2426_v58 = vadd.f32 %v2425_v44, %v2243_v48 }
 0x5b0   : > { %v6697_v25 = vadd.f32 %v6694_v14, %v2424_v43 }
 0x5b1   : > { %2708 = vadd.xlane.f32.xlu1 %v2707_v60  ;;  %v6703_v29 = vadd.f32 %v6700_v7, %v2426_v58  ;;  %v2429_v51 = vpop.f32.mrb[82].mxu1  ;;  %v2470_v60 = vld [vmem:[#allocation9 + $0x3a0] sm:$0xff] }
 0x5b2   : > { %7598 = vst [vmem:[#allocation42_spill] sm:$0xff] %v6697_v25  ;;  %v2430_v3 = vadd.f32 %v2429_v51, %v2246_v19  ;;  %v2431_v61 = vpop.f32.mrb[83].mxu1  ;;  %v6751_v58 = vld [vmem:[%s6001_s12] sm:$0xff]  ;;  %v6757_v51 = vld [vmem:[%s6001_s12 + $0x8] sm:$0xff] }
 0x5b3   : > { %7599 = vst [vmem:[#allocation18_spill] sm:$0xff] %v6703_v29  ;;  %v2432_v63 = vadd.f32 %v2431_v61, %v2247_v37  ;;  %v2939_v4 = vadd.f32 %v6703_v29, %v6697_v25  ;;  %v2471_v37 = vld [vmem:[#allocation9 + $0x3a8] sm:$0xff]  ;;  %vm318_vm3 = vcmp.eq.f32.partialorder %v6757_v51, 0.0  ;;  %vm317_vm4 = vcmp.eq.f32.partialorder %v6751_v58, 0.0 }
 0x5b4   : > { %v6711_v62 = vadd.f32 %v6708_v57, %v2430_v3 }
 0x5b5   : > { %v6717_v16 = vadd.f32 %v6714_v0, %v2432_v63  ;;  %v2435_v31 = vpop.f32.mrb[84].mxu1  ;;  %2940 = vadd.xlane.f32.xlu0 %v2939_v4 }
 0x5b6   : > { %7600 = vst [vmem:[#allocation17_spill] sm:$0xff] %v6711_v62  ;;  %v2436_v28 = vadd.f32 %v2435_v31, %v2250_v50  ;;  %v2437_v6 = vpop.f32.mrb[85].mxu1 }
 0x5b7   : > { %7601 = vst [vmem:[#allocation40_spill] sm:$0xff] %v6717_v16  ;;  %v2438_v53 = vadd.f32 %v2437_v6, %v2251_v36  ;;  %v2942_v52 = vadd.f32 %v6717_v16, %v6711_v62  ;;  %v2474_v36 = vld [vmem:[#allocation9 + $0x3c0] sm:$0xff] }
 0x5b8   : > { %v6725_v40 = vadd.f32 %v6722_v8, %v2436_v28  ;;  %v6765_v28 = vld [vmem:[%s6001_s12 + $0x20] sm:$0xff] }
 0x5b9   : > { %v6731_v27 = vadd.f32 %v6728_v42, %v2438_v53  ;;  %v2441_v34 = vpop.f32.mrb[86].mxu1  ;;  %2943 = vadd.xlane.f32.xlu1 %v2942_v52  ;;  %v2475_v53 = vld [vmem:[#allocation9 + $0x3c8] sm:$0xff]  ;;  %vm319_vm5 = vcmp.eq.f32.partialorder %v6765_v28, 0.0 }
 0x5ba   : > { %7602 = vst [vmem:[#allocation36_spill] sm:$0xff] %v6725_v40  ;;  %v2442_v11 = vadd.f32 %v2441_v34, %v2254_v47  ;;  %v2443_v12 = vpop.f32.mrb[87].mxu1  ;;  %v6773_v47 = vld [vmem:[%s6001_s12 + $0x28] sm:$0xff] }
 0x5bb   : > { %7603 = vst [vmem:[#allocation35_spill] sm:$0xff] %v6731_v27  ;;  %v2444_v1 = vadd.f32 %v2443_v12, %v2255_v49  ;;  %v2945_v46 = vadd.f32 %v6731_v27, %v6725_v40  ;;  %vm320_vm8 = vcmp.eq.f32.partialorder %v6773_v47, 0.0 }
 0x5bc   : > { %v6740_v45 = vadd.f32 %v6737_v41, %v2442_v11 }
 0x5bd   : > { %v6746_v54 = vadd.f32 %v6743_v39, %v2444_v1  ;;  %2946 = vadd.xlane.f32.xlu0 %v2945_v46  ;;  %v2560_v2 = vpop.f32.mrb[88].mxu0  ;;  %v2478_v1 = vld [vmem:[#allocation9 + $0x3e0] sm:$0xff] }
 0x5be   : > { %7604 = vst [vmem:[#allocation39_spill] sm:$0xff] %v6740_v45  ;;  %v2561_v48 = vadd.f32 %v2560_v2, %v2466_v26  ;;  %v2562_v9 = vpop.f32.mrb[89].mxu0  ;;  %v6781_v26 = vld [vmem:[%s6001_s12 + $0x40] sm:$0xff]  ;;  %v2479_v2 = vld [vmem:[#allocation9 + $0x3e8] sm:$0xff] }
 0x5bf   : > { %7605 = vst [vmem:[#allocation38_spill] sm:$0xff] %v6746_v54  ;;  %v2948_v43 = vadd.f32 %v6746_v54, %v6740_v45  ;;  %v2563_v44 = vadd.f32 %v2562_v9, %v2467_v21  ;;  %vm321_vm11 = vcmp.eq.f32.partialorder %v6781_v26, 0.0 }
 0x5c0   : > { %v6754_v19 = vadd.f32 %v6751_v58, %v2561_v48  ;;  %v6787_v48 = vld [vmem:[%s6001_s12 + $0x48] sm:$0xff] }
 0x5c1   : > { %2949 = vadd.xlane.f32.xlu1 %v2948_v43  ;;  %v6760_v3 = vadd.f32 %v6757_v51, %v2563_v44  ;;  %v2566_v61 = vpop.f32.mrb[90].mxu0  ;;  %vm322_vm12 = vcmp.eq.f32.partialorder %v6787_v48, 0.0 }
 0x5c2   : > { %7606 = vst [vmem:[#allocation43_spill] sm:$0xff] %v6754_v19  ;;  %v2567_v63 = vadd.f32 %v2566_v61, %v2470_v60  ;;  %v2568_v50 = vpop.f32.mrb[91].mxu0 }
 0x5c3   : > { %7607 = vst [vmem:[#allocation41_spill] sm:$0xff] %v6760_v3  ;;  %v2569_v4 = vadd.f32 %v2568_v50, %v2471_v37  ;;  %v3173_v31 = vadd.f32 %v6760_v3, %v6754_v19  ;;  %v6795_v50 = vld [vmem:[%s6001_s12 + $0x60] sm:$0xff]  ;;  %v6843_v3 = vld [vmem:[%s6001_s12 + $0x58] sm:$0xff] }
 0x5c4   : > { %v6768_v6 = vadd.f32 %v6765_v28, %v2567_v63  ;;  %v2468_v63 = vld [vmem:[#allocation9 + $0x390] sm:$0xff]  ;;  %v459_v28 = vmul.f32 %v6694_v14, %v6694_v14  ;;  %vm323_vm14 = vcmp.eq.f32.partialorder %v6795_v50, 0.0  ;;  %vm407_vm15 = vcmp.eq.f32.partialorder %v6843_v3, 0.0 }
 0x5c5   : > { %v6776_v52 = vadd.f32 %v6773_v47, %v2569_v4  ;;  %v2572_v49 = vpop.f32.mrb[92].mxu0  ;;  %3174 = vadd.xlane.f32.xlu0 %v3173_v31  ;;  %v6801_v31 = vld [vmem:[%s6001_s12 + $0x68] sm:$0xff]  ;;  %v377_v47 = vmul.f32 %v6658_v38, %v6658_v38 }
 0x5c6   : > { %7608 = vst [vmem:[#allocation45_spill] sm:$0xff] %v6768_v6  ;;  %v2573_v34 = vadd.f32 %v2572_v49, %v2474_v36  ;;  %v2574_v11 = vpop.f32.mrb[93].mxu0  ;;  %v2469_v36 = vld [vmem:[#allocation9 + $0x398] sm:$0xff] }
 0x5c7   : > { %7609 = vst [vmem:[#allocation44_spill] sm:$0xff] %v6776_v52  ;;  %v2575_v12 = vadd.f32 %v2574_v11, %v2475_v53  ;;  %v3176_v46 = vadd.f32 %v6776_v52, %v6768_v6 }
 0x5c8   : > { %v6784_v21 = vadd.f32 %v6781_v26, %v2573_v34 }
 0x5c9   : > { %v6790_v9 = vadd.f32 %v6787_v48, %v2575_v12  ;;  %v2578_v43 = vpop.f32.mrb[94].mxu0  ;;  %3177 = vadd.xlane.f32.xlu1 %v3176_v46  ;;  %v2472_v46 = vld [vmem:[#allocation9 + $0x3b0] sm:$0xff] }
 0x5ca   : > { %7610 = vst [vmem:[#allocation22_spill] sm:$0xff] %v6784_v21  ;;  %v2579_v44 = vadd.f32 %v2578_v43, %v2478_v1  ;;  %v2580_v60 = vpop.f32.mrb[95].mxu0 }
 0x5cb   : > { %7611 = vst [vmem:[#allocation21_spill] sm:$0xff] %v6790_v9  ;;  %v2581_v37 = vadd.f32 %v2580_v60, %v2479_v2  ;;  %v3179_v61 = vadd.f32 %v6790_v9, %v6784_v21  ;;  %v6809_v2 = vld [vmem:[%s6001_s12 + $0x10] sm:$0xff]  ;;  %v6815_v60 = vld [vmem:[%s6001_s12 + $0x18] sm:$0xff] }
 0x5cc   : > { %v6798_v4 = vadd.f32 %v6795_v50, %v2579_v44  ;;  %v2473_v44 = vld [vmem:[#allocation9 + $0x3b8] sm:$0xff]  ;;  %v6837_v9 = vld [vmem:[%s6001_s12 + $0x50] sm:$0xff]  ;;  %vm403_vm6 = vcmp.eq.f32.partialorder %v6815_v60, 0.0  ;;  %vm402_vm7 = vcmp.eq.f32.partialorder %v6809_v2, 0.0 }
 0x5cd   : > { %v6804_v53 = vadd.f32 %v6801_v31, %v2581_v37  ;;  %3180 = vadd.xlane.f32.xlu0 %v3179_v61  ;;  %v2649_v49 = vpop.f32.mrb[88].mxu1  ;;  %v2481_v21 = vld [vmem:[#allocation9 + $0x3f8] sm:$0xff]  ;;  %vm406_vm13 = vcmp.eq.f32.partialorder %v6837_v9, 0.0 }
 0x5ce   : > { %7612 = vst [vmem:[#allocation20_spill] sm:$0xff] %v6798_v4  ;;  %v2650_v34 = vadd.f32 %v2649_v49, %v2468_v63  ;;  %v2651_v11 = vpop.f32.mrb[89].mxu1  ;;  %v4748_v48 = vsel %vm406_vm13, 1.0, %v7572_v24 }
 0x5cf   : > { %7613 = vst [vmem:[#allocation19_spill] sm:$0xff] %v6804_v53  ;;  %v3182_v12 = vadd.f32 %v6804_v53, %v6798_v4  ;;  %v2652_v1 = vadd.f32 %v2651_v11, %v2469_v36  ;;  %v2476_v36 = vld [vmem:[#allocation9 + $0x3d0] sm:$0xff]  ;;  %v6829_v4 = vld [vmem:[%s6001_s12 + $0x38] sm:$0xff] }
 0x5d0   : > { %v6812_v43 = vadd.f32 %v6809_v2, %v2650_v34  ;;  %v6823_v53 = vld [vmem:[%s6001_s12 + $0x30] sm:$0xff]  ;;  %vm405_vm10 = vcmp.eq.f32.partialorder %v6829_v4, 0.0 }
 0x5d1   : > { %3183 = vadd.xlane.f32.xlu1 %v3182_v12  ;;  %v6818_v37 = vadd.f32 %v6815_v60, %v2652_v1  ;;  %v2655_v61 = vpop.f32.mrb[90].mxu1  ;;  %v2477_v12 = vld [vmem:[#allocation9 + $0x3d8] sm:$0xff]  ;;  %vm404_vm9 = vcmp.eq.f32.partialorder %v6823_v53, 0.0 }
 0x5d2   : > { %7614 = vst [vmem:[#allocation30_spill] sm:$0xff] %v6812_v43  ;;  %v2656_v63 = vadd.f32 %v2655_v61, %v2472_v46  ;;  %v2657_v49 = vpop.f32.mrb[91].mxu1 }
 0x5d3   : > { %7615 = vst [vmem:[#allocation29_spill] sm:$0xff] %v6818_v37  ;;  %v2658_v55 = vadd.f32 %v2657_v49, %v2473_v44  ;;  %v3412_v11 = vadd.f32 %v6818_v37, %v6812_v43  ;;  %v2480_v37 = vld [vmem:[#allocation9 + $0x3f0] sm:$0xff] }
 0x5d4   : > { %v6826_v34 = vadd.f32 %v6823_v53, %v2656_v63 }
 0x5d5   : > { %v6832_v1 = vadd.f32 %v6829_v4, %v2658_v55  ;;  %v2661_v46 = vpop.f32.mrb[92].mxu1  ;;  %3413 = vadd.xlane.f32.xlu0 %v3412_v11  ;;  %v462_v4 = vmul.f32 %v6714_v0, %v6714_v0 }
 0x5d6   : > { %7616 = vst [vmem:[#allocation28_spill] sm:$0xff] %v6826_v34  ;;  %v2662_v61 = vadd.f32 %v2661_v46, %v2476_v36  ;;  %v2663_v44 = vpop.f32.mrb[93].mxu1 }
 0x5d7   : > { %7617 = vst [vmem:[#allocation27_spill] sm:$0xff] %v6832_v1  ;;  %v2664_v49 = vadd.f32 %v2663_v44, %v2477_v12  ;;  %v3415_v43 = vadd.f32 %v6832_v1, %v6826_v34  ;;  %v6851_v1 = vld [vmem:[%s6001_s12 + $0x70] sm:$0xff] }
 0x5d8   : > { %v6840_v63 = vadd.f32 %v6837_v9, %v2662_v61  ;;  %v6857_v61 = vld [vmem:[%s6001_s12 + $0x78] sm:$0xff]  ;;  %s5743_s12 = smov 127  }
 0x5d9   : > { %v6846_v55 = vadd.f32 %v6843_v3, %v2664_v49  ;;  %v2667_v36 = vpop.f32.mrb[94].mxu1  ;;  %3416 = vadd.xlane.f32.xlu1 %v3415_v43 }
 0x5da   : > { %7618 = vst [vmem:[#allocation26_spill] sm:$0xff] %v6840_v63  ;;  %v2668_v11 = vadd.f32 %v2667_v36, %v2480_v37  ;;  %v2669_v12 = vpop.f32.mrb[95].mxu1 }
 0x5db   : > { %7619 = vst [vmem:[#allocation24_spill] sm:$0xff] %v6846_v55  ;;  %v2670_v46 = vadd.f32 %v2669_v12, %v2481_v21  ;;  %v3418_v44 = vadd.f32 %v6846_v55, %v6840_v63  ;;  %v7622_v63 = vmov 0.0|0.0  }
 0x5dc   : > { %v6854_v34 = vadd.f32 %v6851_v1, %v2668_v11 }
 0x5dd   : > { %v6860_v19 = vadd.f32 %v6857_v61, %v2670_v46  ;;  %3419 = vadd.xlane.f32.xlu0 %v3418_v44  ;;  %v2688_v44 = vld [vmem:[#allocation8 + $0x100] sm:$0xff] }
 0x5de   : > { %7620 = vst [vmem:[#allocation25_spill] sm:$0xff] %v6854_v34 }
 0x5df   : > { %7621 = vst [vmem:[#allocation23_spill] sm:$0xff] %v6860_v19  ;;  %v3421_v43 = vadd.f32 %v6860_v19, %v6854_v34 }
 0x5e1   : > { %3422 = vadd.xlane.f32.xlu1 %v3421_v43 }
 0x632   : > { %v2700_v37 = vpop.xlane.xlu0 %2699 }
 0x633   : > { %v2711_v21 = vmul.f32 0.00390625, %v2700_v37 }
 0x636   : > { %v2703_v49 = vpop.xlane.xlu1 %2702 }
 0x637   : > { %v2712_v36 = vmul.f32 0.00390625, %v2703_v49 }
 0x639   : > { %v5143_v12 = vpack.c.bf16 %v2712_v36, %v2711_v21 }
 0x63a   : > { %v2706_v55 = vpop.xlane.xlu0 %2705 }
 0x63b   : > { %5144 = vmatpush3.bf16.msra.mxu0 %v5143_v12  ;;  %v2713_v11 = vmul.f32 0.00390625, %v2706_v55 }
 0x63c   : > { %5145 = vmatprep.subr.bf16.mxu0 %v7622_v63 }
 0x63e   : > { %v2709_v52 = vpop.xlane.xlu1 %2708 }
 0x63f   : > { %v2714_v6 = vmul.f32 0.00390625, %v2709_v52 }
 0x641   : > { %v5146_v27 = vpack.c.bf16 %v2714_v6, %v2713_v11 }
 0x642   : > { %v2941_v46 = vpop.xlane.xlu0 %2940 }
 0x643   : > { %5147 = vmatpush3.bf16.msra.mxu0 %v5146_v27  ;;  %v2951_v19 = vmul.f32 0.00390625, %v2941_v46 }
 0x644   : > { %5148 = vmatprep.subr.bf16.mxu0 %v7622_v63 }
 0x646   : > { %4947 = vmatmul.mubr.msk.f32.vlgmr.msra.gmra.mrb[96].mxu0 %vm547_vm0, %v2688_v44  ;;  %v2944_v43 = vpop.xlane.xlu1 %2943 }
 0x647   : > { %v2952_v37 = vmul.f32 0.00390625, %v2944_v43  ;;  %4965 = vmatprep.mubr.msk.f32.mxu0 %vm5741_vm1, %v7572_v24 }
 0x649   : > { %v5149_v21 = vpack.c.bf16 %v2952_v37, %v2951_v19 }
 0x64a   : > { %v2947_v49 = vpop.xlane.xlu0 %2946 }
 0x64b   : > { %5150 = vmatpush3.bf16.msra.mxu0 %v5149_v21  ;;  %v2953_v52 = vmul.f32 0.00390625, %v2947_v49 }
 0x64c   : > { %5151 = vmatprep.subr.bf16.mxu0 %v7622_v63 }
 0x64e   : > { %v2950_v6 = vpop.xlane.xlu1 %2949 }
 0x64f   : > { %v2954_v55 = vmul.f32 0.00390625, %v2950_v6  ;;  %v3163_v6 = vld [vmem:[#allocation8 + $0x128] sm:$0xff] }
 0x651   : > { %v5152_v27 = vpack.c.bf16 %v2954_v55, %v2953_v52 }
 0x652   : > { %v3175_v36 = vpop.xlane.xlu0 %3174 }
 0x653   : > { %5153 = vmatpush3.bf16.msra.mxu0 %v5152_v27  ;;  %v3185_v12 = vmul.f32 0.00390625, %v3175_v36 }
 0x654   : > { %5154 = vmatprep.subr.bf16.mxu0 %v7622_v63 }
 0x656   : > { %4966 = vmatmul.mubr.msk.f32.vlgmr.msra.gmra.mrb[98].mxu0 %vm547_vm0, %v2688_v44  ;;  %v3178_v11 = vpop.xlane.xlu1 %3177 }
 0x657   : > { %v3186_v46 = vmul.f32 0.00390625, %v3178_v11  ;;  %4984 = vmatprep.mubr.msk.f32.mxu0 %vm5741_vm1, %v7572_v24 }
 0x659   : > { %v5155_v19 = vpack.c.bf16 %v3186_v46, %v3185_v12 }
 0x65a   : > { %v3181_v43 = vpop.xlane.xlu0 %3180 }
 0x65b   : > { %5156 = vmatpush3.bf16.msra.mxu0 %v5155_v19  ;;  %v3187_v37 = vmul.f32 0.00390625, %v3181_v43 }
 0x65c   : > { %5157 = vmatprep.subr.bf16.mxu0 %v7622_v63 }
 0x65e   : > { %v3184_v21 = vpop.xlane.xlu1 %3183 }
 0x65f   : > { %v3188_v49 = vmul.f32 0.00390625, %v3184_v21  ;;  %v2690_v21 = vld [vmem:[#allocation8 + $0x108] sm:$0xff] }
 0x660   : > { %4951 = vmatprep.mubr.msk.f32.mxu1 %vm2789_vm2, %v2690_v21 }
 0x661   : > { %v5158_v52 = vpack.c.bf16 %v3188_v49, %v3187_v37  ;;  %v2689_v49 = vld [vmem:[#allocation9 + $0x400] sm:$0xff] }
 0x662   : > { %v3414_v55 = vpop.xlane.xlu0 %3413 }
 0x663   : > { %5159 = vmatpush3.bf16.msra.mxu0 %v5158_v52  ;;  %v3424_v36 = vmul.f32 0.00390625, %v3414_v55 }
 0x664   : > { %5160 = vmatprep.subr.bf16.mxu0 %v7622_v63 }
 0x666   : > { %4985 = vmatmul.mubr.msk.f32.vlgmr.msra.gmra.mrb[100].mxu0 %vm547_vm0, %v3163_v6  ;;  %v3417_v44 = vpop.xlane.xlu1 %3416 }
 0x667   : > { %v3425_v27 = vmul.f32 0.00390625, %v3417_v44  ;;  %5003 = vmatprep.mubr.msk.f32.mxu0 %vm5741_vm1, %v7572_v24  ;;  %vm408_vm1 = vcmp.eq.f32.partialorder %v6851_v1, 0.0 }
 0x669   : > { %v5161_v12 = vpack.c.bf16 %v3425_v27, %v3424_v36  ;;  %v2691_v36 = vld [vmem:[#allocation8 + $0x110] sm:$0xff] }
 0x66a   : > { %v3420_v11 = vpop.xlane.xlu0 %3419 }
 0x66b   : > { %5162 = vmatpush3.bf16.msra.mxu0 %v5161_v12  ;;  %v3426_v43 = vmul.f32 0.00390625, %v3420_v11 }
 0x66c   : > { %5163 = vmatprep.subr.bf16.mxu0 %v7622_v63  ;;  %v2692_v63 = vld [vmem:[#allocation8 + $0x118] sm:$0xff] }
 0x66e   : > { %v3423_v46 = vpop.xlane.xlu1 %3422 }
 0x66f   : > { %v3427_v19 = vmul.f32 0.00390625, %v3423_v46 }
 0x671   : > { %v5164_v37 = vpack.c.bf16 %v3427_v19, %v3426_v43  ;;  %v3165_v43 = vld [vmem:[#allocation8 + $0x130] sm:$0xff] }
 0x673   : > { %5165 = vmatpush3.bf16.msra.mxu0 %v5164_v37  ;;  %v3164_v37 = vld [vmem:[#allocation9 + $0x4a0] sm:$0xff] }
 0x676   : > { %5004 = vmatmul.mubr.msk.f32.vlgmr.msra.gmra.mrb[102].mxu0 %vm547_vm0, %v3163_v6  ;;  %v2693_v6 = vld [vmem:[#allocation8 + $0x120] sm:$0xff]  ;;  %vm324_vm0 = vcmp.eq.f32.partialorder %v6801_v31, 0.0 }
 0x677   : > { %4030 = vmatprep.mubr.f32.mxu0 %v7572_v24 }
 0x719   : > { %v2784_v52 = vpop.f32.mrb[96].mxu0 }
 0x71a   : > { %v2785_v55 = vadd.f32 %v2784_v52, %v2689_v49  ;;  %v4948_v44 = vpop.f32.mrb[97].mxu0 }
 0x71c   : > { %v2788_v27 = vmax.f32 %v2785_v55, 0.0 }
 0x71e   : > { %4949 = vmatprep.subr.mxu1 %v2788_v27 }
 0x71f   : > { %4950 = vmatpush3.msra.mxu1 %v2788_v27  ;;  %v3166_v27 = vld [vmem:[#allocation8 + $0x138] sm:$0xff] }
 0x720   : > { %4952 = vmatmul.mubr.msk.f32.vlgmr.msra.gmra.mrb[96].mxu1 %vm2789_vm2, %v2691_v36 }
 0x721   : > { %4954 = vmatprep.mubr.msk.f32.mxu1 %vm2789_vm2, %v2692_v63 }
 0x724   : > { %4955 = vmatmul.mubr.msk.f32.gmra.mrb[98].mxu1 %vm2789_vm2, %v2693_v6 }
 0x725   : > { %4970 = vmatprep.mubr.msk.f32.mxu1 %vm2789_vm2, %v2690_v21 }
 0x729   : > { %v3021_v12 = vpop.f32.mrb[98].mxu0 }
 0x72a   : > { %v3022_v11 = vadd.f32 %v3021_v12, %v2689_v49  ;;  %v4967_v46 = vpop.f32.mrb[99].mxu0  ;;  %v3167_v49 = vld [vmem:[#allocation8 + $0x140] sm:$0xff] }
 0x72b   : > { %v5742_v46 = vmov 0  }
 0x72c   : > { %v3025_v19 = vmax.f32 %v3022_v11, 0.0  ;;  %5325 = vset.pattern.permute.xlu1 %v5742_v46  ;;  %5326 = vset.pattern.permute.xlu0 %v5742_v46 }
 0x72e   : > { %4968 = vmatprep.subr.mxu1 %v3025_v19 }
 0x72f   : > { %4969 = vmatpush3.msra.mxu1 %v3025_v19  ;;  %v2695_v19 = vld [vmem:[#allocation9 + $0x440] sm:$0xff] }
 0x730   : > { %4971 = vmatmul.mubr.msk.f32.vlgmr.msra.gmra.mrb[100].mxu1 %vm2789_vm2, %v2691_v36  ;;  %v3168_v36 = vld [vmem:[#allocation8 + $0x148] sm:$0xff] }
 0x731   : > { %4973 = vmatprep.mubr.msk.f32.mxu1 %vm2789_vm2, %v2692_v63 }
 0x734   : > { %4974 = vmatmul.mubr.msk.f32.gmra.mrb[102].mxu1 %vm2789_vm2, %v2693_v6 }
 0x735   : > { %4989 = vmatprep.mubr.msk.f32.mxu1 %vm2789_vm2, %v3165_v43 }
 0x739   : > { %v3258_v52 = vpop.f32.mrb[100].mxu0 }
 0x73a   : > { %v3259_v55 = vadd.f32 %v3258_v52, %v3164_v37  ;;  %v4986_v44 = vpop.f32.mrb[101].mxu0  ;;  %v2694_v52 = vld [vmem:[#allocation9 + $0x420] sm:$0xff] }
 0x73c   : > { %v3262_v21 = vmax.f32 %v3259_v55, 0.0 }
 0x73e   : > { %4987 = vmatprep.subr.mxu1 %v3262_v21 }
 0x73f   : > { %4988 = vmatpush3.msra.mxu1 %v3262_v21  ;;  %v2697_v21 = vld [vmem:[#allocation9 + $0x480] sm:$0xff] }
 0x740   : > { %4990 = vmatmul.mubr.msk.f32.vlgmr.msra.gmra.mrb[104].mxu1 %vm2789_vm2, %v3166_v27 }
 0x741   : > { %4992 = vmatprep.mubr.msk.f32.mxu1 %vm2789_vm2, %v3167_v49 }
 0x744   : > { %4993 = vmatmul.mubr.msk.f32.gmra.mrb[106].mxu1 %vm2789_vm2, %v3168_v36 }
 0x745   : > { %5008 = vmatprep.mubr.msk.f32.mxu1 %vm2789_vm2, %v3165_v43 }
 0x749   : > { %v3494_v63 = vpop.f32.mrb[102].mxu0 }
 0x74a   : > { %v3495_v6 = vadd.f32 %v3494_v63, %v3164_v37  ;;  %v5005_v12 = vpop.f32.mrb[103].mxu0 }
 0x74c   : > { %v3498_v11 = vmax.f32 %v3495_v6, 0.0  ;;  %v2696_v6 = vld [vmem:[#allocation9 + $0x460] sm:$0xff] }
 0x74e   : > { %5006 = vmatprep.subr.mxu1 %v3498_v11 }
 0x74f   : > { %5007 = vmatpush3.msra.mxu1 %v3498_v11 }
 0x750   : > { %5009 = vmatmul.mubr.msk.f32.vlgmr.msra.gmra.mrb[108].mxu1 %vm2789_vm2, %v3166_v27 }
 0x751   : > { %5011 = vmatprep.mubr.msk.f32.mxu1 %vm2789_vm2, %v3167_v49 }
 0x754   : > { %5012 = vmatmul.mubr.msk.f32.gmra.mrb[110].mxu1 %vm2789_vm2, %v3168_v36  ;;  %vm409_vm2 = vcmp.eq.f32.partialorder %v6857_v61, 0.0 }
 0x755   : > { %4101 = vmatprep.mubr.f32.mxu1 %v7572_v24 }
 0x7f3   : > { %v4953_v43 = vpop.f32.mrb[96].mxu1 }
 0x7f4   : > { %v2874_v55 = vadd.f32 %v4953_v43, %v2695_v19  ;;  %v2868_v37 = vpop.f32.mrb[97].mxu1 }
 0x7f5   : > { %v2869_v44 = vadd.f32 %v2868_v37, %v2694_v52 }
 0x7f6   : > { %v4838_v63 = vmul.f32 -1.442695, %v2874_v55 }
 0x7f7   : > { %v4837_v12 = vmul.f32 -1.442695, %v2869_v44  ;;  %v4956_v27 = vpop.f32.mrb[98].mxu1 }
 0x7f8   : > { %5391 = vpow2.f32 %v4838_v63  ;;  %v2884_v49 = vadd.f32 %v4956_v27, %v2697_v21  ;;  %v2878_v11 = vpop.f32.mrb[99].mxu1 }
 0x7f9   : > { %5393 = vpow2.f32 %v4837_v12  ;;  %v2879_v36 = vadd.f32 %v2878_v11, %v2696_v6 }
 0x7fa   : > { %v4840_v34 = vmul.f32 -1.442695, %v2884_v49 }
 0x7fb   : > { %v4839_v40 = vmul.f32 -1.442695, %v2879_v36 }
 0x7fc   : > { %5395 = vpow2.f32 %v4840_v34 }
 0x7fd   : > { %5397 = vpow2.f32 %v4839_v40 }
 0x802   : > { %v5392_v46 = vpop.eup %5391 }
 0x803   : > { %v5394_v54 = vpop.eup %5393  ;;  %v2900_v45 = vadd.f32 1.0, %v5392_v46  ;;  %v4972_v43 = vpop.f32.mrb[100].mxu1 }
 0x804   : > { %v2899_v16 = vadd.f32 1.0, %v5394_v54  ;;  %v3098_v37 = vadd.f32 %v4972_v43, %v2695_v19  ;;  %v3092_v62 = vpop.f32.mrb[101].mxu1 }
 0x805   : > { %5399 = vrcp.f32 %v2900_v45  ;;  %v3093_v55 = vadd.f32 %v3092_v62, %v2694_v52  ;;  %v3169_v52 = vld [vmem:[#allocation9 + $0x4c0] sm:$0xff] }
 0x806   : > { %v5396_v44 = vpop.eup %5395  ;;  %5401 = vrcp.f32 %v2899_v16  ;;  %v4847_v63 = vmul.f32 -1.442695, %v3098_v37  ;;  %v3170_v16 = vld [vmem:[#allocation9 + $0x4e0] sm:$0xff] }
 0x807   : > { %v5398_v27 = vpop.eup %5397  ;;  %v2902_v29 = vadd.f32 1.0, %v5396_v44  ;;  %v4846_v12 = vmul.f32 -1.442695, %v3093_v55  ;;  %v4975_v11 = vpop.f32.mrb[102].mxu1 }
 0x808   : > { %v2901_v49 = vadd.f32 1.0, %v5398_v27  ;;  %5403 = vpow2.f32 %v4847_v63  ;;  %v3108_v34 = vadd.f32 %v4975_v11, %v2697_v21  ;;  %v3102_v40 = vpop.f32.mrb[103].mxu1  ;;  %v3171_v11 = vld [vmem:[#allocation9 + $0x500] sm:$0xff] }
 0x809   : > { %5405 = vrcp.f32 %v2902_v29  ;;  %v3103_v36 = vadd.f32 %v3102_v40, %v2696_v6 }
 0x80a   : > { %5407 = vrcp.f32 %v2901_v49  ;;  %v4849_v46 = vmul.f32 -1.442695, %v3108_v34 }
 0x80b   : > { %5409 = vpow2.f32 %v4846_v12  ;;  %v4848_v54 = vmul.f32 -1.442695, %v3103_v36 }
 0x80c   : > { %5411 = vpow2.f32 %v4849_v46 }
 0x80d   : > { %5413 = vpow2.f32 %v4848_v54 }
 0x80f   : > { %v5400_v62 = vpop.eup %5399 }
 0x810   : > { %v5402_v45 = vpop.eup %5401  ;;  %2918 = vperm.xlu1 %5325, %v5400_v62  }
 0x811   : > { %2913 = vperm.xlu0 %5326, %v5402_v45  }
 0x812   : > { %v5404_v19 = vpop.eup %5403 }
 0x813   : > { %v5406_v43 = vpop.eup %5405  ;;  %v3124_v37 = vadd.f32 1.0, %v5404_v19  ;;  %v4991_v55 = vpop.f32.mrb[104].mxu1 }
 0x814   : > { %v5408_v21 = vpop.eup %5407  ;;  %v3347_v44 = vadd.f32 %v4991_v55, %v3170_v16  ;;  %2928 = vperm.xlu1 %5325, %v5406_v43   ;;  %v3341_v29 = vpop.f32.mrb[105].mxu1 }
 0x815   : > { %v5410_v6 = vpop.eup %5409  ;;  %5415 = vrcp.f32 %v3124_v37  ;;  %v3342_v63 = vadd.f32 %v3341_v29, %v3169_v52  ;;  %v3172_v37 = vld [vmem:[#allocation9 + $0x520] sm:$0xff] }
 0x816   : > { %v5412_v27 = vpop.eup %5411  ;;  %v3123_v12 = vadd.f32 1.0, %v5410_v6  ;;  %v4856_v34 = vmul.f32 -1.442695, %v3347_v44 }
 0x817   : > { %v3126_v49 = vadd.f32 1.0, %v5412_v27  ;;  %v4994_v40 = vpop.f32.mrb[106].mxu1  ;;  %v5414_v36 = vpop.eup %5413  ;;  %v4855_v46 = vmul.f32 -1.442695, %v3342_v63 }
 0x818   : > { %5417 = vrcp.f32 %v3123_v12  ;;  %2923 = vperm.xlu1 %5325, %v5408_v21   ;;  %v3351_v54 = vpop.f32.mrb[107].mxu1  ;;  %v3125_v45 = vadd.f32 1.0, %v5414_v36  ;;  %v3357_v29 = vadd.f32 %v4994_v40, %v3172_v37 }
 0x819   : > { %v3352_v62 = vadd.f32 %v3351_v54, %v3171_v11  ;;  %5419 = vrcp.f32 %v3126_v49 }
 0x81a   : > { %5421 = vpow2.f32 %v4856_v34  ;;  %v4858_v36 = vmul.f32 -1.442695, %v3357_v29 }
 0x81b   : > { %v4857_v19 = vmul.f32 -1.442695, %v3352_v62  ;;  %5423 = vpow2.f32 %v4855_v46 }
 0x81d   : > { %5425 = vpow2.f32 %v4857_v19 }
 0x81e   : > { %5427 = vrcp.f32 %v3125_v45 }
 0x81f   : > { %v5416_v43 = vpop.eup %5415 }
 0x820   : > { %3142 = vperm.xlu1 %5325, %v5416_v43  }
 0x822   : > { %v5418_v55 = vpop.eup %5417 }
 0x823   : > { %v5010_v44 = vpop.f32.mrb[108].mxu1  ;;  %v5420_v6 = vpop.eup %5419 }
 0x824   : > { %v3571_v27 = vadd.f32 %v5010_v44, %v3170_v16  ;;  %3137 = vperm.xlu1 %5325, %v5418_v55   ;;  %v3565_v63 = vpop.f32.mrb[109].mxu1  ;;  %v5422_v21 = vpop.eup %5421 }
 0x825   : > { %v3566_v12 = vadd.f32 %v3565_v63, %v3169_v52  ;;  %v5424_v54 = vpop.eup %5423  ;;  %v3373_v49 = vadd.f32 1.0, %v5422_v21 }
 0x826   : > { %v3372_v34 = vadd.f32 1.0, %v5424_v54  ;;  %v4865_v19 = vmul.f32 -1.442695, %v3571_v27 }
 0x827   : > { %v5013_v62 = vpop.f32.mrb[110].mxu1  ;;  %v5426_v46 = vpop.eup %5425  ;;  %5429 = vrcp.f32 %v3373_v49  ;;  %v4864_v20 = vmul.f32 -1.442695, %v3566_v12 }
 0x828   : > { %v3581_v45 = vadd.f32 %v5013_v62, %v3172_v37  ;;  %3152 = vperm.xlu1 %5325, %v5420_v6   ;;  %v3575_v43 = vpop.f32.mrb[111].mxu1  ;;  %v5428_v25 = vpop.eup %5427  ;;  %5431 = vrcp.f32 %v3372_v34  ;;  %v3374_v40 = vadd.f32 1.0, %v5426_v46 }
 0x829   : > { %v3576_v16 = vadd.f32 %v3575_v43, %v3171_v11  ;;  %5433 = vpow2.f32 %v4858_v36  ;;  %v358_v43 = vadd.f32 %v6644_v30, %v6638_v56 }
 0x82a   : > { %5435 = vrcp.f32 %v3374_v40  ;;  %v4867_v52 = vmul.f32 -1.442695, %v3581_v45  ;;  %v375_v45 = vmul.f32 %v6644_v30, %v6644_v30  ;;  %v4737_v40 = vsel %vm318_vm3, 1.0, %v7572_v24 }
 0x82b   : > { %v4866_v55 = vmul.f32 -1.442695, %v3576_v16  ;;  %5437 = vpow2.f32 %v4865_v19  ;;  %v4736_v16 = vsel %vm317_vm4, 1.0, %v7572_v24  ;;  %v359_v51 = vadd.f32 %v6652_v32, %v358_v43 }
 0x82c   : > { %3147 = vperm.xlu1 %5325, %v5428_v25   ;;  %5439 = vpow2.f32 %v4864_v20  ;;  %v341_v58 = vadd.f32 %v4737_v40, %v4736_v16  ;;  %v4744_v30 = vsel %vm402_vm7, 1.0, %v7572_v24  ;;  %v463_v43 = vmul.f32 %v6722_v8, %v6722_v8 }
 0x82d   : > { %5441 = vpow2.f32 %v4866_v55  ;;  %v374_v55 = vmul.f32 %v6638_v56, %v6638_v56  ;;  %v460_v56 = vmul.f32 %v6700_v7, %v6700_v7  ;;  %v4742_v16 = vsel %vm323_vm14, 1.0, %v7572_v24 }
 0x82e   : > { %5443 = vpow2.f32 %v4867_v52  ;;  %v4745_v52 = vsel %vm403_vm6, 1.0, %v7572_v24 }
 0x82f   : > { %v426_v60 = vadd.f32 %v4745_v52, %v4744_v30  ;;  %v464_v52 = vmul.f32 %v6728_v42, %v6728_v42 }
 0x831   : > { %v5430_v29 = vpop.eup %5429 }
 0x832   : > { %v5432_v44 = vpop.eup %5431  ;;  %3391 = vperm.xlu0 %5326, %v5430_v29   ;;  %v4738_v29 = vsel %vm319_vm5, 1.0, %v7572_v24 }
 0x833   : > { %v5434_v37 = vpop.eup %5433  ;;  %3386 = vperm.xlu1 %5325, %v5432_v44   ;;  %v376_v44 = vmul.f32 %v6652_v32, %v6652_v32  ;;  %v342_v2 = vadd.f32 %v4738_v29, %v341_v58  ;;  %v360_v32 = vadd.f32 %v6658_v38, %v359_v51  ;;  %v378_v38 = vmul.f32 %v6666_v22, %v6666_v22 }
 0x834   : > { %v5436_v6 = vpop.eup %5435  ;;  %v3375_v49 = vadd.f32 1.0, %v5434_v37  ;;  %v382_v37 = vadd.f32 %v375_v45, %v374_v55  ;;  %v4749_v55 = vsel %vm407_vm15, 1.0, %v7572_v24  ;;  %v4743_v29 = vsel %vm324_vm0, 1.0, %v7572_v24 }
 0x835   : > { %v5438_v27 = vpop.eup %5437 }
 0x836   : > { %v5440_v63 = vpop.eup %5439  ;;  %v3597_v21 = vadd.f32 1.0, %v5438_v27  ;;  %v4739_v27 = vsel %vm320_vm8, 1.0, %v7572_v24  ;;  %v383_v53 = vadd.f32 %v382_v37, %v376_v44  ;;  %v4750_v44 = vsel %vm408_vm1, 1.0, %v7572_v24 }
 0x837   : > { %v3596_v12 = vadd.f32 1.0, %v5440_v63  ;;  %3396 = vperm.xlu1 %5325, %v5436_v6   ;;  %v5442_v11 = vpop.eup %5441  ;;  %v443_v6 = vadd.f32 %v6700_v7, %v6694_v14  ;;  %v4746_v63 = vsel %vm404_vm9, 1.0, %v7572_v24 }
 0x838   : > { %5445 = vrcp.f32 %v3597_v21  ;;  %v5444_v54 = vpop.eup %5443  ;;  %v3598_v25 = vadd.f32 1.0, %v5442_v11  ;;  %v461_v21 = vmul.f32 %v6708_v57, %v6708_v57  ;;  %v343_v11 = vadd.f32 %v4739_v27, %v342_v2 }
 0x839   : > { %5447 = vrcp.f32 %v3596_v12  ;;  %v3599_v20 = vadd.f32 1.0, %v5444_v54  ;;  %v467_v12 = vadd.f32 %v460_v56, %v459_v28  ;;  %v427_v14 = vadd.f32 %v4746_v63, %v426_v60 }
 0x83a   : > { %5449 = vrcp.f32 %v3598_v25  ;;  %v444_v7 = vadd.f32 %v6708_v57, %v443_v6  ;;  %v4747_v54 = vsel %vm405_vm10, 1.0, %v7572_v24  ;;  %v4740_v25 = vsel %vm321_vm11, 1.0, %v7572_v24 }
 0x83b   : > { %5451 = vrcp.f32 %v3375_v49  ;;  %v361_v49 = vadd.f32 %v6666_v22, %v360_v32  ;;  %v384_v26 = vadd.f32 %v383_v53, %v377_v47  ;;  %v468_v57 = vadd.f32 %v467_v12, %v461_v21 }
 0x83c   : > { %5453 = vrcp.f32 %v3599_v20  ;;  %v344_v20 = vadd.f32 %v4740_v25, %v343_v11  ;;  %v379_v22 = vmul.f32 %v6672_v5, %v6672_v5  ;;  %v445_v9 = vadd.f32 %v6714_v0, %v444_v7  ;;  %v7623_v25 = vld [vmem:[#allocation37_spill] sm:$0xff] }
 0x83d   : > { %v469_v40 = vadd.f32 %v468_v57, %v462_v4  ;;  %v465_v28 = vmul.f32 %v6737_v41, %v6737_v41  ;;  %v4751_v60 = vsel %vm409_vm2, 1.0, %v7572_v24 }
 0x83e   : > { %v446_v0 = vadd.f32 %v6722_v8, %v445_v9 }
 0x83f   : > { %v470_v30 = vadd.f32 %v469_v40, %v463_v43 }
 0x840   : > { %v447_v8 = vadd.f32 %v6728_v42, %v446_v0  ;;  %v7624_v0 = vld [vmem:[#allocation42_spill] sm:$0xff] }
 0x841   : > { %v471_v2 = vadd.f32 %v470_v30, %v464_v52  ;;  %v7626_v30 = vld [vmem:[#allocation17_spill] sm:$0xff] }
 0x842   : > { %v5446_v36 = vpop.eup %5445  ;;  %v448_v27 = vadd.f32 %v6737_v41, %v447_v8 }
 0x843   : > { %v5448_v34 = vpop.eup %5447  ;;  %3615 = vperm.xlu0 %5326, %v5446_v36   ;;  %v428_v36 = vadd.f32 %v4747_v54, %v427_v14  ;;  %v472_v61 = vadd.f32 %v471_v2, %v465_v28 }
 0x844   : > { %3610 = vperm.xlu1 %5325, %v5448_v34   ;;  %v5450_v62 = vpop.eup %5449  ;;  %v362_v34 = vadd.f32 %v6672_v5, %v361_v49  ;;  %v380_v5 = vmul.f32 %v6680_v18, %v6680_v18  ;;  %v449_v42 = vadd.f32 %v6743_v39, %v448_v27  ;;  %v7629_v27 = vld [vmem:[#allocation38_spill] sm:$0xff] }
 0x845   : > { %v5452_v46 = vpop.eup %5451  ;;  %v429_v45 = vadd.f32 %v4748_v48, %v428_v36 }
 0x846   : > { %v5454_v19 = vpop.eup %5453  ;;  %v363_v50 = vadd.f32 %v6680_v18, %v362_v34  ;;  %v381_v18 = vmul.f32 %v6686_v59, %v6686_v59 }
 0x847   : > { %3620 = vperm.xlu0 %5326, %v5450_v62   ;;  %v4741_v62 = vsel %vm322_vm12, 1.0, %v7572_v24  ;;  %v430_v51 = vadd.f32 %v4749_v55, %v429_v45 }
 0x848   : > { %3401 = vperm.xlu1 %5325, %v5452_v46   ;;  %v385_v46 = vadd.f32 %v384_v26, %v378_v38  ;;  %v364_v31 = vadd.f32 %v6686_v59, %v363_v50  ;;  %v466_v59 = vmul.f32 %v6743_v39, %v6743_v39 }
 0x849   : > { %v431_v56 = vadd.f32 %v4750_v44, %v430_v51  ;;  %v7625_v51 = vld [vmem:[#allocation18_spill] sm:$0xff] }
 0x84a   : > { %v386_v3 = vadd.f32 %v385_v46, %v379_v22  ;;  %v473_v63 = vadd.f32 %v472_v61, %v466_v59  ;;  %v7630_v59 = vld [vmem:[#allocation36_spill] sm:$0xff] }
 0x84b   : > { %3625 = vperm.xlu0 %5326, %v5454_v19   ;;  %v345_v19 = vadd.f32 %v4741_v62, %v344_v20  ;;  %v432_v32 = vadd.f32 %v4751_v60, %v431_v56  ;;  %v7628_v60 = vld [vmem:[#allocation39_spill] sm:$0xff] }
 0x84c   : > { %v387_v37 = vadd.f32 %v386_v3, %v380_v5 }
 0x84d   : > { %v346_v58 = vadd.f32 %v4742_v16, %v345_v19 }
 0x84e   : > { %v388_v6 = vadd.f32 %v387_v37, %v381_v18 }
 0x84f   : > { %v347_v1 = vadd.f32 %v4743_v29, %v346_v58  ;;  %v7627_v29 = vld [vmem:[#allocation40_spill] sm:$0xff] }
 0x86a   : > { %365 = vadd.xlane.f32.xlu0 %v364_v31 }
 0x86c   : > { %348 = vadd.xlane.f32.xlu1 %v347_v1 }
 0x86e   : > { %389 = vadd.xlane.f32.xlu0 %v388_v6 }
 0x870   : > { %433 = vadd.xlane.f32.xlu1 %v432_v32 }
 0x872   : > { %450 = vadd.xlane.f32.xlu0 %v449_v42  ;;  %v7631_v42 = vld [vmem:[#allocation35_spill] sm:$0xff] }
 0x874   : > { %474 = vadd.xlane.f32.xlu1 %v473_v63 }
 0x88f   : > { %v2919_v47 = vpop.permute.xlu1 %2918 }
 0x890   : > { %v2914_v53 = vpop.permute.xlu0 %2913  ;;  %v6980_v21 = vmul.f32 %v2919_v47, %v6655_v35  ;;  %v6983_v41 = vmul.f32 %v2919_v47, %v6661_v15 }
 0x891   : > { %v6986_v12 = vmul.f32 %v2914_v53, %v6641_v33  ;;  %v6989_v11 = vmul.f32 %v2914_v53, %v6647_v13 }
 0x892   : > { %v3640_v39 = vmul.f32 %v6980_v21, %v6980_v21  ;;  %v3641_v7 = vmul.f32 %v6983_v41, %v6983_v41 }
 0x893   : > { %v2929_v14 = vpop.permute.xlu1 %2928  ;;  %v3636_v35 = vmul.f32 %v6986_v12, %v6986_v12  ;;  %v3637_v15 = vmul.f32 %v6989_v11, %v6989_v11 }
 0x894   : > { %v7000_v33 = vmul.f32 %v2929_v14, %v6683_v10  ;;  %v7003_v13 = vmul.f32 %v2929_v14, %v6689_v17 }
 0x895   : > { %v3652_v26 = vadd.f32 %v3640_v39, %v3636_v35  ;;  %v3661_v4 = vadd.f32 %v3641_v7, %v3637_v15 }
 0x896   : > { %v3648_v10 = vmul.f32 %v7000_v33, %v7000_v33  ;;  %v3649_v17 = vmul.f32 %v7003_v13, %v7003_v13 }
 0x897   : > { %v2924_v54 = vpop.permute.xlu1 %2923 }
 0x898   : > { %v7006_v49 = vmul.f32 %v2924_v54, %v6669_v23  ;;  %v7009_v38 = vmul.f32 %v2924_v54, %v7623_v25 }
 0x89a   : > { %v3644_v20 = vmul.f32 %v7006_v49, %v7006_v49  ;;  %v3645_v36 = vmul.f32 %v7009_v38, %v7009_v38 }
 0x89c   : > { %v3653_v57 = vadd.f32 %v3652_v26, %v3644_v20  ;;  %v3662_v23 = vadd.f32 %v3661_v4, %v3645_v36 }
 0x89e   : > { %v3654_v34 = vadd.f32 %v3653_v57, %v3648_v10  ;;  %v3663_v62 = vadd.f32 %v3662_v23, %v3649_v17 }
 0x89f   : > { %v3143_v48 = vpop.permute.xlu1 %3142 }
 0x8a0   : > { %v3655_v22 = vrot.slane %v3654_v34, 4  ;;  %v3664_v46 = vrot.slane %v3663_v62, 4  ;;  %v7026_v31 = vmul.f32 %v3143_v48, %v7626_v30  ;;  %v7029_v44 = vmul.f32 %v3143_v48, %v7627_v29  ;;  %v7634_v30 = vld [vmem:[#allocation43_spill] sm:$0xff] }
 0x8a2   : > { %v3656_v9 = vadd.f32 %v3655_v22, %v3654_v34  ;;  %v3665_v19 = vadd.f32 %v3664_v46, %v3663_v62  ;;  %v3642_v28 = vmul.f32 %v7026_v31, %v7026_v31  ;;  %v3643_v2 = vmul.f32 %v7029_v44, %v7029_v44 }
 0x8a3   : > { %v3138_v45 = vpop.permute.xlu1 %3137 }
 0x8a4   : > { %v3657_v43 = vrot.slane %v3656_v9, 2  ;;  %v3666_v40 = vrot.slane %v3665_v19, 2  ;;  %v7020_v58 = vmul.f32 %v3138_v45, %v7624_v0  ;;  %v7023_v52 = vmul.f32 %v3138_v45, %v7625_v51  ;;  %v7633_v0 = vld [vmem:[#allocation44_spill] sm:$0xff] }
 0x8a6   : > { %v3658_v50 = vadd.f32 %v3657_v43, %v3656_v9  ;;  %v3667_v16 = vadd.f32 %v3666_v40, %v3665_v19  ;;  %v3638_v1 = vmul.f32 %v7020_v58, %v7020_v58  ;;  %v3639_v56 = vmul.f32 %v7023_v52, %v7023_v52  ;;  %v7632_v19 = vld [vmem:[#allocation45_spill] sm:$0xff] }
 0x8a7   : > { %v3153_v55 = vpop.permute.xlu1 %3152 }
 0x8a8   : > { %v3659_v5 = vrot.slane %v3658_v50, 1  ;;  %v3668_v3 = vrot.slane %v3667_v16, 1  ;;  %v7040_v6 = vmul.f32 %v3153_v55, %v7628_v60  ;;  %v7043_v32 = vmul.f32 %v3153_v55, %v7629_v27 }
 0x8a9   : > { %v3670_v47 = vadd.f32 %v3642_v28, %v3638_v1  ;;  %v3679_v53 = vadd.f32 %v3643_v2, %v3639_v56  ;;  %v7635_v56 = vld [vmem:[#allocation41_spill] sm:$0xff]  ;;  %v7636_v2 = vld [vmem:[#allocation22_spill] sm:$0xff] }
 0x8aa   : > { %v3660_v18 = vadd.f32 %v3659_v5, %v3658_v50  ;;  %v3669_v37 = vadd.f32 %v3668_v3, %v3667_v16  ;;  %v3650_v7 = vmul.f32 %v7040_v6, %v7040_v6  ;;  %v3651_v35 = vmul.f32 %v7043_v32, %v7043_v32 }
 0x8ab   : > { %v3148_v8 = vpop.permute.xlu1 %3147 }
 0x8ac   : > { %5455 = vrsqrt.f32 %v3660_v18  ;;  %v7046_v61 = vmul.f32 %v3148_v8, %v7630_v59  ;;  %v7049_v63 = vmul.f32 %v3148_v8, %v7631_v42  ;;  %vm3690_vm3 = vcmp.eq.f32.partialorder %v3660_v18, inf  ;;  %v7637_v59 = vld [vmem:[#allocation21_spill] sm:$0xff] }
 0x8ad   : > { %5457 = vrsqrt.f32 %v3669_v37  ;;  %vm3692_vm4 = vcmp.eq.f32.partialorder %v3660_v18, 0.0  ;;  %v3693_v34 = vand.u32 2147483648, %v3660_v18  ;;  %vm3697_vm5 = vcmp.eq.f32.partialorder %v3669_v37, inf }
 0x8ae   : > { %v3646_v14 = vmul.f32 %v7046_v61, %v7046_v61  ;;  %v3647_v39 = vmul.f32 %v7049_v63, %v7049_v63  ;;  %vm3699_vm6 = vcmp.eq.f32.partialorder %v3669_v37, 0.0  ;;  %v3700_v9 = vand.u32 2147483648, %v3669_v37 }
 0x8b0   : > { %v3671_v15 = vadd.f32 %v3670_v47, %v3646_v14  ;;  %v3680_v54 = vadd.f32 %v3679_v53, %v3647_v39 }
 0x8b1   : > { %v3392_v17 = vpop.permute.xlu0 %3391 }
 0x8b2   : > { %v3672_v25 = vadd.f32 %v3671_v15, %v3650_v7  ;;  %v3681_v26 = vadd.f32 %v3680_v54, %v3651_v35  ;;  %v3387_v4 = vpop.permute.xlu1 %3386  ;;  %v7060_v45 = vmul.f32 %v3392_v17, %v7632_v19  ;;  %v7063_v51 = vmul.f32 %v3392_v17, %v7633_v0 }
 0x8b3   : > { %v7066_v29 = vmul.f32 %v3387_v4, %v7634_v30  ;;  %v7069_v28 = vmul.f32 %v3387_v4, %v7635_v56  ;;  %v7642_v30 = vld [vmem:[#allocation26_spill] sm:$0xff] }
 0x8b4   : > { %v3673_v36 = vrot.slane %v3672_v25, 4  ;;  %v3682_v10 = vrot.slane %v3681_v26, 4  ;;  %v3756_v47 = vmul.f32 %v7060_v45, %v7060_v45  ;;  %v3757_v53 = vmul.f32 %v7063_v51, %v7063_v51 }
 0x8b5   : > { %v3752_v7 = vmul.f32 %v7066_v29, %v7066_v29  ;;  %v3753_v35 = vmul.f32 %v7069_v28, %v7069_v28 }
 0x8b6   : > { %v5456_v20 = vpop.eup %5455  ;;  %v3674_v48 = vadd.f32 %v3673_v36, %v3672_v25  ;;  %v3683_v22 = vadd.f32 %v3682_v10, %v3681_v26  ;;  %v3397_v55 = vpop.permute.xlu1 %3396  ;;  %v7639_v10 = vld [vmem:[#allocation27_spill] sm:$0xff] }
 0x8b7   : > { %v5458_v57 = vpop.eup %5457  ;;  %v3689_v23 = vmul.f32 %v5456_v20, %v3660_v18  ;;  %v7075_v42 = vmul.f32 %v3397_v55, %v7637_v59  ;;  %v3768_v26 = vadd.f32 %v3756_v47, %v3752_v7  ;;  %v3777_v4 = vadd.f32 %v3757_v53, %v3753_v35  ;;  %v7638_v20 = vld [vmem:[#allocation28_spill] sm:$0xff] }
 0x8b8   : > { %v3696_v62 = vmul.f32 %v5458_v57, %v3669_v37  ;;  %v3675_v50 = vrot.slane %v3674_v48, 2  ;;  %v3684_v16 = vrot.slane %v3683_v22, 2 }
 0x8b9   : > { %v3691_v46 = vsel %vm3690_vm3, %v3660_v18, %v3689_v23  ;;  %v3761_v54 = vmul.f32 %v7075_v42, %v7075_v42  ;;  %v7640_v23 = vld [vmem:[#allocation30_spill] sm:$0xff]  ;;  %vm3962_vm3 = vcmask 523264  }
 0x8ba   : > { %v3694_v43 = vsel %vm3692_vm4, %v3693_v34, %v3691_v46  ;;  %v3698_v40 = vsel %vm3697_vm5, %v3669_v37, %v3696_v62  ;;  %v3676_v18 = vadd.f32 %v3675_v50, %v3674_v48  ;;  %v3685_v1 = vadd.f32 %v3684_v16, %v3683_v22  ;;  %v7641_v62 = vld [vmem:[#allocation29_spill] sm:$0xff] }
 0x8bb   : > { %v3701_v5 = vsel %vm3699_vm6, %v3700_v9, %v3698_v40  ;;  %v3716_v3 = vadd.f32 1e-06, %v3694_v43  ;;  %v7072_v37 = vmul.f32 %v3397_v55, %v7636_v2  ;;  %v3778_v46 = vadd.f32 %v3777_v4, %v3761_v54 }
 0x8bc   : > { %v3717_v8 = vadd.f32 1e-06, %v3701_v5  ;;  %v3677_v60 = vrot.slane %v3676_v18, 1  ;;  %v3686_v27 = vrot.slane %v3685_v1, 1 }
 0x8bd   : > { %5459 = vrcp.f32 %v3716_v3  ;;  %v3760_v15 = vmul.f32 %v7072_v37, %v7072_v37 }
 0x8be   : > { %5461 = vrcp.f32 %v3717_v8  ;;  %v7081_v14 = vadd.f32 %v3677_v60, %v3676_v18  ;;  %v7083_v39 = vadd.f32 %v3686_v27, %v3685_v1  ;;  %v7643_v1 = vld [vmem:[#allocation24_spill] sm:$0xff] }
 0x8bf   : > { %v3769_v22 = vadd.f32 %v3768_v26, %v3760_v15  ;;  %v7644_v27 = vld [vmem:[#allocation20_spill] sm:$0xff] }
 0x8c0   : > { %5463 = vrsqrt.f32 %v7081_v14  ;;  %vm3704_vm7 = vcmp.eq.f32.partialorder %v7081_v14, inf  ;;  %vm3706_vm8 = vcmp.eq.f32.partialorder %v7081_v14, 0.0  ;;  %v3707_v60 = vand.u32 2147483648, %v7081_v14 }
 0x8c1   : > { %5465 = vrsqrt.f32 %v7083_v39  ;;  %vm3711_vm9 = vcmp.eq.f32.partialorder %v7083_v39, inf  ;;  %vm3713_vm10 = vcmp.eq.f32.partialorder %v7083_v39, 0.0  ;;  %v3714_v26 = vand.u32 2147483648, %v7083_v39 }
 0x8c2   : > { %v3616_v25 = vpop.permute.xlu0 %3615 }
 0x8c3   : > { %v7096_v36 = vmul.f32 %v3616_v25, %v7638_v20  ;;  %v7099_v17 = vmul.f32 %v3616_v25, %v7639_v10  ;;  %v3611_v57 = vpop.permute.xlu1 %3610 }
 0x8c4   : > { %v7102_v34 = vmul.f32 %v3611_v57, %v7640_v23  ;;  %v7105_v48 = vmul.f32 %v3611_v57, %v7641_v62 }
 0x8c5   : > { %v3758_v19 = vmul.f32 %v7096_v36, %v7096_v36  ;;  %v3759_v43 = vmul.f32 %v7099_v17, %v7099_v17 }
 0x8c6   : > { %v3754_v40 = vmul.f32 %v7102_v34, %v7102_v34  ;;  %v3621_v50 = vpop.permute.xlu0 %3620  ;;  %v3755_v5 = vmul.f32 %v7105_v48, %v7105_v48 }
 0x8c7   : > { %v5460_v9 = vpop.eup %5459  ;;  %v3402_v0 = vpop.permute.xlu1 %3401  ;;  %v7117_v18 = vmul.f32 %v3621_v50, %v7642_v30  ;;  %v7120_v56 = vmul.f32 %v3621_v50, %v7643_v1 }
 0x8c8   : > { %v5462_v16 = vpop.eup %5461  ;;  %v3724_v55 = vmul.f32 %v5460_v9, %v3716_v3  ;;  %v7125_v59 = vmul.f32 %v3402_v0, %v7644_v27  ;;  %v7645_v3 = vld [vmem:[#allocation19_spill] sm:$0xff]  ;;  %v3786_v4 = vadd.f32 %v3758_v19, %v3754_v40  ;;  %v3795_v20 = vadd.f32 %v3759_v43, %v3755_v5 }
 0x8c9   : > { %v3725_v2 = vmul.f32 %v5462_v16, %v3717_v8  ;;  %v7129_v53 = vmul.f32 %v3402_v0, %v7645_v3  ;;  %v3762_v7 = vmul.f32 %v7117_v18, %v7117_v18  ;;  %v3763_v15 = vmul.f32 %v7120_v56, %v7120_v56  ;;  %v7647_v5 = vld [vmem:[#allocation23_spill] sm:$0xff] }
 0x8ca   : > { %v3728_v47 = vsub.f32 2.0, %v3724_v55  ;;  %v3764_v8 = vmul.f32 %v7125_v59, %v7125_v59  ;;  %v3626_v54 = vpop.permute.xlu0 %3625  ;;  %v5464_v25 = vpop.eup %5463  ;;  %v7646_v55 = vld [vmem:[#allocation25_spill] sm:$0xff] }
 0x8cb   : > { %v3729_v35 = vsub.f32 2.0, %v3725_v2  ;;  %v3765_v10 = vmul.f32 %v7129_v53, %v7129_v53  ;;  %v5466_v57 = vpop.eup %5465  ;;  %v3703_v62 = vmul.f32 %v5464_v25, %v7081_v14  ;;  %v7143_v0 = vmul.f32 %v3626_v54, %v7646_v55 }
 0x8cc   : > { %v3770_v50 = vadd.f32 %v3769_v22, %v3764_v8  ;;  %v3732_v30 = vmul.f32 %v5460_v9, %v3728_v47  ;;  %v3710_v1 = vmul.f32 %v5466_v57, %v7083_v39  ;;  %v3787_v27 = vadd.f32 %v3786_v4, %v3762_v7 }
 0x8cd   : > { %v3733_v23 = vmul.f32 %v5462_v16, %v3729_v35  ;;  %v3779_v2 = vadd.f32 %v3778_v46, %v3765_v10  ;;  %v3705_v19 = vsel %vm3704_vm7, %v7081_v14, %v3703_v62  ;;  %v3796_v40 = vadd.f32 %v3795_v20, %v3763_v15 }
 0x8ce   : > { %v3771_v43 = vrot.slane %v3770_v50, 4  ;;  %v7150_v3 = vmul.f32 %v3626_v54, %v7647_v5  ;;  %v3708_v22 = vsel %vm3706_vm8, %v3707_v60, %v3705_v19  ;;  %v3712_v46 = vsel %vm3711_vm9, %v7083_v39, %v3710_v1 }
 0x8cf   : > { %v7153_v16 = vmul.f32 %v3733_v23, %v7009_v38  ;;  %v3780_v9 = vrot.slane %v3779_v2, 4  ;;  %v3715_v47 = vsel %vm3713_vm10, %v3714_v26, %v3712_v46  ;;  %v3718_v7 = vadd.f32 1e-06, %v3708_v22 }
 0x8d0   : > { %v3772_v35 = vadd.f32 %v3771_v43, %v3770_v50  ;;  %v3766_v8 = vmul.f32 %v7143_v0, %v7143_v0  ;;  %v3719_v15 = vadd.f32 1e-06, %v3715_v47  ;;  %v3767_v38 = vmul.f32 %v7150_v3, %v7150_v3 }
 0x8d1   : > { %v3781_v54 = vadd.f32 %v3780_v9, %v3779_v2  ;;  %v7167_v14 = vmul.f32 %v3733_v23, %v6989_v11  ;;  %5467 = vrcp.f32 %v3718_v7  ;;  %v7170_v4 = vmul.f32 %v3733_v23, %v6983_v41 }
 0x8d2   : > { %v3773_v60 = vrot.slane %v3772_v35, 2  ;;  %v3788_v25 = vadd.f32 %v3787_v27, %v3766_v8  ;;  %5469 = vrcp.f32 %v3719_v15  ;;  %v3797_v26 = vadd.f32 %v3796_v40, %v3767_v38 }
 0x8d3   : > { %v3782_v39 = vrot.slane %v3781_v54, 2  ;;  %v7173_v20 = vmul.f32 %v3732_v30, %v6986_v12  ;;  %v5166_v62 = vpack.c.bf16 %v7170_v4, %v7167_v14  ;;  %v7178_v11 = vmul.f32 %v3732_v30, %v6980_v21 }
 0x8d4   : > { %v3774_v10 = vadd.f32 %v3773_v60, %v3772_v35  ;;  %v3789_v57 = vrot.slane %v3788_v25, 4  ;;  %v7181_v50 = vmul.f32 %v3732_v30, %v7006_v49  ;;  %v3798_v41 = vrot.slane %v3797_v26, 4 }
 0x8d5   : > { %v3783_v55 = vadd.f32 %v3782_v39, %v3781_v54  ;;  %v7184_v1 = vmul.f32 %v3733_v23, %v7003_v13  ;;  %v7187_v2 = vmul.f32 %v3732_v30, %v7000_v33  ;;  %5167 = vmatprep.subr.bf16.mxu0 %v5166_v62  ;;  %v5168_v19 = vpack.c.bf16 %v7178_v11, %v7173_v20 }
 0x8d6   : > { %v3775_v12 = vrot.slane %v3774_v10, 1  ;;  %v3790_v27 = vadd.f32 %v3789_v57, %v3788_v25  ;;  %v3799_v21 = vadd.f32 %v3798_v41, %v3797_v26 }
 0x8d7   : > { %v3784_v43 = vrot.slane %v3783_v55, 1  ;;  %v5170_v49 = vpack.c.bf16 %v7184_v1, %v7153_v16  ;;  %5169 = vmatpush1.bf16.msra.mxu0 %v5168_v19  ;;  %v5172_v33 = vpack.c.bf16 %v7187_v2, %v7181_v50 }
 0x8d8   : > { %v3776_v40 = vadd.f32 %v3775_v12, %v3774_v10  ;;  %v3791_v5 = vrot.slane %v3790_v27, 2  ;;  %v3800_v13 = vrot.slane %v3799_v21, 2 }
 0x8d9   : > { %v3785_v22 = vadd.f32 %v3784_v43, %v3783_v55  ;;  %5171 = vmatprep.subr.bf16.mxu0 %v5170_v49 }
 0x8da   : > { %5471 = vrsqrt.f32 %v3776_v40  ;;  %v3792_v30 = vadd.f32 %v3791_v5, %v3790_v27  ;;  %v3801_v46 = vadd.f32 %v3800_v13, %v3799_v21  ;;  %vm3806_vm11 = vcmp.eq.f32.partialorder %v3776_v40, inf }
 0x8db   : > { %5473 = vrsqrt.f32 %v3785_v22  ;;  %v5468_v23 = vpop.eup %5467  ;;  %5173 = vmatpush1.bf16.msra.mxu0 %v5172_v33  ;;  %vm3808_vm12 = vcmp.eq.f32.partialorder %v3776_v40, 0.0  ;;  %v3809_v62 = vand.u32 2147483648, %v3776_v40  ;;  %vm3813_vm13 = vcmp.eq.f32.partialorder %v3785_v22, inf }
 0x8dc   : > { %v5470_v9 = vpop.eup %5469  ;;  %v3726_v47 = vmul.f32 %v5468_v23, %v3718_v7  ;;  %v3793_v8 = vrot.slane %v3792_v30, 1  ;;  %v3802_v54 = vrot.slane %v3801_v46, 1  ;;  %vm3815_vm14 = vcmp.eq.f32.partialorder %v3785_v22, 0.0 }
 0x8dd   : > { %v3727_v35 = vmul.f32 %v5470_v9, %v3719_v15 }
 0x8de   : > { %v3730_v38 = vsub.f32 2.0, %v3726_v47  ;;  %v3794_v25 = vadd.f32 %v3793_v8, %v3792_v30  ;;  %v3803_v39 = vadd.f32 %v3802_v54, %v3801_v46 }
 0x8df   : > { %v3731_v60 = vsub.f32 2.0, %v3727_v35 }
 0x8e0   : > { %v3734_v26 = vmul.f32 %v5468_v23, %v3730_v38  ;;  %5475 = vrsqrt.f32 %v3794_v25  ;;  %vm3820_vm15 = vcmp.eq.f32.partialorder %v3794_v25, inf  ;;  %vm3822_vm0 = vcmp.eq.f32.partialorder %v3794_v25, 0.0 }
 0x8e1   : > { %v3735_v10 = vmul.f32 %v5470_v9, %v3731_v60  ;;  %5477 = vrsqrt.f32 %v3803_v39  ;;  %v3823_v9 = vand.u32 2147483648, %v3794_v25  ;;  %vm3827_vm1 = vcmp.eq.f32.partialorder %v3803_v39, inf }
 0x8e2   : > { %v7205_v19 = vmul.f32 %v3734_v26, %v7020_v58  ;;  %v7208_v43 = vmul.f32 %v3734_v26, %v7026_v31  ;;  %v7220_v5 = vmul.f32 %v3734_v26, %v7040_v6  ;;  %v3830_v35 = vand.u32 2147483648, %v3803_v39 }
 0x8e3   : > { %v7196_v7 = vmul.f32 %v3735_v10, %v7049_v63  ;;  %v7199_v41 = vmul.f32 %v3735_v10, %v7023_v52  ;;  %v7202_v12 = vmul.f32 %v3735_v10, %v7029_v44  ;;  %v7211_v21 = vmul.f32 %v3735_v10, %v7043_v32 }
 0x8e4   : > { %v5472_v57 = vpop.eup %5471  ;;  %v7214_v63 = vmul.f32 %v3734_v26, %v7046_v61  ;;  %v3816_v52 = vand.u32 2147483648, %v3785_v22  ;;  %v5184_v32 = vpack.c.bf16 %v7208_v43, %v7205_v19  ;;  %vm3829_vm2 = vcmp.eq.f32.partialorder %v3803_v39, 0.0 }
 0x8e5   : > { %v5474_v55 = vpop.eup %5473  ;;  %v3805_v15 = vmul.f32 %v5472_v57, %v3776_v40  ;;  %v5182_v44 = vpack.c.bf16 %v7202_v12, %v7199_v41  ;;  %v5186_v33 = vpack.c.bf16 %v7211_v21, %v7196_v7 }
 0x8e6   : > { %v3812_v27 = vmul.f32 %v5474_v55, %v3785_v22 }
 0x8e7   : > { %v3807_v49 = vsel %vm3806_vm11, %v3776_v40, %v3805_v15  ;;  %5183 = vmatprep.subr.bf16.mxu1 %v5182_v44  ;;  %v5188_v40 = vpack.c.bf16 %v7220_v5, %v7214_v63 }
 0x8e8   : > { %v3810_v58 = vsel %vm3808_vm12, %v3809_v62, %v3807_v49  ;;  %v3814_v31 = vsel %vm3813_vm13, %v3785_v22, %v3812_v27  ;;  %5185 = vmatpush1.bf16.msra.mxu1 %v5184_v32 }
 0x8e9   : > { %v3817_v13 = vsel %vm3815_vm14, %v3816_v52, %v3814_v31  ;;  %v3832_v61 = vadd.f32 1e-06, %v3810_v58  ;;  %5187 = vmatprep.subr.bf16.mxu1 %v5186_v33 }
 0x8ea   : > { %v3833_v23 = vadd.f32 1e-06, %v3817_v13  ;;  %v5476_v6 = vpop.eup %5475 }
 0x8eb   : > { %5479 = vrcp.f32 %v3832_v61  ;;  %v5478_v30 = vpop.eup %5477  ;;  %v3819_v46 = vmul.f32 %v5476_v6, %v3794_v25 }
 0x8ec   : > { %5481 = vrcp.f32 %v3833_v23  ;;  %v3826_v22 = vmul.f32 %v5478_v30, %v3803_v39  ;;  %5189 = vmatpush1.bf16.msra.mxu1 %v5188_v40 }
 0x8ed   : > { %v3821_v47 = vsel %vm3820_vm15, %v3794_v25, %v3819_v46 }
 0x8ee   : > { %v3824_v8 = vsel %vm3822_vm0, %v3823_v9, %v3821_v47  ;;  %v3828_v54 = vsel %vm3827_vm1, %v3803_v39, %v3826_v22 }
 0x8ef   : > { %v3831_v38 = vsel %vm3829_vm2, %v3830_v35, %v3828_v54  ;;  %v3834_v60 = vadd.f32 1e-06, %v3824_v8 }
 0x8f0   : > { %v3835_v26 = vadd.f32 1e-06, %v3831_v38 }
 0x8f1   : > { %5483 = vrcp.f32 %v3834_v60 }
 0x8f2   : > { %5485 = vrcp.f32 %v3835_v26 }
 0x8f5   : > { %v5480_v10 = vpop.eup %5479 }
 0x8f6   : > { %v5482_v57 = vpop.eup %5481  ;;  %v3840_v62 = vmul.f32 %v5480_v10, %v3832_v61 }
 0x8f7   : > { %v3841_v55 = vmul.f32 %v5482_v57, %v3833_v23  ;;  %v366_v15 = vpop.xlane.xlu0 %365 }
 0x8f8   : > { %v3844_v27 = vsub.f32 2.0, %v3840_v62  ;;  %v367_v49 = vrot.slane %v366_v15, 4 }
 0x8f9   : > { %v3845_v52 = vsub.f32 2.0, %v3841_v55  ;;  %v349_v44 = vpop.xlane.xlu1 %348 }
 0x8fa   : > { %v3848_v25 = vmul.f32 %v5480_v10, %v3844_v27  ;;  %v368_v58 = vadd.f32 %v367_v49, %v366_v15  ;;  %v350_v31 = vrot.slane %v349_v44, 4 }
 0x8fb   : > { %v3849_v32 = vmul.f32 %v5482_v57, %v3845_v52  ;;  %v390_v13 = vpop.xlane.xlu0 %389  ;;  %v5484_v40 = vpop.eup %5483 }
 0x8fc   : > { %v7232_v39 = vmul.f32 %v3848_v25, %v7072_v37  ;;  %v7235_v33 = vmul.f32 %v3848_v25, %v7125_v59  ;;  %v351_v6 = vadd.f32 %v350_v31, %v349_v44  ;;  %v369_v61 = vrot.slane %v368_v58, 2  ;;  %v5486_v22 = vpop.eup %5485 }
 0x8fd   : > { %v391_v23 = vrot.slane %v390_v13, 4  ;;  %v434_v30 = vpop.xlane.xlu1 %433  ;;  %v7238_v46 = vmul.f32 %v3849_v32, %v7069_v28  ;;  %v7241_v9 = vmul.f32 %v3849_v32, %v7063_v51  ;;  %v7244_v47 = vmul.f32 %v3849_v32, %v7129_v53 }
 0x8fe   : > { %v3842_v37 = vmul.f32 %v5484_v40, %v3834_v60  ;;  %v352_v35 = vrot.slane %v351_v6, 2  ;;  %v435_v8 = vrot.slane %v434_v30, 4  ;;  %v3843_v59 = vmul.f32 %v5486_v22, %v3835_v26 }
 0x8ff   : > { %v392_v54 = vadd.f32 %v391_v23, %v390_v13  ;;  %v5174_v38 = vpack.c.bf16 %v7241_v9, %v7238_v46  ;;  %v451_v10 = vpop.xlane.xlu0 %450  ;;  %v7249_v57 = vmul.f32 %v3848_v25, %v7066_v29  ;;  %v7252_v55 = vmul.f32 %v3848_v25, %v7060_v45 }
 0x900   : > { %v3846_v28 = vsub.f32 2.0, %v3842_v37  ;;  %v436_v62 = vadd.f32 %v435_v8, %v434_v30  ;;  %v452_v51 = vrot.slane %v451_v10, 4  ;;  %v5180_v53 = vpack.c.bf16 %v7235_v33, %v7232_v39 }
 0x901   : > { %v3847_v60 = vsub.f32 2.0, %v3843_v59  ;;  %5175 = vmatprep.subr.bf16.mxu0 %v5174_v38  ;;  %v7257_v26 = vmul.f32 %v3849_v32, %v7075_v42  ;;  %v475_v15 = vpop.xlane.xlu1 %474  ;;  %v353_v27 = vadd.f32 %v352_v35, %v351_v6  ;;  %v393_v29 = vrot.slane %v392_v54, 2 }
 0x902   : > { %v3850_v49 = vmul.f32 %v5484_v40, %v3846_v28  ;;  %v453_v52 = vadd.f32 %v452_v51, %v451_v10  ;;  %v5176_v44 = vpack.c.bf16 %v7252_v55, %v7249_v57  ;;  %v476_v25 = vrot.slane %v475_v15, 4 }
 0x903   : > { %v3851_v31 = vmul.f32 %v5486_v22, %v3847_v60  ;;  %v5178_v45 = vpack.c.bf16 %v7244_v47, %v7257_v26  ;;  %v354_v13 = vrot.slane %v353_v27, 1  ;;  %v437_v30 = vrot.slane %v436_v62, 2 }
 0x904   : > { %v7264_v23 = vmul.f32 %v3850_v49, %v7117_v18  ;;  %v454_v42 = vrot.slane %v453_v52, 2  ;;  %5177 = vmatpush1.bf16.msra.mxu0 %v5176_v44  ;;  %v7267_v32 = vmul.f32 %v3850_v49, %v7102_v34  ;;  %v477_v40 = vadd.f32 %v476_v25, %v475_v15 }
 0x905   : > { %v7270_v6 = vmul.f32 %v3851_v31, %v7150_v3  ;;  %5179 = vmatprep.subr.bf16.mxu0 %v5178_v45  ;;  %v7273_v22 = vmul.f32 %v3851_v31, %v7105_v48  ;;  %v7276_v37 = vmul.f32 %v3851_v31, %v7099_v17  ;;  %v7279_v18 = vmul.f32 %v3850_v49, %v7143_v0 }
 0x906   : > { %v7282_v35 = vmul.f32 %v3850_v49, %v7096_v36  ;;  %v355_v8 = vadd.f32 %v354_v13, %v353_v27  ;;  %v370_v34 = vadd.f32 %v369_v61, %v368_v58  ;;  %v478_v59 = vrot.slane %v477_v40, 2  ;;  %v3929_v36 = vld [vmem:[#allocation8 + $0x150] sm:$0xff] }
 0x907   : > { %v5190_v3 = vpack.c.bf16 %v7276_v37, %v7273_v22  ;;  %v7287_v38 = vmul.f32 %v3851_v31, %v7120_v56  ;;  %v394_v48 = vadd.f32 %v393_v29, %v392_v54  ;;  %v438_v10 = vadd.f32 %v437_v30, %v436_v62 }
 0x908   : > { %5181 = vmatpush1.bf16.msra.mxu0 %v5180_v53  ;;  %v5192_v17 = vpack.c.bf16 %v7282_v35, %v7267_v32  ;;  %5230 = vpush %v355_v8  ;;  %v371_v0 = vrot.slane %v370_v34, 1  ;;  %v455_v28 = vadd.f32 %v454_v42, %v453_v52  ;;  %v479_v51 = vadd.f32 %v478_v59, %v477_v40  ;;  %v3900_v52 = vld [vmem:[#allocation8 + $0x158] sm:$0xff] }
 0x909   : > { %5191 = vmatprep.subr.bf16.mxu1 %v5190_v3  ;;  %v5194_v58 = vpack.c.bf16 %v7270_v6, %v7287_v38  ;;  %v395_v61 = vrot.slane %v394_v48, 1  ;;  %v439_v56 = vrot.slane %v438_v10, 1  ;;  %v5196_v62 = vpack.c.bf16 %v7279_v18, %v7264_v23 }
 0x90a   : > { %5193 = vmatpush1.bf16.msra.mxu1 %v5192_v17  ;;  %v372_v60 = vadd.f32 %v371_v0, %v370_v34  ;;  %v456_v15 = vrot.slane %v455_v28, 1  ;;  %v480_v53 = vrot.slane %v479_v51, 1 }
 0x90b   : > { %5195 = vmatprep.subr.bf16.mxu1 %v5194_v58  ;;  %v396_v54 = vadd.f32 %v395_v61, %v394_v48  ;;  %4868 = vmatmul.mubr.msk.f32.vlgmr.msra.gmra.mrb[104].mxu0 %vm3962_vm3, %v3929_v36  ;;  %v440_v27 = vadd.f32 %v439_v56, %v438_v10 }
 0x90c   : > { %5232 = vpush %v372_v60  ;;  %v457_v49 = vadd.f32 %v456_v15, %v455_v28  ;;  %4396 = vmatprep.mubr.f32.mxu0 %v7572_v24  ;;  %v481_v29 = vadd.f32 %v480_v53, %v479_v51  ;;  %v4108_v28 = vld [vmem:[#allocation9 + $0x540] sm:$0xff]  ;;  %v4110_v53 = vld [vmem:[#allocation9 + $0x550] sm:$0xff] }
 0x90d   : > { %5234 = vpush %v396_v54 }
 0x90e   : > { %5197 = vmatpush1.bf16.msra.mxu1 %v5196_v62  ;;  %5236 = vpush %v440_v27  ;;  %v4111_v62 = vld [vmem:[#allocation9 + $0x558] sm:$0xff] }
 0x90f   : > { %5238 = vpush %v457_v49 }
 0x910   : > { %5240 = vpush %v481_v29 }
 0x911   : > { %4869 = vmatmul.mubr.msk.f32.vlgmr.msra.gmra.mrb[112].mxu1 %vm3962_vm3, %v3929_v36  ;;  %v4109_v36 = vld [vmem:[#allocation9 + $0x548] sm:$0xff] }
 0x912   : > { %4509 = vmatprep.mubr.f32.mxu1 %v7572_v24 }
 0x939   : > { %s5231_s21 = spop %5230 }
 0x93a   : > { %s357_s27 = smul.f32 0.00012207031, %s5231_s21  ;;  %s4735_s21 = sshll.u32 %s5990_s9, 8 }
 0x93c   : > { %v3901_v44 = vstv %s357_s27  ;;  %s7362_s27 = scalar_lea.vmem [#allocation11], %s4735_s21 }
 0x93d   : > { %v3902_v31 = vmul.f32 %v3901_v44, %v3900_v52  ;;  %s5233_s13 = spop %5232 }
 0x93e   : > { %s398_s5 = smul.f32 %s5233_s13, %s5233_s13  ;;  %s5235_s10 = spop %5234 }
 0x93f   : > { %s5237_s8 = spop %5236  ;;  %s4897_s13 = sshll.u32 %s5793_s19, 12 }
 0x940   : > { %s399_s24 = smul.f32 0.00012207031, %s398_s5  ;;  %s5239_s30 = spop %5238 }
 0x941   : > { %s442_s6 = smul.f32 0.00012207031, %s5237_s8  ;;  %s5241_s7 = spop %5240 }
 0x942   : > { %s400_s29 = ssub.f32 %s5235_s10, %s399_s24  ;;  %s483_s0 = smul.f32 %s5239_s30, %s5239_s30 }
 0x943   : > { %v3915_v45 = vstv %s442_s6  ;;  %s4604_s5 = sshll.u32 %s7362_s27, 4  ;;  %s7399_s24 = scalar_lea.hbm %s7451_s4, %s4897_s13  ;;  %s7401_s5 = int_to_ptr.vmem [resolvable:$true] %s4604_s5 }
 0x944   : > { %s401_s28 = smul.f32 0.00012208521, %s400_s29  ;;  %v3916_v25 = vmul.f32 %v3915_v45, %v3900_v52  ;;  %s4591_s19 = scalar_lea.sflag [#allocation5], %s5990_s9 }
 0x945   : > { %s484_s20 = smul.f32 0.00012207031, %s483_s0  ;;  %s5651_s30 = scalar_lea.vmem %s7401_s5, 4096 }
 0x946   : > { %v3903_v13 = vstv %s401_s28  ;;  %p5652_p2 = scmp.ne.s32.totalorder %s7401_s5, %s5651_s30  ;;  %s5744_s6 = smov [#allocation11]  }
 0x947   : > { %v3904_v30 = vmul.f32 %v3903_v13, %v3900_v52  ;;  %s485_s25 = ssub.f32 %s5241_s7, %s484_s20  ;;  %s5655_s29 = sshll.u32 %s5744_s6, 4  ;;  %s5656_s29 = int_to_ptr.vmem [resolvable:$false] %s5655_s29 }
 0x948   : > { %p5653_p6 = pnand %p5652_p2, %p7648_p13  ;;  %s5657_s0 = scalar_lea.vmem %s5656_s29, 8192 }
 0x949   : > { %s486_s23 = smul.f32 0.00012208521, %s485_s25  ;;  %3906 = vrot.lane.b32.xlu0 %v3904_v30, %s5743_s12  ;;  %p5658_p4 = scmp.lt.s32.totalorder %s7401_s5, %s5656_s29 }
 0x94a   : > { %p5654_p10 = pneg %p5653_p6  ;;  %p5659_p7 = scmp.lt.s32.totalorder %s5657_s0, %s5651_s30 }
 0x94b   : > { %v3917_v42 = vstv %s486_s23 }
 0x94c   : > { %v3918_v40 = vmul.f32 %v3917_v42, %v3900_v52  ;;  %p5660_p3 = por %p5659_p7, %p5658_p4 }
 0x94e   : > { %3920 = vrot.lane.b32.xlu1 %v3918_v40, %s5743_s12  ;;  %v4140_v40 = vlaneseq  ;;  %p5661_p5 = pnand %p5660_p3, %p5654_p10 }
 0x9bb   : > { %v3907_v8 = vpop.permute.xlu0 %3906 }
 0x9bc   : > { %v3909_v34 = vadd.f32 %v3907_v8, %v3902_v31 }
 0x9be   : > { %3912 = vperm.xlu1 %5325, %v3909_v34  }
 0x9c0   : > { %v3921_v59 = vpop.permute.xlu1 %3920 }
 0x9c1   : > { %v3923_v3 = vadd.f32 %v3921_v59, %v3916_v25 }
 0x9c3   : > { %3926 = vperm.xlu0 %5326, %v3923_v3   ;;  %v4141_v3 = vshrl.u32 %v4140_v40, 7 }
 0x9de   : > { %v4032_v48 = vpop.f32.mrb[104].mxu0 }
 0x9df   : > { %v4034_v17 = vpop.f32.mrb[105].mxu0 }
 0x9e4   : > { %v4103_v0 = vpop.f32.mrb[112].mxu1 }
 0x9e5   : > { %v4105_v10 = vpop.f32.mrb[113].mxu1 }
 0xa3d   : > { %v3913_v58 = vpop.permute.xlu1 %3912 }
 0xa3e   : > { %v4033_v61 = vadd.f32 %v4032_v48, %v3913_v58  ;;  %v4035_v51 = vadd.f32 %v4034_v17, %v3913_v58  ;;  %v4142_v17 = vsub.s32 0, %v4141_v3 }
 0xa40   : > { %v4112_v60 = vadd.f32 %v4108_v28, %v4033_v61  ;;  %v4113_v56 = vadd.f32 %v4109_v36, %v4035_v51 }
 0xa42   : > { %v4870_v15 = vmul.f32 -1.442695, %v4112_v60  ;;  %v4871_v54 = vmul.f32 -1.442695, %v4113_v56  ;;  %v3927_v27 = vpop.permute.xlu0 %3926 }
 0xa43   : > { %v4104_v49 = vadd.f32 %v4103_v0, %v3927_v27  ;;  %v4106_v29 = vadd.f32 %v4105_v10, %v3927_v27  ;;  %v4190_v0 = vsub.s32 1, %v4141_v3 }
 0xa44   : > { %5487 = vpow2.f32 %v4870_v15 }
 0xa45   : > { %5489 = vpow2.f32 %v4871_v54  ;;  %v4114_v52 = vadd.f32 %v4110_v53, %v4104_v49  ;;  %v4115_v44 = vadd.f32 %v4111_v62, %v4106_v29 }
 0xa47   : > { %v4872_v31 = vmul.f32 -1.442695, %v4114_v52  ;;  %v4873_v45 = vmul.f32 -1.442695, %v4115_v44 }
 0xa49   : > { %5491 = vpow2.f32 %v4872_v31 }
 0xa4a   : > { %5493 = vpow2.f32 %v4873_v45 }
 0xa4e   : > { %v5488_v25 = vpop.eup %5487 }
 0xa4f   : > { %v5490_v13 = vpop.eup %5489  ;;  %v4128_v30 = vadd.f32 1.0, %v5488_v25 }
 0xa50   : > { %v4129_v42 = vadd.f32 1.0, %v5490_v13 }
 0xa51   : > { %5495 = vrcp.f32 %v4128_v30 }
 0xa52   : > { %5497 = vrcp.f32 %v4129_v42 }
 0xa53   : > { %v5492_v8 = vpop.eup %5491 }
 0xa54   : > { %v5494_v34 = vpop.eup %5493  ;;  %v4130_v59 = vadd.f32 1.0, %v5492_v8 }
 0xa55   : > { %v4131_v48 = vadd.f32 1.0, %v5494_v34 }
 0xa56   : > { %5499 = vrcp.f32 %v4130_v59 }
 0xa57   : > { %5501 = vrcp.f32 %v4131_v48 }
 0xa5b   : > { %v5496_v10 = vpop.eup %5495 }
 0xa5c   : > { %v5498_v28 = vpop.eup %5497  ;;  %v4143_v36 = vrot.slane %v5496_v10, %v4142_v17  ;;  %v4191_v52 = vrot.slane %v5496_v10, %v4190_v0 }
 0xa5d   : > { %v4147_v58 = vrot.slane %v5498_v28, %v4142_v17  ;;  %v4195_v61 = vrot.slane %v5498_v28, %v4190_v0 }
 0xa5e   : > { %v4156_v51 = vmul.f32 %v4143_v36, %v7173_v20  ;;  %v4160_v60 = vmul.f32 %v4143_v36, %v7178_v11  ;;  %v4164_v49 = vmul.f32 %v4143_v36, %v7181_v50  ;;  %v4168_v29 = vmul.f32 %v4143_v36, %v7187_v2  ;;  %v4241_v36 = vld [vmem:[#allocation8 + $0x188] sm:$0xff] }
 0xa5f   : > { %v4157_v56 = vmul.f32 %v4147_v58, %v7167_v14  ;;  %v4161_v15 = vmul.f32 %v4147_v58, %v7170_v4  ;;  %v4165_v54 = vmul.f32 %v4147_v58, %v7153_v16  ;;  %v4169_v53 = vmul.f32 %v4147_v58, %v7184_v1  ;;  %v4242_v58 = vld [vmem:[#allocation8 + $0x190] sm:$0xff] }
 0xa60   : > { %v5500_v62 = vpop.eup %5499  ;;  %v5200_v27 = vpack.c.bf16 %v4160_v60, %v4156_v51  ;;  %v4205_v20 = vmul.f32 %v4195_v61, %v7238_v46  ;;  %v4209_v11 = vmul.f32 %v4195_v61, %v7241_v9  ;;  %v5204_v25 = vpack.c.bf16 %v4168_v29, %v4164_v49  ;;  %v4276_v51 = vld [vmem:[#allocation9 + $0x560] sm:$0xff]  ;;  %v4277_v60 = vld [vmem:[#allocation9 + $0x568] sm:$0xff] }
 0xa61   : > { %v5502_v44 = vpop.eup %5501  ;;  %v5198_v31 = vpack.c.bf16 %v4161_v15, %v4157_v56  ;;  %v4151_v14 = vrot.slane %v5500_v62, %v4142_v17  ;;  %v5202_v4 = vpack.c.bf16 %v4169_v53, %v4165_v54  ;;  %v4204_v9 = vmul.f32 %v4191_v52, %v7249_v57  ;;  %v4281_v49 = vld [vmem:[#allocation9 + $0x588] sm:$0xff] }
 0xa62   : > { %v4155_v45 = vrot.slane %v5502_v44, %v4142_v17  ;;  %v5206_v46 = vpack.c.bf16 %v4209_v11, %v4205_v20  ;;  %v4203_v8 = vrot.slane %v5502_v44, %v4190_v0  ;;  %v4217_v34 = vmul.f32 %v4195_v61, %v7244_v47 }
 0xa63   : > { %5199 = vmatprep.subr.bf16.mxu0 %v5198_v31  ;;  %v4158_v16 = vmul.f32 %v4151_v14, %v7205_v19  ;;  %v4162_v1 = vmul.f32 %v4151_v14, %v7208_v43  ;;  %v4208_v19 = vmul.f32 %v4191_v52, %v7252_v55  ;;  %v4213_v43 = vmul.f32 %v4195_v61, %v7257_v26  ;;  %v4243_v61 = vld [vmem:[#allocation8 + $0x198] sm:$0xff] }
 0xa64   : > { %5201 = vmatpush1.bf16.msra.mxu0 %v5200_v27  ;;  %v4159_v50 = vmul.f32 %v4155_v45, %v7199_v41  ;;  %v4163_v2 = vmul.f32 %v4155_v45, %v7202_v12  ;;  %v4167_v13 = vmul.f32 %v4155_v45, %v7196_v7  ;;  %v4171_v42 = vmul.f32 %v4155_v45, %v7211_v21  ;;  %v4278_v27 = vld [vmem:[#allocation9 + $0x570] sm:$0xff]  ;;  %v4284_v45 = vld [vmem:[#allocation9 + $0x5a0] sm:$0xff] }
 0xa65   : > { %5203 = vmatprep.subr.bf16.mxu0 %v5202_v4  ;;  %v5216_v30 = vpack.c.bf16 %v4162_v1, %v4158_v16  ;;  %v4166_v41 = vmul.f32 %v4151_v14, %v7214_v63  ;;  %v4170_v12 = vmul.f32 %v4151_v14, %v7220_v5  ;;  %v4199_v7 = vrot.slane %v5500_v62, %v4190_v0  ;;  %v4280_v62 = vld [vmem:[#allocation9 + $0x580] sm:$0xff]  ;;  %v4282_v16 = vld [vmem:[#allocation9 + $0x590] sm:$0xff]  ;;  %v4285_v1 = vld [vmem:[#allocation9 + $0x5a8] sm:$0xff] }
 0xa66   : > { %v5214_v40 = vpack.c.bf16 %v4163_v2, %v4159_v50  ;;  %v5218_v59 = vpack.c.bf16 %v4171_v42, %v4167_v13  ;;  %v4207_v57 = vmul.f32 %v4203_v8, %v7273_v22  ;;  %v4211_v21 = vmul.f32 %v4203_v8, %v7276_v37 }
 0xa67   : > { %v5208_v55 = vpack.c.bf16 %v4208_v19, %v4204_v9  ;;  %v4212_v26 = vmul.f32 %v4191_v52, %v7232_v39  ;;  %v4216_v47 = vmul.f32 %v4191_v52, %v7235_v33  ;;  %v5210_v3 = vpack.c.bf16 %v4217_v34, %v4213_v43  ;;  %v4286_v43 = vld [vmem:[#allocation9 + $0x5b0] sm:$0xff]  ;;  %v4287_v34 = vld [vmem:[#allocation9 + $0x5b8] sm:$0xff] }
 0xa68   : > { %5205 = vmatpush1.bf16.msra.mxu0 %v5204_v25  ;;  %5215 = vmatprep.subr.bf16.mxu1 %v5214_v40  ;;  %v5220_v63 = vpack.c.bf16 %v4170_v12, %v4166_v41  ;;  %v4206_v5 = vmul.f32 %v4199_v7, %v7267_v32  ;;  %v4210_v48 = vmul.f32 %v4199_v7, %v7282_v35  ;;  %v4236_v32 = vld [vmem:[#allocation8 + $0x160] sm:$0xff]  ;;  %v4283_v25 = vld [vmem:[#allocation9 + $0x598] sm:$0xff] }
 0xa69   : > { %5207 = vmatprep.subr.bf16.mxu0 %v5206_v46  ;;  %5217 = vmatpush1.bf16.msra.mxu1 %v5216_v30  ;;  %v5222_v17 = vpack.c.bf16 %v4211_v21, %v4207_v57  ;;  %v4215_v22 = vmul.f32 %v4203_v8, %v7287_v38  ;;  %v4219_v37 = vmul.f32 %v4203_v8, %v7270_v6  ;;  %v4237_v6 = vld [vmem:[#allocation8 + $0x168] sm:$0xff]  ;;  %v4240_v38 = vld [vmem:[#allocation8 + $0x180] sm:$0xff] }
 0xa6a   : > { %5219 = vmatprep.subr.bf16.mxu1 %v5218_v59  ;;  %v5212_v0 = vpack.c.bf16 %v4216_v47, %v4212_v26  ;;  %v5224_v10 = vpack.c.bf16 %v4210_v48, %v4206_v5  ;;  %v4214_v39 = vmul.f32 %v4199_v7, %v7264_v23  ;;  %v4218_v33 = vmul.f32 %v4199_v7, %v7279_v18  ;;  %v4238_v23 = vld [vmem:[#allocation8 + $0x170] sm:$0xff]  ;;  %v4239_v18 = vld [vmem:[#allocation8 + $0x178] sm:$0xff]  ;;  %v4288_v40 = vld [vmem:[#allocation9 + $0x5c0] sm:$0xff] }
 0xa6b   : > { %v5226_v28 = vpack.c.bf16 %v4219_v37, %v4215_v22  ;;  %v4289_v8 = vld [vmem:[#allocation9 + $0x5c8] sm:$0xff]  ;;  %v4292_v26 = vld [vmem:[#allocation9 + $0x5e0] sm:$0xff]  ;;  %v4291_v5 = vld [vmem:[#allocation9 + $0x5d8] sm:$0xff] }
 0xa6c   : > { %5209 = vmatpush1.bf16.msra.mxu0 %v5208_v55  ;;  %v5228_v35 = vpack.c.bf16 %v4218_v33, %v4214_v39  ;;  %v4296_v33 = vld [vmem:[#allocation9 + $0x600] sm:$0xff] }
 0xa6d   : > { %5211 = vmatprep.subr.bf16.mxu0 %v5210_v3  ;;  %5221 = vmatpush1.bf16.msra.mxu1 %v5220_v63  ;;  %v4290_v3 = vld [vmem:[#allocation9 + $0x5d0] sm:$0xff]  ;;  %v4293_v63 = vld [vmem:[#allocation9 + $0x5e8] sm:$0xff] }
 0xa6e   : > { %5223 = vmatprep.subr.bf16.mxu1 %v5222_v17 }
 0xa70   : > { %5213 = vmatpush1.bf16.msra.mxu0 %v5212_v0 }
 0xa71   : > { %5225 = vmatpush1.bf16.msra.mxu1 %v5224_v10 }
 0xa72   : > { %5227 = vmatprep.subr.bf16.mxu1 %v5226_v28 }
 0xa73   : > { %4874 = vmatmul.mubr.msk.f32.vlgmr.msra.gmra.mrb[106].mxu0 %vm3962_vm3, %v4236_v32 }
 0xa74   : > { %4402 = vmatprep.mubr.f32.mxu0 %v7572_v24 }
 0xa75   : > { %5229 = vmatpush1.bf16.msra.mxu1 %v5228_v35  ;;  %v4297_v35 = vld [vmem:[#allocation9 + $0x608] sm:$0xff] }
 0xa77   : > { %4875 = vmatmul.mubr.msk.f32.gmra.mrb[108].mxu0 %vm3962_vm3, %v4237_v6 }
 0xa78   : > { %4882 = vmatmul.mubr.msk.f32.vlgmr.msra.gmra.mrb[114].mxu1 %vm3962_vm3, %v4236_v32  ;;  %4408 = vmatprep.mubr.f32.mxu0 %v7572_v24  ;;  %v4294_v32 = vld [vmem:[#allocation9 + $0x5f0] sm:$0xff] }
 0xa79   : > { %4515 = vmatprep.mubr.f32.mxu1 %v7572_v24 }
 0xa7b   : > { %4876 = vmatmul.mubr.msk.f32.gmra.mrb[110].mxu0 %vm3962_vm3, %v4238_v23 }
 0xa7c   : > { %4883 = vmatmul.mubr.msk.f32.gmra.mrb[116].mxu1 %vm3962_vm3, %v4237_v6  ;;  %4414 = vmatprep.mubr.f32.mxu0 %v7572_v24  ;;  %v4295_v6 = vld [vmem:[#allocation9 + $0x5f8] sm:$0xff] }
 0xa7d   : > { %4521 = vmatprep.mubr.f32.mxu1 %v7572_v24 }
 0xa7f   : > { %4877 = vmatmul.mubr.msk.f32.gmra.mrb[112].mxu0 %vm3962_vm3, %v4239_v18 }
 0xa80   : > { %4884 = vmatmul.mubr.msk.f32.gmra.mrb[118].mxu1 %vm3962_vm3, %v4238_v23  ;;  %4420 = vmatprep.mubr.f32.mxu0 %v7572_v24 }
 0xa81   : > { %4527 = vmatprep.mubr.f32.mxu1 %v7572_v24 }
 0xa83   : > { %4878 = vmatmul.mubr.msk.f32.gmra.mrb[114].mxu0 %vm3962_vm3, %v4240_v38 }
 0xa84   : > { %4885 = vmatmul.mubr.msk.f32.gmra.mrb[120].mxu1 %vm3962_vm3, %v4239_v18  ;;  %4426 = vmatprep.mubr.f32.mxu0 %v7572_v24 }
 0xa85   : > { %4533 = vmatprep.mubr.f32.mxu1 %v7572_v24 }
 0xa87   : > { %4879 = vmatmul.mubr.msk.f32.gmra.mrb[116].mxu0 %vm3962_vm3, %v4241_v36 }
 0xa88   : > { %4886 = vmatmul.mubr.msk.f32.gmra.mrb[122].mxu1 %vm3962_vm3, %v4240_v38  ;;  %4432 = vmatprep.mubr.f32.mxu0 %v7572_v24 }
 0xa89   : > { %4539 = vmatprep.mubr.f32.mxu1 %v7572_v24 }
 0xa8b   : > { %4880 = vmatmul.mubr.msk.f32.gmra.mrb[118].mxu0 %vm3962_vm3, %v4242_v58 }
 0xa8c   : > { %4887 = vmatmul.mubr.msk.f32.gmra.mrb[124].mxu1 %vm3962_vm3, %v4241_v36  ;;  %4438 = vmatprep.mubr.f32.mxu0 %v7572_v24 }
 0xa8d   : > { %4545 = vmatprep.mubr.f32.mxu1 %v7572_v24 }
 0xa8f   : > { %4881 = vmatmul.mubr.msk.f32.gmra.mrb[120].mxu0 %vm3962_vm3, %v4243_v61 }
 0xa90   : > { %4888 = vmatmul.mubr.msk.f32.gmra.mrb[126].mxu1 %vm3962_vm3, %v4242_v58 }
 0xa91   : > { %4551 = vmatprep.mubr.f32.mxu1 %v7572_v24  ;;  %v4279_v24 = vld [vmem:[#allocation9 + $0x578] sm:$0xff] }
 0xa94   : > { %4889 = vmatmul.mubr.msk.f32.gmra.mrb[128].mxu1 %vm3962_vm3, %v4243_v61 }
 0xb46   : > { %v4398_v56 = vpop.f32.mrb[106].mxu0 }
 0xb47   : > { %v4399_v15 = vadd.f32 %v4398_v56, %v4276_v51  ;;  %v4400_v54 = vpop.f32.mrb[107].mxu0 }
 0xb48   : > { %v4401_v53 = vadd.f32 %v4400_v54, %v4277_v60  ;;  %v4300_v60 = vld [vmem:[#allocation9 + $0x620] sm:$0xff]  ;;  %v4301_v54 = vld [vmem:[#allocation9 + $0x628] sm:$0xff] }
 0xb49   : > { %4558 = vst [vmem:[%s7362_s27] sm:$0xff] %v4399_v15  ;;  %v4298_v15 = vld [vmem:[#allocation9 + $0x610] sm:$0xff] }
 0xb4a   : > { %4559 = vst [vmem:[%s7362_s27 + $0x8] sm:$0xff] %v4401_v53  ;;  %v4404_v29 = vpop.f32.mrb[108].mxu0  ;;  %v4299_v53 = vld [vmem:[#allocation9 + $0x618] sm:$0xff] }
 0xb4b   : > { %v4511_v52 = vpop.f32.mrb[114].mxu1  ;;  %v4405_v44 = vadd.f32 %v4404_v29, %v4280_v62  ;;  %v4406_v31 = vpop.f32.mrb[109].mxu0 }
 0xb4c   : > { %v4512_v20 = vadd.f32 %v4511_v52, %v4278_v27  ;;  %v4513_v11 = vpop.f32.mrb[115].mxu1  ;;  %v4407_v14 = vadd.f32 %v4406_v31, %v4281_v49  ;;  %v4304_v31 = vld [vmem:[#allocation9 + $0x640] sm:$0xff] }
 0xb4d   : > { %v4514_v4 = vadd.f32 %v4513_v11, %v4279_v24  ;;  %4562 = vst [vmem:[%s7362_s27 + $0x20] sm:$0xff] %v4405_v44  ;;  %v4302_v11 = vld [vmem:[#allocation9 + $0x630] sm:$0xff] }
 0xb4e   : > { %4560 = vst [vmem:[%s7362_s27 + $0x10] sm:$0xff] %v4512_v20  ;;  %4563 = vst [vmem:[%s7362_s27 + $0x28] sm:$0xff] %v4407_v14  ;;  %v4410_v50 = vpop.f32.mrb[110].mxu0  ;;  %v4305_v14 = vld [vmem:[#allocation9 + $0x648] sm:$0xff] }
 0xb4f   : > { %4561 = vst [vmem:[%s7362_s27 + $0x18] sm:$0xff] %v4514_v4  ;;  %v4517_v2 = vpop.f32.mrb[116].mxu1  ;;  %v4411_v13 = vadd.f32 %v4410_v50, %v4284_v45  ;;  %v4412_v46 = vpop.f32.mrb[111].mxu0  ;;  %v4303_v45 = vld [vmem:[#allocation9 + $0x638] sm:$0xff] }
 0xb50   : > { %v4518_v30 = vadd.f32 %v4517_v2, %v4282_v16  ;;  %v4519_v9 = vpop.f32.mrb[117].mxu1  ;;  %v4413_v42 = vadd.f32 %v4412_v46, %v4285_v1 }
 0xb51   : > { %v4520_v19 = vadd.f32 %v4519_v9, %v4283_v25  ;;  %4566 = vst [vmem:[%s7362_s27 + $0x40] sm:$0xff] %v4411_v13  ;;  %v4307_v9 = vld [vmem:[#allocation9 + $0x658] sm:$0xff] }
 0xb52   : > { %4564 = vst [vmem:[%s7362_s27 + $0x30] sm:$0xff] %v4518_v30  ;;  %4567 = vst [vmem:[%s7362_s27 + $0x48] sm:$0xff] %v4413_v42  ;;  %v4416_v41 = vpop.f32.mrb[112].mxu0  ;;  %v4306_v30 = vld [vmem:[#allocation9 + $0x650] sm:$0xff] }
 0xb53   : > { %4565 = vst [vmem:[%s7362_s27 + $0x38] sm:$0xff] %v4520_v19  ;;  %v4523_v12 = vpop.f32.mrb[118].mxu1  ;;  %v4417_v7 = vadd.f32 %v4416_v41, %v4288_v40  ;;  %v4418_v59 = vpop.f32.mrb[113].mxu0 }
 0xb54   : > { %v4524_v57 = vadd.f32 %v4523_v12, %v4286_v43  ;;  %v4525_v21 = vpop.f32.mrb[119].mxu1  ;;  %v4419_v55 = vadd.f32 %v4418_v59, %v4289_v8 }
 0xb55   : > { %v4526_v47 = vadd.f32 %v4525_v21, %v4287_v34  ;;  %4570 = vst [vmem:[%s7362_s27 + $0x60] sm:$0xff] %v4417_v7 }
 0xb56   : > { %4568 = vst [vmem:[%s7362_s27 + $0x50] sm:$0xff] %v4524_v57  ;;  %4571 = vst [vmem:[%s7362_s27 + $0x68] sm:$0xff] %v4419_v55  ;;  %v4422_v48 = vpop.f32.mrb[114].mxu0 }
 0xb57   : > { %4569 = vst [vmem:[%s7362_s27 + $0x58] sm:$0xff] %v4526_v47  ;;  %v4529_v17 = vpop.f32.mrb[120].mxu1  ;;  %v4423_v22 = vadd.f32 %v4422_v48, %v4292_v26  ;;  %v4424_v37 = vpop.f32.mrb[115].mxu0 }
 0xb58   : > { %v4530_v0 = vadd.f32 %v4529_v17, %v4290_v3  ;;  %v4531_v10 = vpop.f32.mrb[121].mxu1  ;;  %v4425_v39 = vadd.f32 %v4424_v37, %v4293_v63 }
 0xb59   : > { %v4532_v28 = vadd.f32 %v4531_v10, %v4291_v5  ;;  %4574 = vst [vmem:[%s7362_s27 + $0x80] sm:$0xff] %v4423_v22 }
 0xb5a   : > { %4572 = vst [vmem:[%s7362_s27 + $0x70] sm:$0xff] %v4530_v0  ;;  %4575 = vst [vmem:[%s7362_s27 + $0x88] sm:$0xff] %v4425_v39  ;;  %v4428_v23 = vpop.f32.mrb[116].mxu0 }
 0xb5b   : > { %4573 = vst [vmem:[%s7362_s27 + $0x78] sm:$0xff] %v4532_v28  ;;  %v4535_v18 = vpop.f32.mrb[122].mxu1  ;;  %v4429_v38 = vadd.f32 %v4428_v23, %v4296_v33  ;;  %v4430_v36 = vpop.f32.mrb[117].mxu0 }
 0xb5c   : > { %v4536_v58 = vadd.f32 %v4535_v18, %v4294_v32  ;;  %v4537_v61 = vpop.f32.mrb[123].mxu1  ;;  %v4431_v51 = vadd.f32 %v4430_v36, %v4297_v35 }
 0xb5d   : > { %v4538_v56 = vadd.f32 %v4537_v61, %v4295_v6  ;;  %4578 = vst [vmem:[%s7362_s27 + $0xa0] sm:$0xff] %v4429_v38 }
 0xb5e   : > { %4576 = vst [vmem:[%s7362_s27 + $0x90] sm:$0xff] %v4536_v58  ;;  %4579 = vst [vmem:[%s7362_s27 + $0xa8] sm:$0xff] %v4431_v51  ;;  %v4434_v62 = vpop.f32.mrb[118].mxu0 }
 0xb5f   : > { %4577 = vst [vmem:[%s7362_s27 + $0x98] sm:$0xff] %v4538_v56  ;;  %v4541_v27 = vpop.f32.mrb[124].mxu1  ;;  %v4435_v49 = vadd.f32 %v4434_v62, %v4300_v60  ;;  %v4436_v24 = vpop.f32.mrb[119].mxu0 }
 0xb60   : > { %v4542_v29 = vadd.f32 %v4541_v27, %v4298_v15  ;;  %v4543_v52 = vpop.f32.mrb[125].mxu1  ;;  %v4437_v44 = vadd.f32 %v4436_v24, %v4301_v54 }
 0xb61   : > { %v4544_v20 = vadd.f32 %v4543_v52, %v4299_v53  ;;  %4582 = vst [vmem:[%s7362_s27 + $0xc0] sm:$0xff] %v4435_v49 }
 0xb62   : > { %4580 = vst [vmem:[%s7362_s27 + $0xb0] sm:$0xff] %v4542_v29  ;;  %4583 = vst [vmem:[%s7362_s27 + $0xc8] sm:$0xff] %v4437_v44  ;;  %v4440_v4 = vpop.f32.mrb[120].mxu0 }
 0xb63   : > { %4581 = vst [vmem:[%s7362_s27 + $0xb8] sm:$0xff] %v4544_v20  ;;  %v4547_v16 = vpop.f32.mrb[126].mxu1  ;;  %v4441_v1 = vadd.f32 %v4440_v4, %v4304_v31  ;;  %v4442_v25 = vpop.f32.mrb[121].mxu0 }
 0xb64   : > { %v4548_v50 = vadd.f32 %v4547_v16, %v4302_v11  ;;  %v4549_v2 = vpop.f32.mrb[127].mxu1  ;;  %v4443_v13 = vadd.f32 %v4442_v25, %v4305_v14 }
 0xb65   : > { %v4550_v46 = vadd.f32 %v4549_v2, %v4303_v45  ;;  %4586 = vst [vmem:[%s7362_s27 + $0xe0] sm:$0xff] %v4441_v1 }
 0xb66   : > { %4584 = vst [vmem:[%s7362_s27 + $0xd0] sm:$0xff] %v4548_v50  ;;  %4587 = vst [vmem:[%s7362_s27 + $0xe8] sm:$0xff] %v4443_v13 }
 0xb67   : > { %4585 = vst [vmem:[%s7362_s27 + $0xd8] sm:$0xff] %v4550_v46  ;;  %v4553_v42 = vpop.f32.mrb[128].mxu1 }
 0xb68   : > { %v4554_v40 = vadd.f32 %v4553_v42, %v4306_v30  ;;  %v4555_v19 = vpop.f32.mrb[129].mxu1 }
 0xb69   : > { %v4556_v43 = vadd.f32 %v4555_v19, %v4307_v9 }
 0xb6a   : > { %4588 = vst [vmem:[%s7362_s27 + $0xf0] sm:$0xff] %v4554_v40 }
 0xb6b   : > { %4589 = vst [vmem:[%s7362_s27 + $0xf8] sm:$0xff] %v4556_v43 }
 0xb6c   : > { %5664 = shalt.err (!%p5661_p5)
}
 0xb6d   : > { %s5665_s28 = scalar_lea.hbm %s7399_s24, 4096  ;;  %s5669_s25 = scalar_lea.hbm %s7451_s4, 8192 }
 0xb6e   : > { %p5666_p9 = scmp.ne.s32.totalorder %s7399_s24, %s5665_s28  ;;  %p5670_p11 = scmp.lt.u32.totalorder %s7399_s24, %s7451_s4 }
 0xb6f   : > { %p5671_p1 = scmp.lt.u32.totalorder %s5669_s25, %s5665_s28  ;;  %p5673_p2 = scmp.lt.u32.totalorder %s5665_s28, %s7399_s24 }
 0xb70   : > { %p5667_p0 = pnand %p5666_p9, %p7648_p13 }
 0xb71   : > { %p5672_p12 = por %p5671_p1, %p5670_p11 }
 0xb72   : > { %p5668_p8 = pneg %p5667_p0 }
 0xb73   : > { %p5674_p6 = por %p5673_p2, %p5672_p12 }
 0xb75   : > { %p5675_p10 = pnand %p5674_p6, %p5668_p8 }
 0xb77   : > { %5678 = shalt.err (!%p5675_p10)
}
 0xb78   : > { %s5745_s21 = smov 512   ;;  %s5746_s27 = smov 32  }
 0xb79   : > { %5254 = dma.vmem_to_hbm [thread:$0]  (%p7648_p13), %s7401_s5, 4096, %s7399_s24, %s4591_s19, %s5745_s21, %s5745_s21, %s5746_s27  }
 0xb7a PF: > { %s4619_s13 = sand.u32 1, %s5717_s15   ;;  %p7649_p4 = scmp.ne.s32.totalorder %s7508_s22, 0 }
 0xb7b   : > { %p7650_p7 = scmp.ge.s32.totalorder %s5729_s18, 2  ;;  %s4620_s10 = scalar_lea.sflag [#allocation5], %s4619_s13 }
 0xb7d   : > { %p5271_p3 = pnand %p7650_p7, %p7649_p4 }
 0xb7f   : > { %5712 = dma.done.wait (!%p5271_p3), %s4620_s10, 4096  }
 0xb80   : > { %5714 = vsyncadd (!%p5271_p3), %s4620_s10, 4294963200  ;;  %p21_p5 = scmp.ge.s32.totalorder %s5885_s11, 4   ;;  %s7651_s15 = smov %s5721_s16 }
 0xb81   : > { %s7652_s16 = smov %s5725_s17  ;;  %s7653_s17 = smov %s5894_s14 }
 0xb82   : > { %s7654_s18 = smov %s5885_s11  ;;  %23 = sbr.rel (!%p21_p5) target bundleno = 10 (0xa), region = 102 }
 0xb89   :  { %4625 = vsyncpa [#allocation4], 1 }
 0xb8a   :  { %4627 = vsyncpa [#allocation4 + $0x1], 1 }
 0xb8b   :  { %4628 = vsyncpa [#allocation7], 1 }
 0xb8c   :  { %4630 = vsyncpa [#allocation7 + $0x1], 1 }
 0xb8d   :  { %4631 = vsyncpa [#allocation10], 1 }
 0xb8e   :  { %4632 = vsyncpa [#allocation5], 1 }
 0xb8f   :  { %4634 = vsyncpa [#allocation5 + $0x1], 1 }

</bundles_post_ra>
